<compile_context>
chip_gen: v6e
topology: v6e:2x2x1
jax: 0.10.0
libtpu: 0.0.40
codegen_flags: <defaults>
</compile_context>

<pallas_src>
import functools
import math

import jax
import jax.numpy as jnp
from jax import lax
from jax.experimental import pallas as pl
from jax.experimental.pallas import tpu as pltpu

NEG_INF = -1e30
MM_DTYPE = jnp.bfloat16   # MXU input dtype / inter-layer activation dtype
LN_EPS = 1e-5


# ----------------------------- in-kernel helpers -----------------------------

def _mm(a, b):
    """MXU matmul with bf16 inputs and f32 accumulation."""
    return jnp.dot(a.astype(MM_DTYPE), b.astype(MM_DTYPE),
                   preferred_element_type=jnp.float32)


def _ln(x, g, b):
    """Row-wise LayerNorm (biased variance, matches PyTorch). x:(M,E), g/b:(1,E). f32."""
    mean = jnp.mean(x, axis=-1, keepdims=True)
    xc = x - mean
    var = jnp.mean(xc * xc, axis=-1, keepdims=True)
    return xc * lax.rsqrt(var + LN_EPS) * g + b


def _mha(q, k, v, wo, bo, *, num_heads, pad_bias=None, causal=False):
    """Multi-head attention with a single fused output projection.

    q:(Lq,E)  k,v:(Lk,E)  wo:(E,E) bf16  bo:(1,E) f32  pad_bias:(1,Lk) additive or None.
    The softmax scale is already folded into the Q projection weights.
    """
    Lq, E = q.shape
    Lk = k.shape[0]
    Dh = E // num_heads

    bias = None
    if causal:
        row = lax.broadcasted_iota(jnp.int32, (Lq, Lk), 0)
        col = lax.broadcasted_iota(jnp.int32, (Lq, Lk), 1)
        bias = jnp.where(row < col, NEG_INF, 0.0).astype(jnp.float32)
    if pad_bias is not None:
        bias = pad_bias if bias is None else bias + pad_bias   # combined once, shared

    heads = []
    for h in range(num_heads):      # static unrolled loop over tiny Dh=8 heads
        sl = slice(h * Dh, (h + 1) * Dh)
        # scores = q_h @ k_h^T (contract last dims -> no explicit transpose)
        s = lax.dot_general(q[:, sl].astype(MM_DTYPE), k[:, sl].astype(MM_DTYPE),
                            (((1,), (1,)), ((), ())),
                            preferred_element_type=jnp.float32)
        if bias is not None:
            s = s + bias
        m = jnp.max(s, axis=-1, keepdims=True)
        p = jnp.exp(s - m)
        inv = pl.reciprocal(jnp.sum(p, axis=-1, keepdims=True), approx=True)
        heads.append(_mm(p, v[:, sl]) * inv)
    o = jnp.concatenate(heads, axis=-1)          # (Lq, E): concat heads, then ...
    return _mm(o, wo) + bo                       # ... ONE fused out-projection matmul


# ------------------------------ fused layer kernels --------------------------

def _encoder_layer_kernel(x_ref, src_ref,
                          wqkv_ref, bqkv_ref, wo_ref, bo_ref,
                          ln1g_ref, ln1b_ref,
                          w1_ref, b1_ref, w2_ref, b2_ref,
                          ln2g_ref, ln2b_ref, *rest,
                          num_heads, pad_idx, apply_final_norm):
    if apply_final_norm:
        fng_ref, fnb_ref, o_ref = rest
    else:
        (o_ref,) = rest

    x = x_ref[0].astype(jnp.float32)                       # (Ls, E), f32 epilogue math
    E = x.shape[-1]
    # key-padding bias built in-kernel from the raw int32 src ids (no XLA-side mask op)
    pad_bias = jnp.where(src_ref[0] == pad_idx, NEG_INF, 0.0).astype(jnp.float32)  # (1,Ls)

    qkv = _mm(x, wqkv_ref[...]) + bqkv_ref[...]            # fused QKV projection (Ls,3E)
    q, k, v = qkv[:, :E], qkv[:, E:2 * E], qkv[:, 2 * E:]
    a = _mha(q, k, v, wo_ref[...], bo_ref[...],
             num_heads=num_heads, pad_bias=pad_bias)
    x = _ln(x + a, ln1g_ref[...], ln1b_ref[...])

    h = jnp.maximum(_mm(x, w1_ref[...]) + b1_ref[...], 0.0)
    f = _mm(h, w2_ref[...]) + b2_ref[...]
    x = _ln(x + f, ln2g_ref[...], ln2b_ref[...])

    if apply_final_norm:                                   # fused encoder-stack norm
        x = _ln(x, fng_ref[...], fnb_ref[...])
    o_ref[0] = x.astype(o_ref.dtype)                       # bf16 writeback


def _decoder_layer_kernel(y_ref, mem_ref,
                          wqkv_ref, bqkv_ref, wos_ref, bos_ref,
                          ln1g_ref, ln1b_ref,
                          wqc_ref, bqc_ref, wkvc_ref, bkvc_ref, woc_ref, boc_ref,
                          ln2g_ref, ln2b_ref,
                          w1_ref, b1_ref, w2_ref, b2_ref,
                          ln3g_ref, ln3b_ref,
                          o_ref, *, num_heads):
    y = y_ref[0].astype(jnp.float32)        # (Lt, E)
    mem = mem_ref[0]                        # (Ls, E) bf16 -- only feeds the MXU
    E = y.shape[-1]

    # masked self-attention (causal mask generated in-kernel)
    qkv = _mm(y, wqkv_ref[...]) + bqkv_ref[...]
    q, k, v = qkv[:, :E], qkv[:, E:2 * E], qkv[:, 2 * E:]
    a = _mha(q, k, v, wos_ref[...], bos_ref[...], num_heads=num_heads, causal=True)
    y = _ln(y + a, ln1g_ref[...], ln1b_ref[...])

    # cross-attention (no mask: nn.Transformer memory_key_padding_mask=None here)
    q = _mm(y, wqc_ref[...]) + bqc_ref[...]
    kv = _mm(mem, wkvc_ref[...]) + bkvc_ref[...]
    k, v = kv[:, :E], kv[:, E:]
    c = _mha(q, k, v, woc_ref[...], boc_ref[...], num_heads=num_heads)
    y = _ln(y + c, ln2g_ref[...], ln2b_ref[...])

    # feed-forward
    h = jnp.maximum(_mm(y, w1_ref[...]) + b1_ref[...], 0.0)
    f = _mm(h, w2_ref[...]) + b2_ref[...]
    y = _ln(y + f, ln3g_ref[...], ln3b_ref[...])
    o_ref[0] = y.astype(o_ref.dtype)        # bf16 writeback


def _final_kernel(y_ref, g_ref, b_ref, w_ref, fb_ref, o_ref):
    """Decoder final LayerNorm + fc_out (V padded to 128 lanes) + softmax(dim=-1)."""
    y = _ln(y_ref[0].astype(jnp.float32), g_ref[...], b_ref[...])     # (Lt, E)
    logits = _mm(y, w_ref[...]) + fb_ref[...]     # (Lt, Vp); pad cols biased to NEG_INF
    m = jnp.max(logits, axis=-1, keepdims=True)
    e = jnp.exp(logits - m)                       # pad columns underflow to exactly 0
    o_ref[0] = e / jnp.sum(e, axis=-1, keepdims=True)   # exact div: real cols sum to 1


# ------------------------------ pallas_call wrappers --------------------------

def _w_spec(shape):
    """Replicated (grid-invariant) whole-array block."""
    return pl.BlockSpec(shape, lambda b: (0,) * len(shape))


def encoder_layer(x, src_ids, p, num_heads, pad_idx, final_norm=None):
    B, Ls, E = x.shape
    weights = [p["wqkv"], p["bqkv"], p["wo"], p["bo"],
               p["ln1_g"], p["ln1_b"],
               p["w1"], p["b1"], p["w2"], p["b2"],
               p["ln2_g"], p["ln2_b"]]
    if final_norm is not None:
        weights += list(final_norm)
    kernel = functools.partial(_encoder_layer_kernel, num_heads=num_heads,
                               pad_idx=pad_idx,
                               apply_final_norm=final_norm is not None)
    return pl.pallas_call(
        kernel,
        out_shape=jax.ShapeDtypeStruct((B, Ls, E), MM_DTYPE),
        grid=(B,),
        in_specs=[pl.BlockSpec((1, Ls, E), lambda b: (b, 0, 0)),
                  pl.BlockSpec((1, 1, Ls), lambda b: (b, 0, 0))]
                 + [_w_spec(w.shape) for w in weights],
        out_specs=pl.BlockSpec((1, Ls, E), lambda b: (b, 0, 0)),
        compiler_params=pltpu.CompilerParams(dimension_semantics=("parallel",)),
    )(x, src_ids, *weights)


def decoder_layer(y, mem, p, num_heads):
    B, Lt, E = y.shape
    Ls = mem.shape[1]
    weights = (p["wqkv"], p["bqkv"], p["wo_s"], p["bo_s"],
               p["ln1_g"], p["ln1_b"],
               p["wq_c"], p["bq_c"], p["wkv_c"], p["bkv_c"], p["wo_c"], p["bo_c"],
               p["ln2_g"], p["ln2_b"],
               p["w1"], p["b1"], p["w2"], p["b2"],
               p["ln3_g"], p["ln3_b"])
    return pl.pallas_call(
        functools.partial(_decoder_layer_kernel, num_heads=num_heads),
        out_shape=jax.ShapeDtypeStruct((B, Lt, E), MM_DTYPE),
        grid=(B,),
        in_specs=[pl.BlockSpec((1, Lt, E), lambda b: (b, 0, 0)),
                  pl.BlockSpec((1, Ls, E), lambda b: (b, 0, 0))]
                 + [_w_spec(w.shape) for w in weights],
        out_specs=pl.BlockSpec((1, Lt, E), lambda b: (b, 0, 0)),
        compiler_params=pltpu.CompilerParams(dimension_semantics=("parallel",)),
    )(y, mem, *weights)


def final_norm_fc_softmax(y, g, b, w_pad, fb_pad):
    B, Lt, E = y.shape
    Vp = w_pad.shape[1]
    return pl.pallas_call(
        _final_kernel,
        out_shape=jax.ShapeDtypeStruct((B, Lt, Vp), jnp.float32),
        grid=(B,),
        in_specs=[pl.BlockSpec((1, Lt, E), lambda b: (b, 0, 0)),
                  _w_spec((1, E)), _w_spec((1, E)),
                  _w_spec((E, Vp)), _w_spec((1, Vp))],
        out_specs=pl.BlockSpec((1, Lt, Vp), lambda b: (b, 0, 0)),   # lane-dense stores
        compiler_params=pltpu.CompilerParams(dimension_semantics=("parallel",)),
    )(y, g, b, w_pad, fb_pad)


# ----------------------- one-time parameter preparation -----------------------

def _prep_enc_layer(p, E, num_heads):
    scale = 1.0 / math.sqrt(E // num_heads)
    out = dict(p)
    out["wqkv"] = p["wqkv"].at[:, :E].multiply(scale).astype(MM_DTYPE)  # fold scale in Q
    out["bqkv"] = p["bqkv"].at[:, :E].multiply(scale)                   # biases stay f32
    for k in ("wo", "w1", "w2"):
        out[k] = p[k].astype(MM_DTYPE)
    return out


def _prep_dec_layer(p, E, num_heads):
    scale = 1.0 / math.sqrt(E // num_heads)
    out = dict(p)
    out["wqkv"] = p["wqkv"].at[:, :E].multiply(scale).astype(MM_DTYPE)  # self-attn Q
    out["bqkv"] = p["bqkv"].at[:, :E].multiply(scale)
    out["wq_c"] = (p["wq_c"] * scale).astype(MM_DTYPE)                  # cross-attn Q
    out["bq_c"] = p["bq_c"] * scale
    for k in ("wo_s", "wkv_c", "wo_c", "w1", "w2"):
        out[k] = p[k].astype(MM_DTYPE)
    return out


# --------------------------------- forward ------------------------------------

def transformer_forward(params, src, trg, num_heads, src_pad_idx):
    B, Ls = src.shape
    _, Lt = trg.shape
    E = params["src_tok_emb"].shape[1]
    V = params["fc_w"].shape[1]
    Vp = ((V + 127) // 128) * 128

    # weight prep: fold softmax scale into Q projections, cast matmul weights to bf16,
    # pad fc_out to a 128-lane multiple (pad logits biased to NEG_INF -> exp == 0).
    enc_prepped = [_prep_enc_layer(p, E, num_heads) for p in params["enc_layers"]]
    dec_prepped = [_prep_dec_layer(p, E, num_heads) for p in params["dec_layers"]]
    fc_w = jnp.pad(params["fc_w"], ((0, 0), (0, Vp - V))).astype(MM_DTYPE)
    fc_b = jnp.pad(params["fc_b"], ((0, 0), (0, Vp - V)), constant_values=NEG_INF)

    # embeddings (gather is plain-JAX glue); dropout = identity (eval mode);
    # inter-layer activations travel as bf16.
    src_pos = jnp.arange(Ls)[None, :]
    trg_pos = jnp.arange(Lt)[None, :]
    embed_src = (jnp.take(params["src_tok_emb"], src, axis=0)
                 + jnp.take(params["src_pos_emb"], src_pos, axis=0)).astype(MM_DTYPE)
    embed_trg = (jnp.take(params["trg_tok_emb"], trg, axis=0)
                 + jnp.take(params["trg_pos_emb"], trg_pos, axis=0)).astype(MM_DTYPE)

    # raw src ids go straight into the encoder kernel; the pad bias is built in-kernel.
    src_ids = src.astype(jnp.int32).reshape(B, 1, Ls)

    # encoder (last layer fuses the encoder-stack final LayerNorm)
    x = embed_src
    n_enc = len(enc_prepped)
    for li, lp in enumerate(enc_prepped):
        fn = ((params["enc_norm_g"], params["enc_norm_b"])
              if li == n_enc - 1 else None)
        x = encoder_layer(x, src_ids, lp, num_heads, src_pad_idx, final_norm=fn)
    memory = x                                  # (B, Ls, E) bf16, already normalized

    # decoder
    y = embed_trg
    for lp in dec_prepped:
        y = decoder_layer(y, memory, lp, num_heads)

    # final LayerNorm + fc_out + softmax(dim=2), fused; strip the vocab padding.
    out = final_norm_fc_softmax(y, params["dec_norm_g"], params["dec_norm_b"],
                                fc_w, fc_b)
    return out[:, :, :V]


# ----------------------------- deterministic init -----------------------------

class KeyGen:
    def __init__(self, key):
        self.key = key

    def __call__(self):
        self.key, sub = jax.random.split(self.key)
        return sub


def _enc_layer_params(kg, E, F):
    n = lambda shape: (0.02 * jax.random.normal(kg(), shape)).astype(jnp.float32)
    z = lambda shape: jnp.zeros(shape, jnp.float32)
    o = lambda shape: jnp.ones(shape, jnp.float32)
    return {"wqkv": n((E, 3 * E)), "bqkv": z((1, 3 * E)),
            "wo": n((E, E)), "bo": z((1, E)),
            "ln1_g": o((1, E)), "ln1_b": z((1, E)),
            "w1": n((E, F)), "b1": z((1, F)),
            "w2": n((F, E)), "b2": z((1, E)),
            "ln2_g": o((1, E)), "ln2_b": z((1, E))}


def _dec_layer_params(kg, E, F):
    n = lambda shape: (0.02 * jax.random.normal(kg(), shape)).astype(jnp.float32)
    z = lambda shape: jnp.zeros(shape, jnp.float32)
    o = lambda shape: jnp.ones(shape, jnp.float32)
    return {"wqkv": n((E, 3 * E)), "bqkv": z((1, 3 * E)),
            "wo_s": n((E, E)), "bo_s": z((1, E)),
            "ln1_g": o((1, E)), "ln1_b": z((1, E)),
            "wq_c": n((E, E)), "bq_c": z((1, E)),
            "wkv_c": n((E, 2 * E)), "bkv_c": z((1, 2 * E)),
            "wo_c": n((E, E)), "bo_c": z((1, E)),
            "ln2_g": o((1, E)), "ln2_b": z((1, E)),
            "w1": n((E, F)), "b1": z((1, F)),
            "w2": n((F, E)), "b2": z((1, E)),
            "ln3_g": o((1, E)), "ln3_b": z((1, E))}


def init_params(key, E, F, n_enc, n_dec, Vs, Vt, max_len):
    kg = KeyGen(key)
    n = lambda shape: (0.02 * jax.random.normal(kg(), shape)).astype(jnp.float32)
    z = lambda shape: jnp.zeros(shape, jnp.float32)
    o = lambda shape: jnp.ones(shape, jnp.float32)
    return {
        "src_tok_emb": n((Vs, E)), "src_pos_emb": n((max_len, E)),
        "trg_tok_emb": n((Vt, E)), "trg_pos_emb": n((max_len, E)),
        "enc_layers": [_enc_layer_params(kg, E, F) for _ in range(n_enc)],
        "enc_norm_g": o((1, E)), "enc_norm_b": z((1, E)),
        "dec_layers": [_dec_layer_params(kg, E, F) for _ in range(n_dec)],
        "dec_norm_g": o((1, E)), "dec_norm_b": z((1, E)),
        "fc_w": n((E, Vt)), "fc_b": z((1, Vt)),
    }


# --------------------------------- main ----------------------------------------

if __name__ == "__main__":
    embedding_size = 32
    dim_feed_forward = 64
    num_heads = 4
    num_encoder_layers = 2
    num_decoder_layers = 2
    src_vocab_size = 50
    trg_vocab_size = 48
    src_pad_idx = 0
    max_sequence_length = 16

    B, Ls, Lt = 2, 8, 6

    key = jax.random.PRNGKey(0)
    k_params, k_src, k_trg = jax.random.split(key, 3)

    params = init_params(k_params, embedding_size, dim_feed_forward,
                         num_encoder_layers, num_decoder_layers,
                         src_vocab_size, trg_vocab_size, max_sequence_length)

    src = jax.random.randint(k_src, (B, Ls), 1, src_vocab_size, dtype=jnp.int32)
    src = src.at[:, -2:].set(src_pad_idx)   # exercise the key-padding mask
    trg = jax.random.randint(k_trg, (B, Lt), 1, trg_vocab_size, dtype=jnp.int32)

    fwd = jax.jit(lambda p, s, t: transformer_forward(p, s, t, num_heads, src_pad_idx))
    out = jax.block_until_ready(fwd(params, src, trg))

    assert out.shape == (B, Lt, trg_vocab_size)
    assert bool(jnp.all(jnp.isfinite(out)))
    # rows of the final softmax must sum to 1 (padded vocab columns contribute 0)
    assert bool(jnp.allclose(jnp.sum(out, axis=2), 1.0, atol=1e-4))
    print("KERNEL_OK")
</pallas_src>

<mosaic_0001>
module attributes {stable_mosaic.version = 11 : i64} {
  func.func @_encoder_layer_kernel(%arg0: i32, %arg1: memref<1x8x32xbf16, #tpu.memory_space<vmem>>, %arg2: memref<1x1x8xi32, #tpu.memory_space<vmem>>, %arg3: memref<32x96xbf16, #tpu.memory_space<vmem>>, %arg4: memref<1x96xf32, #tpu.memory_space<vmem>>, %arg5: memref<32x32xbf16, #tpu.memory_space<vmem>>, %arg6: memref<1x32xf32, #tpu.memory_space<vmem>>, %arg7: memref<1x32xf32, #tpu.memory_space<vmem>>, %arg8: memref<1x32xf32, #tpu.memory_space<vmem>>, %arg9: memref<32x64xbf16, #tpu.memory_space<vmem>>, %arg10: memref<1x64xf32, #tpu.memory_space<vmem>>, %arg11: memref<64x32xbf16, #tpu.memory_space<vmem>>, %arg12: memref<1x32xf32, #tpu.memory_space<vmem>>, %arg13: memref<1x32xf32, #tpu.memory_space<vmem>>, %arg14: memref<1x32xf32, #tpu.memory_space<vmem>>, %arg15: memref<1x8x32xbf16, #tpu.memory_space<vmem>>) attributes {dimension_semantics = [#tpu.dimension_semantics<parallel>], iteration_bounds = array<i64: 2>, scalar_prefetch = 0 : i64, scratch_operands = 0 : i64, tpu.core_type = #tpu.core_type<tc>, window_params = [{transform_indices = @transform_0, window_bounds = array<i64: 1, 8, 32>}, {transform_indices = @transform_1, window_bounds = array<i64: 1, 1, 8>}, {pipeline_mode = #tpu.pipeline_mode<synchronous>, transform_indices = @transform_2, window_bounds = array<i64: 32, 96>}, {pipeline_mode = #tpu.pipeline_mode<synchronous>, transform_indices = @transform_3, window_bounds = array<i64: 1, 96>}, {pipeline_mode = #tpu.pipeline_mode<synchronous>, transform_indices = @transform_4, window_bounds = array<i64: 32, 32>}, {pipeline_mode = #tpu.pipeline_mode<synchronous>, transform_indices = @transform_5, window_bounds = array<i64: 1, 32>}, {pipeline_mode = #tpu.pipeline_mode<synchronous>, transform_indices = @transform_6, window_bounds = array<i64: 1, 32>}, {pipeline_mode = #tpu.pipeline_mode<synchronous>, transform_indices = @transform_7, window_bounds = array<i64: 1, 32>}, {pipeline_mode = #tpu.pipeline_mode<synchronous>, transform_indices = @transform_8, window_bounds = array<i64: 32, 64>}, {pipeline_mode = #tpu.pipeline_mode<synchronous>, transform_indices = @transform_9, window_bounds = array<i64: 1, 64>}, {pipeline_mode = #tpu.pipeline_mode<synchronous>, transform_indices = @transform_10, window_bounds = array<i64: 64, 32>}, {pipeline_mode = #tpu.pipeline_mode<synchronous>, transform_indices = @transform_11, window_bounds = array<i64: 1, 32>}, {pipeline_mode = #tpu.pipeline_mode<synchronous>, transform_indices = @transform_12, window_bounds = array<i64: 1, 32>}, {pipeline_mode = #tpu.pipeline_mode<synchronous>, transform_indices = @transform_13, window_bounds = array<i64: 1, 32>}, {transform_indices = @transform_14, window_bounds = array<i64: 1, 8, 32>}]} {
    %c0 = arith.constant 0 : index
    %c0_0 = arith.constant 0 : index
    %c0_1 = arith.constant 0 : index
    %0 = vector.load %arg1[%c0, %c0_0, %c0_1] : memref<1x8x32xbf16, #tpu.memory_space<vmem>>, vector<1x8x32xbf16>
    %1 = vector.shape_cast %0 : vector<1x8x32xbf16> to vector<8x32xbf16>
    %2 = arith.extf %1 : vector<8x32xbf16> to vector<8x32xf32>
    %c0_2 = arith.constant 0 : index
    %c0_3 = arith.constant 0 : index
    %c0_4 = arith.constant 0 : index
    %3 = vector.load %arg2[%c0_2, %c0_3, %c0_4] : memref<1x1x8xi32, #tpu.memory_space<vmem>>, vector<1x1x8xi32>
    %4 = vector.shape_cast %3 : vector<1x1x8xi32> to vector<1x8xi32>
    %c0_i32 = arith.constant 0 : i32
    %5 = vector.broadcast %c0_i32 : i32 to vector<1x8xi32>
    %6 = arith.cmpi eq, %4, %5 : vector<1x8xi32>
    %cst = arith.constant -1.000000e+30 : f32
    %cst_5 = arith.constant 0.000000e+00 : f32
    %7 = vector.broadcast %cst : f32 to vector<1x8xf32>
    %8 = vector.broadcast %cst_5 : f32 to vector<1x8xf32>
    %9 = arith.select %6, %7, %8 : vector<1x8xi1>, vector<1x8xf32>
    %c0_6 = arith.constant 0 : index
    %c0_7 = arith.constant 0 : index
    %10 = vector.load %arg3[%c0_6, %c0_7] : memref<32x96xbf16, #tpu.memory_space<vmem>>, vector<32x96xbf16>
    %11 = arith.truncf %2 : vector<8x32xf32> to vector<8x32xbf16>
    %cst_8 = arith.constant dense<0.000000e+00> : vector<8x96xf32>
    %12 = tpu.matmul %11, %10, %cst_8 {dimension_numbers = #tpu.dot_dimension_numbers<[1], [0], [0], [1], [0, 0, 1, 1], [], []>} : vector<8x32xbf16>, vector<32x96xbf16>, vector<8x96xf32> -> vector<8x96xf32>
    %c0_9 = arith.constant 0 : index
    %c0_10 = arith.constant 0 : index
    %13 = vector.load %arg4[%c0_9, %c0_10] : memref<1x96xf32, #tpu.memory_space<vmem>>, vector<1x96xf32>
    %14 = vector.broadcast %13 : vector<1x96xf32> to vector<8x96xf32>
    %15 = arith.addf %12, %14 : vector<8x96xf32>
    %16 = vector.extract_strided_slice %15 {offsets = [0, 0], sizes = [8, 32], strides = [1, 1]} : vector<8x96xf32> to vector<8x32xf32>
    %17 = vector.extract_strided_slice %15 {offsets = [0, 32], sizes = [8, 32], strides = [1, 1]} : vector<8x96xf32> to vector<8x32xf32>
    %18 = vector.extract_strided_slice %15 {offsets = [0, 64], sizes = [8, 32], strides = [1, 1]} : vector<8x96xf32> to vector<8x32xf32>
    %c0_11 = arith.constant 0 : index
    %c0_12 = arith.constant 0 : index
    %19 = vector.load %arg5[%c0_11, %c0_12] : memref<32x32xbf16, #tpu.memory_space<vmem>>, vector<32x32xbf16>
    %c0_13 = arith.constant 0 : index
    %c0_14 = arith.constant 0 : index
    %20 = vector.load %arg6[%c0_13, %c0_14] : memref<1x32xf32, #tpu.memory_space<vmem>>, vector<1x32xf32>
    %21 = vector.extract_strided_slice %16 {offsets = [0, 0], sizes = [8, 8], strides = [1, 1]} : vector<8x32xf32> to vector<8x8xf32>
    %22 = arith.truncf %21 : vector<8x8xf32> to vector<8x8xbf16>
    %23 = vector.extract_strided_slice %17 {offsets = [0, 0], sizes = [8, 8], strides = [1, 1]} : vector<8x32xf32> to vector<8x8xf32>
    %24 = arith.truncf %23 : vector<8x8xf32> to vector<8x8xbf16>
    %cst_15 = arith.constant dense<0.000000e+00> : vector<8x8xf32>
    %25 = tpu.matmul %22, %24, %cst_15 {dimension_numbers = #tpu.dot_dimension_numbers<[1], [1], [0], [0], [0, 0, 1, 0], [], []>} : vector<8x8xbf16>, vector<8x8xbf16>, vector<8x8xf32> -> vector<8x8xf32>
    %26 = vector.broadcast %9 : vector<1x8xf32> to vector<8x8xf32>
    %27 = arith.addf %25, %26 : vector<8x8xf32>
    %cst_16 = arith.constant dense<0xFF800000> : vector<8xf32>
    %28 = vector.multi_reduction <maximumf>, %27, %cst_16 [1] : vector<8x8xf32> to vector<8xf32>
    %29 = vector.shape_cast %28 : vector<8xf32> to vector<8x1xf32>
    %30 = vector.broadcast %29 : vector<8x1xf32> to vector<8x8xf32>
    %31 = arith.subf %27, %30 : vector<8x8xf32>
    %32 = math.exp %31 : vector<8x8xf32>
    %cst_17 = arith.constant dense<0.000000e+00> : vector<8xf32>
    %33 = vector.multi_reduction <add>, %32, %cst_17 [1] : vector<8x8xf32> to vector<8xf32>
    %34 = vector.shape_cast %33 : vector<8xf32> to vector<8x1xf32>
    %35 = tpu.reciprocal %34 {approx = true} : vector<8x1xf32> -> vector<8x1xf32>
    %36 = vector.extract_strided_slice %18 {offsets = [0, 0], sizes = [8, 8], strides = [1, 1]} : vector<8x32xf32> to vector<8x8xf32>
    %37 = arith.truncf %32 : vector<8x8xf32> to vector<8x8xbf16>
    %38 = arith.truncf %36 : vector<8x8xf32> to vector<8x8xbf16>
    %cst_18 = arith.constant dense<0.000000e+00> : vector<8x8xf32>
    %39 = tpu.matmul %37, %38, %cst_18 {dimension_numbers = #tpu.dot_dimension_numbers<[1], [0], [0], [1], [0, 0, 1, 1], [], []>} : vector<8x8xbf16>, vector<8x8xbf16>, vector<8x8xf32> -> vector<8x8xf32>
    %40 = vector.broadcast %35 : vector<8x1xf32> to vector<8x8xf32>
    %41 = arith.mulf %39, %40 : vector<8x8xf32>
    %42 = vector.extract_strided_slice %16 {offsets = [0, 8], sizes = [8, 8], strides = [1, 1]} : vector<8x32xf32> to vector<8x8xf32>
    %43 = arith.truncf %42 : vector<8x8xf32> to vector<8x8xbf16>
    %44 = vector.extract_strided_slice %17 {offsets = [0, 8], sizes = [8, 8], strides = [1, 1]} : vector<8x32xf32> to vector<8x8xf32>
    %45 = arith.truncf %44 : vector<8x8xf32> to vector<8x8xbf16>
    %cst_19 = arith.constant dense<0.000000e+00> : vector<8x8xf32>
    %46 = tpu.matmul %43, %45, %cst_19 {dimension_numbers = #tpu.dot_dimension_numbers<[1], [1], [0], [0], [0, 0, 1, 0], [], []>} : vector<8x8xbf16>, vector<8x8xbf16>, vector<8x8xf32> -> vector<8x8xf32>
    %47 = vector.broadcast %9 : vector<1x8xf32> to vector<8x8xf32>
    %48 = arith.addf %46, %47 : vector<8x8xf32>
    %cst_20 = arith.constant dense<0xFF800000> : vector<8xf32>
    %49 = vector.multi_reduction <maximumf>, %48, %cst_20 [1] : vector<8x8xf32> to vector<8xf32>
    %50 = vector.shape_cast %49 : vector<8xf32> to vector<8x1xf32>
    %51 = vector.broadcast %50 : vector<8x1xf32> to vector<8x8xf32>
    %52 = arith.subf %48, %51 : vector<8x8xf32>
    %53 = math.exp %52 : vector<8x8xf32>
    %cst_21 = arith.constant dense<0.000000e+00> : vector<8xf32>
    %54 = vector.multi_reduction <add>, %53, %cst_21 [1] : vector<8x8xf32> to vector<8xf32>
    %55 = vector.shape_cast %54 : vector<8xf32> to vector<8x1xf32>
    %56 = tpu.reciprocal %55 {approx = true} : vector<8x1xf32> -> vector<8x1xf32>
    %57 = vector.extract_strided_slice %18 {offsets = [0, 8], sizes = [8, 8], strides = [1, 1]} : vector<8x32xf32> to vector<8x8xf32>
    %58 = arith.truncf %53 : vector<8x8xf32> to vector<8x8xbf16>
    %59 = arith.truncf %57 : vector<8x8xf32> to vector<8x8xbf16>
    %cst_22 = arith.constant dense<0.000000e+00> : vector<8x8xf32>
    %60 = tpu.matmul %58, %59, %cst_22 {dimension_numbers = #tpu.dot_dimension_numbers<[1], [0], [0], [1], [0, 0, 1, 1], [], []>} : vector<8x8xbf16>, vector<8x8xbf16>, vector<8x8xf32> -> vector<8x8xf32>
    %61 = vector.broadcast %56 : vector<8x1xf32> to vector<8x8xf32>
    %62 = arith.mulf %60, %61 : vector<8x8xf32>
    %63 = vector.extract_strided_slice %16 {offsets = [0, 16], sizes = [8, 8], strides = [1, 1]} : vector<8x32xf32> to vector<8x8xf32>
    %64 = arith.truncf %63 : vector<8x8xf32> to vector<8x8xbf16>
    %65 = vector.extract_strided_slice %17 {offsets = [0, 16], sizes = [8, 8], strides = [1, 1]} : vector<8x32xf32> to vector<8x8xf32>
    %66 = arith.truncf %65 : vector<8x8xf32> to vector<8x8xbf16>
    %cst_23 = arith.constant dense<0.000000e+00> : vector<8x8xf32>
    %67 = tpu.matmul %64, %66, %cst_23 {dimension_numbers = #tpu.dot_dimension_numbers<[1], [1], [0], [0], [0, 0, 1, 0], [], []>} : vector<8x8xbf16>, vector<8x8xbf16>, vector<8x8xf32> -> vector<8x8xf32>
    %68 = vector.broadcast %9 : vector<1x8xf32> to vector<8x8xf32>
    %69 = arith.addf %67, %68 : vector<8x8xf32>
    %cst_24 = arith.constant dense<0xFF800000> : vector<8xf32>
    %70 = vector.multi_reduction <maximumf>, %69, %cst_24 [1] : vector<8x8xf32> to vector<8xf32>
    %71 = vector.shape_cast %70 : vector<8xf32> to vector<8x1xf32>
    %72 = vector.broadcast %71 : vector<8x1xf32> to vector<8x8xf32>
    %73 = arith.subf %69, %72 : vector<8x8xf32>
    %74 = math.exp %73 : vector<8x8xf32>
    %cst_25 = arith.constant dense<0.000000e+00> : vector<8xf32>
    %75 = vector.multi_reduction <add>, %74, %cst_25 [1] : vector<8x8xf32> to vector<8xf32>
    %76 = vector.shape_cast %75 : vector<8xf32> to vector<8x1xf32>
    %77 = tpu.reciprocal %76 {approx = true} : vector<8x1xf32> -> vector<8x1xf32>
    %78 = vector.extract_strided_slice %18 {offsets = [0, 16], sizes = [8, 8], strides = [1, 1]} : vector<8x32xf32> to vector<8x8xf32>
    %79 = arith.truncf %74 : vector<8x8xf32> to vector<8x8xbf16>
    %80 = arith.truncf %78 : vector<8x8xf32> to vector<8x8xbf16>
    %cst_26 = arith.constant dense<0.000000e+00> : vector<8x8xf32>
    %81 = tpu.matmul %79, %80, %cst_26 {dimension_numbers = #tpu.dot_dimension_numbers<[1], [0], [0], [1], [0, 0, 1, 1], [], []>} : vector<8x8xbf16>, vector<8x8xbf16>, vector<8x8xf32> -> vector<8x8xf32>
    %82 = vector.broadcast %77 : vector<8x1xf32> to vector<8x8xf32>
    %83 = arith.mulf %81, %82 : vector<8x8xf32>
    %84 = vector.extract_strided_slice %16 {offsets = [0, 24], sizes = [8, 8], strides = [1, 1]} : vector<8x32xf32> to vector<8x8xf32>
    %85 = arith.truncf %84 : vector<8x8xf32> to vector<8x8xbf16>
    %86 = vector.extract_strided_slice %17 {offsets = [0, 24], sizes = [8, 8], strides = [1, 1]} : vector<8x32xf32> to vector<8x8xf32>
    %87 = arith.truncf %86 : vector<8x8xf32> to vector<8x8xbf16>
    %cst_27 = arith.constant dense<0.000000e+00> : vector<8x8xf32>
    %88 = tpu.matmul %85, %87, %cst_27 {dimension_numbers = #tpu.dot_dimension_numbers<[1], [1], [0], [0], [0, 0, 1, 0], [], []>} : vector<8x8xbf16>, vector<8x8xbf16>, vector<8x8xf32> -> vector<8x8xf32>
    %89 = vector.broadcast %9 : vector<1x8xf32> to vector<8x8xf32>
    %90 = arith.addf %88, %89 : vector<8x8xf32>
    %cst_28 = arith.constant dense<0xFF800000> : vector<8xf32>
    %91 = vector.multi_reduction <maximumf>, %90, %cst_28 [1] : vector<8x8xf32> to vector<8xf32>
    %92 = vector.shape_cast %91 : vector<8xf32> to vector<8x1xf32>
    %93 = vector.broadcast %92 : vector<8x1xf32> to vector<8x8xf32>
    %94 = arith.subf %90, %93 : vector<8x8xf32>
    %95 = math.exp %94 : vector<8x8xf32>
    %cst_29 = arith.constant dense<0.000000e+00> : vector<8xf32>
    %96 = vector.multi_reduction <add>, %95, %cst_29 [1] : vector<8x8xf32> to vector<8xf32>
    %97 = vector.shape_cast %96 : vector<8xf32> to vector<8x1xf32>
    %98 = tpu.reciprocal %97 {approx = true} : vector<8x1xf32> -> vector<8x1xf32>
    %99 = vector.extract_strided_slice %18 {offsets = [0, 24], sizes = [8, 8], strides = [1, 1]} : vector<8x32xf32> to vector<8x8xf32>
    %100 = arith.truncf %95 : vector<8x8xf32> to vector<8x8xbf16>
    %101 = arith.truncf %99 : vector<8x8xf32> to vector<8x8xbf16>
    %cst_30 = arith.constant dense<0.000000e+00> : vector<8x8xf32>
    %102 = tpu.matmul %100, %101, %cst_30 {dimension_numbers = #tpu.dot_dimension_numbers<[1], [0], [0], [1], [0, 0, 1, 1], [], []>} : vector<8x8xbf16>, vector<8x8xbf16>, vector<8x8xf32> -> vector<8x8xf32>
    %103 = vector.broadcast %98 : vector<8x1xf32> to vector<8x8xf32>
    %104 = arith.mulf %102, %103 : vector<8x8xf32>
    %105 = tpu.concatenate %41, %62, %83, %104 in 1 : vector<8x8xf32>, vector<8x8xf32>, vector<8x8xf32>, vector<8x8xf32> -> vector<8x32xf32>
    %106 = arith.truncf %105 : vector<8x32xf32> to vector<8x32xbf16>
    %cst_31 = arith.constant dense<0.000000e+00> : vector<8x32xf32>
    %107 = tpu.matmul %106, %19, %cst_31 {dimension_numbers = #tpu.dot_dimension_numbers<[1], [0], [0], [1], [0, 0, 1, 1], [], []>} : vector<8x32xbf16>, vector<32x32xbf16>, vector<8x32xf32> -> vector<8x32xf32>
    %108 = vector.broadcast %20 : vector<1x32xf32> to vector<8x32xf32>
    %109 = arith.addf %107, %108 : vector<8x32xf32>
    %110 = arith.addf %2, %109 : vector<8x32xf32>
    %c0_32 = arith.constant 0 : index
    %c0_33 = arith.constant 0 : index
    %111 = vector.load %arg7[%c0_32, %c0_33] : memref<1x32xf32, #tpu.memory_space<vmem>>, vector<1x32xf32>
    %c0_34 = arith.constant 0 : index
    %c0_35 = arith.constant 0 : index
    %112 = vector.load %arg8[%c0_34, %c0_35] : memref<1x32xf32, #tpu.memory_space<vmem>>, vector<1x32xf32>
    %cst_36 = arith.constant dense<0.000000e+00> : vector<8xf32>
    %113 = vector.multi_reduction <add>, %110, %cst_36 [1] : vector<8x32xf32> to vector<8xf32>
    %114 = vector.shape_cast %113 : vector<8xf32> to vector<8x1xf32>
    %cst_37 = arith.constant 3.200000e+01 : f32
    %115 = vector.broadcast %cst_37 : f32 to vector<8x1xf32>
    %116 = arith.divf %114, %115 : vector<8x1xf32>
    %117 = vector.broadcast %116 : vector<8x1xf32> to vector<8x32xf32>
    %118 = arith.subf %110, %117 : vector<8x32xf32>
    %119 = arith.mulf %118, %118 : vector<8x32xf32>
    %cst_38 = arith.constant dense<0.000000e+00> : vector<8xf32>
    %120 = vector.multi_reduction <add>, %119, %cst_38 [1] : vector<8x32xf32> to vector<8xf32>
    %121 = vector.shape_cast %120 : vector<8xf32> to vector<8x1xf32>
    %cst_39 = arith.constant 3.200000e+01 : f32
    %122 = vector.broadcast %cst_39 : f32 to vector<8x1xf32>
    %123 = arith.divf %121, %122 : vector<8x1xf32>
    %cst_40 = arith.constant 9.99999974E-6 : f32
    %124 = vector.broadcast %cst_40 : f32 to vector<8x1xf32>
    %125 = arith.addf %123, %124 : vector<8x1xf32>
    %126 = math.rsqrt %125 : vector<8x1xf32>
    %127 = vector.broadcast %126 : vector<8x1xf32> to vector<8x32xf32>
    %128 = arith.mulf %118, %127 : vector<8x32xf32>
    %129 = vector.broadcast %111 : vector<1x32xf32> to vector<8x32xf32>
    %130 = arith.mulf %128, %129 : vector<8x32xf32>
    %131 = vector.broadcast %112 : vector<1x32xf32> to vector<8x32xf32>
    %132 = arith.addf %130, %131 : vector<8x32xf32>
    %c0_41 = arith.constant 0 : index
    %c0_42 = arith.constant 0 : index
    %133 = vector.load %arg9[%c0_41, %c0_42] : memref<32x64xbf16, #tpu.memory_space<vmem>>, vector<32x64xbf16>
    %134 = arith.truncf %132 : vector<8x32xf32> to vector<8x32xbf16>
    %cst_43 = arith.constant dense<0.000000e+00> : vector<8x64xf32>
    %135 = tpu.matmul %134, %133, %cst_43 {dimension_numbers = #tpu.dot_dimension_numbers<[1], [0], [0], [1], [0, 0, 1, 1], [], []>} : vector<8x32xbf16>, vector<32x64xbf16>, vector<8x64xf32> -> vector<8x64xf32>
    %c0_44 = arith.constant 0 : index
    %c0_45 = arith.constant 0 : index
    %136 = vector.load %arg10[%c0_44, %c0_45] : memref<1x64xf32, #tpu.memory_space<vmem>>, vector<1x64xf32>
    %137 = vector.broadcast %136 : vector<1x64xf32> to vector<8x64xf32>
    %138 = arith.addf %135, %137 : vector<8x64xf32>
    %cst_46 = arith.constant 0.000000e+00 : f32
    %139 = vector.broadcast %cst_46 : f32 to vector<8x64xf32>
    %140 = arith.maximumf %138, %139 : vector<8x64xf32>
    %c0_47 = arith.constant 0 : index
    %c0_48 = arith.constant 0 : index
    %141 = vector.load %arg11[%c0_47, %c0_48] : memref<64x32xbf16, #tpu.memory_space<vmem>>, vector<64x32xbf16>
    %142 = arith.truncf %140 : vector<8x64xf32> to vector<8x64xbf16>
    %cst_49 = arith.constant dense<0.000000e+00> : vector<8x32xf32>
    %143 = tpu.matmul %142, %141, %cst_49 {dimension_numbers = #tpu.dot_dimension_numbers<[1], [0], [0], [1], [0, 0, 1, 1], [], []>} : vector<8x64xbf16>, vector<64x32xbf16>, vector<8x32xf32> -> vector<8x32xf32>
    %c0_50 = arith.constant 0 : index
    %c0_51 = arith.constant 0 : index
    %144 = vector.load %arg12[%c0_50, %c0_51] : memref<1x32xf32, #tpu.memory_space<vmem>>, vector<1x32xf32>
    %145 = vector.broadcast %144 : vector<1x32xf32> to vector<8x32xf32>
    %146 = arith.addf %143, %145 : vector<8x32xf32>
    %147 = arith.addf %132, %146 : vector<8x32xf32>
    %c0_52 = arith.constant 0 : index
    %c0_53 = arith.constant 0 : index
    %148 = vector.load %arg13[%c0_52, %c0_53] : memref<1x32xf32, #tpu.memory_space<vmem>>, vector<1x32xf32>
    %c0_54 = arith.constant 0 : index
    %c0_55 = arith.constant 0 : index
    %149 = vector.load %arg14[%c0_54, %c0_55] : memref<1x32xf32, #tpu.memory_space<vmem>>, vector<1x32xf32>
    %cst_56 = arith.constant dense<0.000000e+00> : vector<8xf32>
    %150 = vector.multi_reduction <add>, %147, %cst_56 [1] : vector<8x32xf32> to vector<8xf32>
    %151 = vector.shape_cast %150 : vector<8xf32> to vector<8x1xf32>
    %cst_57 = arith.constant 3.200000e+01 : f32
    %152 = vector.broadcast %cst_57 : f32 to vector<8x1xf32>
    %153 = arith.divf %151, %152 : vector<8x1xf32>
    %154 = vector.broadcast %153 : vector<8x1xf32> to vector<8x32xf32>
    %155 = arith.subf %147, %154 : vector<8x32xf32>
    %156 = arith.mulf %155, %155 : vector<8x32xf32>
    %cst_58 = arith.constant dense<0.000000e+00> : vector<8xf32>
    %157 = vector.multi_reduction <add>, %156, %cst_58 [1] : vector<8x32xf32> to vector<8xf32>
    %158 = vector.shape_cast %157 : vector<8xf32> to vector<8x1xf32>
    %cst_59 = arith.constant 3.200000e+01 : f32
    %159 = vector.broadcast %cst_59 : f32 to vector<8x1xf32>
    %160 = arith.divf %158, %159 : vector<8x1xf32>
    %cst_60 = arith.constant 9.99999974E-6 : f32
    %161 = vector.broadcast %cst_60 : f32 to vector<8x1xf32>
    %162 = arith.addf %160, %161 : vector<8x1xf32>
    %163 = math.rsqrt %162 : vector<8x1xf32>
    %164 = vector.broadcast %163 : vector<8x1xf32> to vector<8x32xf32>
    %165 = arith.mulf %155, %164 : vector<8x32xf32>
    %166 = vector.broadcast %148 : vector<1x32xf32> to vector<8x32xf32>
    %167 = arith.mulf %165, %166 : vector<8x32xf32>
    %168 = vector.broadcast %149 : vector<1x32xf32> to vector<8x32xf32>
    %169 = arith.addf %167, %168 : vector<8x32xf32>
    %170 = arith.truncf %169 : vector<8x32xf32> to vector<8x32xbf16>
    %c0_61 = arith.constant 0 : index
    %c0_62 = arith.constant 0 : index
    %c0_63 = arith.constant 0 : index
    %171 = vector.load %arg15[%c0_61, %c0_62, %c0_63] : memref<1x8x32xbf16, #tpu.memory_space<vmem>>, vector<1x8x32xbf16>
    %172 = vector.shape_cast %171 : vector<1x8x32xbf16> to vector<8x32xbf16>
    %173 = vector.shape_cast %170 : vector<8x32xbf16> to vector<1x8x32xbf16>
    tpu.vector_store %arg15[%c0_61, %c0_62, %c0_63], %173 {strides = array<i32>} : memref<1x8x32xbf16, #tpu.memory_space<vmem>>, vector<1x8x32xbf16>,
    return
  }
  func.func @transform_0(%arg0: i32) -> (i32, i32, i32) {
    %c0_i32 = arith.constant 0 : i32
    %c0_i32_0 = arith.constant 0 : i32
    %c0_i32_1 = arith.constant 0 : i32
    return %arg0, %c0_i32, %c0_i32_0 : i32, i32, i32
  }
  func.func @transform_1(%arg0: i32) -> (i32, i32, i32) {
    %c0_i32 = arith.constant 0 : i32
    %c0_i32_0 = arith.constant 0 : i32
    %c0_i32_1 = arith.constant 0 : i32
    return %arg0, %c0_i32, %c0_i32_0 : i32, i32, i32
  }
  func.func @transform_2(%arg0: i32) -> (i32, i32) {
    %c0_i32 = arith.constant 0 : i32
    %c0_i32_0 = arith.constant 0 : i32
    %c0_i32_1 = arith.constant 0 : i32
    return %c0_i32, %c0_i32_0 : i32, i32
  }
  func.func @transform_3(%arg0: i32) -> (i32, i32) {
    %c0_i32 = arith.constant 0 : i32
    %c0_i32_0 = arith.constant 0 : i32
    %c0_i32_1 = arith.constant 0 : i32
    return %c0_i32, %c0_i32_0 : i32, i32
  }
  func.func @transform_4(%arg0: i32) -> (i32, i32) {
    %c0_i32 = arith.constant 0 : i32
    %c0_i32_0 = arith.constant 0 : i32
    %c0_i32_1 = arith.constant 0 : i32
    return %c0_i32, %c0_i32_0 : i32, i32
  }
  func.func @transform_5(%arg0: i32) -> (i32, i32) {
    %c0_i32 = arith.constant 0 : i32
    %c0_i32_0 = arith.constant 0 : i32
    %c0_i32_1 = arith.constant 0 : i32
    return %c0_i32, %c0_i32_0 : i32, i32
  }
  func.func @transform_6(%arg0: i32) -> (i32, i32) {
    %c0_i32 = arith.constant 0 : i32
    %c0_i32_0 = arith.constant 0 : i32
    %c0_i32_1 = arith.constant 0 : i32
    return %c0_i32, %c0_i32_0 : i32, i32
  }
  func.func @transform_7(%arg0: i32) -> (i32, i32) {
    %c0_i32 = arith.constant 0 : i32
    %c0_i32_0 = arith.constant 0 : i32
    %c0_i32_1 = arith.constant 0 : i32
    return %c0_i32, %c0_i32_0 : i32, i32
  }
  func.func @transform_8(%arg0: i32) -> (i32, i32) {
    %c0_i32 = arith.constant 0 : i32
    %c0_i32_0 = arith.constant 0 : i32
    %c0_i32_1 = arith.constant 0 : i32
    return %c0_i32, %c0_i32_0 : i32, i32
  }
  func.func @transform_9(%arg0: i32) -> (i32, i32) {
    %c0_i32 = arith.constant 0 : i32
    %c0_i32_0 = arith.constant 0 : i32
    %c0_i32_1 = arith.constant 0 : i32
    return %c0_i32, %c0_i32_0 : i32, i32
  }
  func.func @transform_10(%arg0: i32) -> (i32, i32) {
    %c0_i32 = arith.constant 0 : i32
    %c0_i32_0 = arith.constant 0 : i32
    %c0_i32_1 = arith.constant 0 : i32
    return %c0_i32, %c0_i32_0 : i32, i32
  }
  func.func @transform_11(%arg0: i32) -> (i32, i32) {
    %c0_i32 = arith.constant 0 : i32
    %c0_i32_0 = arith.constant 0 : i32
    %c0_i32_1 = arith.constant 0 : i32
    return %c0_i32, %c0_i32_0 : i32, i32
  }
  func.func @transform_12(%arg0: i32) -> (i32, i32) {
    %c0_i32 = arith.constant 0 : i32
    %c0_i32_0 = arith.constant 0 : i32
    %c0_i32_1 = arith.constant 0 : i32
    return %c0_i32, %c0_i32_0 : i32, i32
  }
  func.func @transform_13(%arg0: i32) -> (i32, i32) {
    %c0_i32 = arith.constant 0 : i32
    %c0_i32_0 = arith.constant 0 : i32
    %c0_i32_1 = arith.constant 0 : i32
    return %c0_i32, %c0_i32_0 : i32, i32
  }
  func.func @transform_14(%arg0: i32) -> (i32, i32, i32) {
    %c0_i32 = arith.constant 0 : i32
    %c0_i32_0 = arith.constant 0 : i32
    %c0_i32_1 = arith.constant 0 : i32
    return %arg0, %c0_i32, %c0_i32_0 : i32, i32, i32
  }
}

module attributes {stable_mosaic.version = 11 : i64} {
  func.func @_encoder_layer_kernel(%arg0: i32, %arg1: memref<1x8x32xbf16, #tpu.memory_space<vmem>>, %arg2: memref<1x1x8xi32, #tpu.memory_space<vmem>>, %arg3: memref<32x96xbf16, #tpu.memory_space<vmem>>, %arg4: memref<1x96xf32, #tpu.memory_space<vmem>>, %arg5: memref<32x32xbf16, #tpu.memory_space<vmem>>, %arg6: memref<1x32xf32, #tpu.memory_space<vmem>>, %arg7: memref<1x32xf32, #tpu.memory_space<vmem>>, %arg8: memref<1x32xf32, #tpu.memory_space<vmem>>, %arg9: memref<32x64xbf16, #tpu.memory_space<vmem>>, %arg10: memref<1x64xf32, #tpu.memory_space<vmem>>, %arg11: memref<64x32xbf16, #tpu.memory_space<vmem>>, %arg12: memref<1x32xf32, #tpu.memory_space<vmem>>, %arg13: memref<1x32xf32, #tpu.memory_space<vmem>>, %arg14: memref<1x32xf32, #tpu.memory_space<vmem>>, %arg15: memref<1x32xf32, #tpu.memory_space<vmem>>, %arg16: memref<1x32xf32, #tpu.memory_space<vmem>>, %arg17: memref<1x8x32xbf16, #tpu.memory_space<vmem>>) attributes {dimension_semantics = [#tpu.dimension_semantics<parallel>], iteration_bounds = array<i64: 2>, scalar_prefetch = 0 : i64, scratch_operands = 0 : i64, tpu.core_type = #tpu.core_type<tc>, window_params = [{transform_indices = @transform_0, window_bounds = array<i64: 1, 8, 32>}, {transform_indices = @transform_1, window_bounds = array<i64: 1, 1, 8>}, {pipeline_mode = #tpu.pipeline_mode<synchronous>, transform_indices = @transform_2, window_bounds = array<i64: 32, 96>}, {pipeline_mode = #tpu.pipeline_mode<synchronous>, transform_indices = @transform_3, window_bounds = array<i64: 1, 96>}, {pipeline_mode = #tpu.pipeline_mode<synchronous>, transform_indices = @transform_4, window_bounds = array<i64: 32, 32>}, {pipeline_mode = #tpu.pipeline_mode<synchronous>, transform_indices = @transform_5, window_bounds = array<i64: 1, 32>}, {pipeline_mode = #tpu.pipeline_mode<synchronous>, transform_indices = @transform_6, window_bounds = array<i64: 1, 32>}, {pipeline_mode = #tpu.pipeline_mode<synchronous>, transform_indices = @transform_7, window_bounds = array<i64: 1, 32>}, {pipeline_mode = #tpu.pipeline_mode<synchronous>, transform_indices = @transform_8, window_bounds = array<i64: 32, 64>}, {pipeline_mode = #tpu.pipeline_mode<synchronous>, transform_indices = @transform_9, window_bounds = array<i64: 1, 64>}, {pipeline_mode = #tpu.pipeline_mode<synchronous>, transform_indices = @transform_10, window_bounds = array<i64: 64, 32>}, {pipeline_mode = #tpu.pipeline_mode<synchronous>, transform_indices = @transform_11, window_bounds = array<i64: 1, 32>}, {pipeline_mode = #tpu.pipeline_mode<synchronous>, transform_indices = @transform_12, window_bounds = array<i64: 1, 32>}, {pipeline_mode = #tpu.pipeline_mode<synchronous>, transform_indices = @transform_13, window_bounds = array<i64: 1, 32>}, {pipeline_mode = #tpu.pipeline_mode<synchronous>, transform_indices = @transform_14, window_bounds = array<i64: 1, 32>}, {pipeline_mode = #tpu.pipeline_mode<synchronous>, transform_indices = @transform_15, window_bounds = array<i64: 1, 32>}, {transform_indices = @transform_16, window_bounds = array<i64: 1, 8, 32>}]} {
    %c0 = arith.constant 0 : index
    %c0_0 = arith.constant 0 : index
    %c0_1 = arith.constant 0 : index
    %0 = vector.load %arg1[%c0, %c0_0, %c0_1] : memref<1x8x32xbf16, #tpu.memory_space<vmem>>, vector<1x8x32xbf16>
    %1 = vector.shape_cast %0 : vector<1x8x32xbf16> to vector<8x32xbf16>
    %2 = arith.extf %1 : vector<8x32xbf16> to vector<8x32xf32>
    %c0_2 = arith.constant 0 : index
    %c0_3 = arith.constant 0 : index
    %c0_4 = arith.constant 0 : index
    %3 = vector.load %arg2[%c0_2, %c0_3, %c0_4] : memref<1x1x8xi32, #tpu.memory_space<vmem>>, vector<1x1x8xi32>
    %4 = vector.shape_cast %3 : vector<1x1x8xi32> to vector<1x8xi32>
    %c0_i32 = arith.constant 0 : i32
    %5 = vector.broadcast %c0_i32 : i32 to vector<1x8xi32>
    %6 = arith.cmpi eq, %4, %5 : vector<1x8xi32>
    %cst = arith.constant -1.000000e+30 : f32
    %cst_5 = arith.constant 0.000000e+00 : f32
    %7 = vector.broadcast %cst : f32 to vector<1x8xf32>
    %8 = vector.broadcast %cst_5 : f32 to vector<1x8xf32>
    %9 = arith.select %6, %7, %8 : vector<1x8xi1>, vector<1x8xf32>
    %c0_6 = arith.constant 0 : index
    %c0_7 = arith.constant 0 : index
    %10 = vector.load %arg3[%c0_6, %c0_7] : memref<32x96xbf16, #tpu.memory_space<vmem>>, vector<32x96xbf16>
    %11 = arith.truncf %2 : vector<8x32xf32> to vector<8x32xbf16>
    %cst_8 = arith.constant dense<0.000000e+00> : vector<8x96xf32>
    %12 = tpu.matmul %11, %10, %cst_8 {dimension_numbers = #tpu.dot_dimension_numbers<[1], [0], [0], [1], [0, 0, 1, 1], [], []>} : vector<8x32xbf16>, vector<32x96xbf16>, vector<8x96xf32> -> vector<8x96xf32>
    %c0_9 = arith.constant 0 : index
    %c0_10 = arith.constant 0 : index
    %13 = vector.load %arg4[%c0_9, %c0_10] : memref<1x96xf32, #tpu.memory_space<vmem>>, vector<1x96xf32>
    %14 = vector.broadcast %13 : vector<1x96xf32> to vector<8x96xf32>
    %15 = arith.addf %12, %14 : vector<8x96xf32>
    %16 = vector.extract_strided_slice %15 {offsets = [0, 0], sizes = [8, 32], strides = [1, 1]} : vector<8x96xf32> to vector<8x32xf32>
    %17 = vector.extract_strided_slice %15 {offsets = [0, 32], sizes = [8, 32], strides = [1, 1]} : vector<8x96xf32> to vector<8x32xf32>
    %18 = vector.extract_strided_slice %15 {offsets = [0, 64], sizes = [8, 32], strides = [1, 1]} : vector<8x96xf32> to vector<8x32xf32>
    %c0_11 = arith.constant 0 : index
    %c0_12 = arith.constant 0 : index
    %19 = vector.load %arg5[%c0_11, %c0_12] : memref<32x32xbf16, #tpu.memory_space<vmem>>, vector<32x32xbf16>
    %c0_13 = arith.constant 0 : index
    %c0_14 = arith.constant 0 : index
    %20 = vector.load %arg6[%c0_13, %c0_14] : memref<1x32xf32, #tpu.memory_space<vmem>>, vector<1x32xf32>
    %21 = vector.extract_strided_slice %16 {offsets = [0, 0], sizes = [8, 8], strides = [1, 1]} : vector<8x32xf32> to vector<8x8xf32>
    %22 = arith.truncf %21 : vector<8x8xf32> to vector<8x8xbf16>
    %23 = vector.extract_strided_slice %17 {offsets = [0, 0], sizes = [8, 8], strides = [1, 1]} : vector<8x32xf32> to vector<8x8xf32>
    %24 = arith.truncf %23 : vector<8x8xf32> to vector<8x8xbf16>
    %cst_15 = arith.constant dense<0.000000e+00> : vector<8x8xf32>
    %25 = tpu.matmul %22, %24, %cst_15 {dimension_numbers = #tpu.dot_dimension_numbers<[1], [1], [0], [0], [0, 0, 1, 0], [], []>} : vector<8x8xbf16>, vector<8x8xbf16>, vector<8x8xf32> -> vector<8x8xf32>
    %26 = vector.broadcast %9 : vector<1x8xf32> to vector<8x8xf32>
    %27 = arith.addf %25, %26 : vector<8x8xf32>
    %cst_16 = arith.constant dense<0xFF800000> : vector<8xf32>
    %28 = vector.multi_reduction <maximumf>, %27, %cst_16 [1] : vector<8x8xf32> to vector<8xf32>
    %29 = vector.shape_cast %28 : vector<8xf32> to vector<8x1xf32>
    %30 = vector.broadcast %29 : vector<8x1xf32> to vector<8x8xf32>
    %31 = arith.subf %27, %30 : vector<8x8xf32>
    %32 = math.exp %31 : vector<8x8xf32>
    %cst_17 = arith.constant dense<0.000000e+00> : vector<8xf32>
    %33 = vector.multi_reduction <add>, %32, %cst_17 [1] : vector<8x8xf32> to vector<8xf32>
    %34 = vector.shape_cast %33 : vector<8xf32> to vector<8x1xf32>
    %35 = tpu.reciprocal %34 {approx = true} : vector<8x1xf32> -> vector<8x1xf32>
    %36 = vector.extract_strided_slice %18 {offsets = [0, 0], sizes = [8, 8], strides = [1, 1]} : vector<8x32xf32> to vector<8x8xf32>
    %37 = arith.truncf %32 : vector<8x8xf32> to vector<8x8xbf16>
    %38 = arith.truncf %36 : vector<8x8xf32> to vector<8x8xbf16>
    %cst_18 = arith.constant dense<0.000000e+00> : vector<8x8xf32>
    %39 = tpu.matmul %37, %38, %cst_18 {dimension_numbers = #tpu.dot_dimension_numbers<[1], [0], [0], [1], [0, 0, 1, 1], [], []>} : vector<8x8xbf16>, vector<8x8xbf16>, vector<8x8xf32> -> vector<8x8xf32>
    %40 = vector.broadcast %35 : vector<8x1xf32> to vector<8x8xf32>
    %41 = arith.mulf %39, %40 : vector<8x8xf32>
    %42 = vector.extract_strided_slice %16 {offsets = [0, 8], sizes = [8, 8], strides = [1, 1]} : vector<8x32xf32> to vector<8x8xf32>
    %43 = arith.truncf %42 : vector<8x8xf32> to vector<8x8xbf16>
    %44 = vector.extract_strided_slice %17 {offsets = [0, 8], sizes = [8, 8], strides = [1, 1]} : vector<8x32xf32> to vector<8x8xf32>
    %45 = arith.truncf %44 : vector<8x8xf32> to vector<8x8xbf16>
    %cst_19 = arith.constant dense<0.000000e+00> : vector<8x8xf32>
    %46 = tpu.matmul %43, %45, %cst_19 {dimension_numbers = #tpu.dot_dimension_numbers<[1], [1], [0], [0], [0, 0, 1, 0], [], []>} : vector<8x8xbf16>, vector<8x8xbf16>, vector<8x8xf32> -> vector<8x8xf32>
    %47 = vector.broadcast %9 : vector<1x8xf32> to vector<8x8xf32>
    %48 = arith.addf %46, %47 : vector<8x8xf32>
    %cst_20 = arith.constant dense<0xFF800000> : vector<8xf32>
    %49 = vector.multi_reduction <maximumf>, %48, %cst_20 [1] : vector<8x8xf32> to vector<8xf32>
    %50 = vector.shape_cast %49 : vector<8xf32> to vector<8x1xf32>
    %51 = vector.broadcast %50 : vector<8x1xf32> to vector<8x8xf32>
    %52 = arith.subf %48, %51 : vector<8x8xf32>
    %53 = math.exp %52 : vector<8x8xf32>
    %cst_21 = arith.constant dense<0.000000e+00> : vector<8xf32>
    %54 = vector.multi_reduction <add>, %53, %cst_21 [1] : vector<8x8xf32> to vector<8xf32>
    %55 = vector.shape_cast %54 : vector<8xf32> to vector<8x1xf32>
    %56 = tpu.reciprocal %55 {approx = true} : vector<8x1xf32> -> vector<8x1xf32>
    %57 = vector.extract_strided_slice %18 {offsets = [0, 8], sizes = [8, 8], strides = [1, 1]} : vector<8x32xf32> to vector<8x8xf32>
    %58 = arith.truncf %53 : vector<8x8xf32> to vector<8x8xbf16>
    %59 = arith.truncf %57 : vector<8x8xf32> to vector<8x8xbf16>
    %cst_22 = arith.constant dense<0.000000e+00> : vector<8x8xf32>
    %60 = tpu.matmul %58, %59, %cst_22 {dimension_numbers = #tpu.dot_dimension_numbers<[1], [0], [0], [1], [0, 0, 1, 1], [], []>} : vector<8x8xbf16>, vector<8x8xbf16>, vector<8x8xf32> -> vector<8x8xf32>
    %61 = vector.broadcast %56 : vector<8x1xf32> to vector<8x8xf32>
    %62 = arith.mulf %60, %61 : vector<8x8xf32>
    %63 = vector.extract_strided_slice %16 {offsets = [0, 16], sizes = [8, 8], strides = [1, 1]} : vector<8x32xf32> to vector<8x8xf32>
    %64 = arith.truncf %63 : vector<8x8xf32> to vector<8x8xbf16>
    %65 = vector.extract_strided_slice %17 {offsets = [0, 16], sizes = [8, 8], strides = [1, 1]} : vector<8x32xf32> to vector<8x8xf32>
    %66 = arith.truncf %65 : vector<8x8xf32> to vector<8x8xbf16>
    %cst_23 = arith.constant dense<0.000000e+00> : vector<8x8xf32>
    %67 = tpu.matmul %64, %66, %cst_23 {dimension_numbers = #tpu.dot_dimension_numbers<[1], [1], [0], [0], [0, 0, 1, 0], [], []>} : vector<8x8xbf16>, vector<8x8xbf16>, vector<8x8xf32> -> vector<8x8xf32>
    %68 = vector.broadcast %9 : vector<1x8xf32> to vector<8x8xf32>
    %69 = arith.addf %67, %68 : vector<8x8xf32>
    %cst_24 = arith.constant dense<0xFF800000> : vector<8xf32>
    %70 = vector.multi_reduction <maximumf>, %69, %cst_24 [1] : vector<8x8xf32> to vector<8xf32>
    %71 = vector.shape_cast %70 : vector<8xf32> to vector<8x1xf32>
    %72 = vector.broadcast %71 : vector<8x1xf32> to vector<8x8xf32>
    %73 = arith.subf %69, %72 : vector<8x8xf32>
    %74 = math.exp %73 : vector<8x8xf32>
    %cst_25 = arith.constant dense<0.000000e+00> : vector<8xf32>
    %75 = vector.multi_reduction <add>, %74, %cst_25 [1] : vector<8x8xf32> to vector<8xf32>
    %76 = vector.shape_cast %75 : vector<8xf32> to vector<8x1xf32>
    %77 = tpu.reciprocal %76 {approx = true} : vector<8x1xf32> -> vector<8x1xf32>
    %78 = vector.extract_strided_slice %18 {offsets = [0, 16], sizes = [8, 8], strides = [1, 1]} : vector<8x32xf32> to vector<8x8xf32>
    %79 = arith.truncf %74 : vector<8x8xf32> to vector<8x8xbf16>
    %80 = arith.truncf %78 : vector<8x8xf32> to vector<8x8xbf16>
    %cst_26 = arith.constant dense<0.000000e+00> : vector<8x8xf32>
    %81 = tpu.matmul %79, %80, %cst_26 {dimension_numbers = #tpu.dot_dimension_numbers<[1], [0], [0], [1], [0, 0, 1, 1], [], []>} : vector<8x8xbf16>, vector<8x8xbf16>, vector<8x8xf32> -> vector<8x8xf32>
    %82 = vector.broadcast %77 : vector<8x1xf32> to vector<8x8xf32>
    %83 = arith.mulf %81, %82 : vector<8x8xf32>
    %84 = vector.extract_strided_slice %16 {offsets = [0, 24], sizes = [8, 8], strides = [1, 1]} : vector<8x32xf32> to vector<8x8xf32>
    %85 = arith.truncf %84 : vector<8x8xf32> to vector<8x8xbf16>
    %86 = vector.extract_strided_slice %17 {offsets = [0, 24], sizes = [8, 8], strides = [1, 1]} : vector<8x32xf32> to vector<8x8xf32>
    %87 = arith.truncf %86 : vector<8x8xf32> to vector<8x8xbf16>
    %cst_27 = arith.constant dense<0.000000e+00> : vector<8x8xf32>
    %88 = tpu.matmul %85, %87, %cst_27 {dimension_numbers = #tpu.dot_dimension_numbers<[1], [1], [0], [0], [0, 0, 1, 0], [], []>} : vector<8x8xbf16>, vector<8x8xbf16>, vector<8x8xf32> -> vector<8x8xf32>
    %89 = vector.broadcast %9 : vector<1x8xf32> to vector<8x8xf32>
    %90 = arith.addf %88, %89 : vector<8x8xf32>
    %cst_28 = arith.constant dense<0xFF800000> : vector<8xf32>
    %91 = vector.multi_reduction <maximumf>, %90, %cst_28 [1] : vector<8x8xf32> to vector<8xf32>
    %92 = vector.shape_cast %91 : vector<8xf32> to vector<8x1xf32>
    %93 = vector.broadcast %92 : vector<8x1xf32> to vector<8x8xf32>
    %94 = arith.subf %90, %93 : vector<8x8xf32>
    %95 = math.exp %94 : vector<8x8xf32>
    %cst_29 = arith.constant dense<0.000000e+00> : vector<8xf32>
    %96 = vector.multi_reduction <add>, %95, %cst_29 [1] : vector<8x8xf32> to vector<8xf32>
    %97 = vector.shape_cast %96 : vector<8xf32> to vector<8x1xf32>
    %98 = tpu.reciprocal %97 {approx = true} : vector<8x1xf32> -> vector<8x1xf32>
    %99 = vector.extract_strided_slice %18 {offsets = [0, 24], sizes = [8, 8], strides = [1, 1]} : vector<8x32xf32> to vector<8x8xf32>
    %100 = arith.truncf %95 : vector<8x8xf32> to vector<8x8xbf16>
    %101 = arith.truncf %99 : vector<8x8xf32> to vector<8x8xbf16>
    %cst_30 = arith.constant dense<0.000000e+00> : vector<8x8xf32>
    %102 = tpu.matmul %100, %101, %cst_30 {dimension_numbers = #tpu.dot_dimension_numbers<[1], [0], [0], [1], [0, 0, 1, 1], [], []>} : vector<8x8xbf16>, vector<8x8xbf16>, vector<8x8xf32> -> vector<8x8xf32>
    %103 = vector.broadcast %98 : vector<8x1xf32> to vector<8x8xf32>
    %104 = arith.mulf %102, %103 : vector<8x8xf32>
    %105 = tpu.concatenate %41, %62, %83, %104 in 1 : vector<8x8xf32>, vector<8x8xf32>, vector<8x8xf32>, vector<8x8xf32> -> vector<8x32xf32>
    %106 = arith.truncf %105 : vector<8x32xf32> to vector<8x32xbf16>
    %cst_31 = arith.constant dense<0.000000e+00> : vector<8x32xf32>
    %107 = tpu.matmul %106, %19, %cst_31 {dimension_numbers = #tpu.dot_dimension_numbers<[1], [0], [0], [1], [0, 0, 1, 1], [], []>} : vector<8x32xbf16>, vector<32x32xbf16>, vector<8x32xf32> -> vector<8x32xf32>
    %108 = vector.broadcast %20 : vector<1x32xf32> to vector<8x32xf32>
    %109 = arith.addf %107, %108 : vector<8x32xf32>
    %110 = arith.addf %2, %109 : vector<8x32xf32>
    %c0_32 = arith.constant 0 : index
    %c0_33 = arith.constant 0 : index
    %111 = vector.load %arg7[%c0_32, %c0_33] : memref<1x32xf32, #tpu.memory_space<vmem>>, vector<1x32xf32>
    %c0_34 = arith.constant 0 : index
    %c0_35 = arith.constant 0 : index
    %112 = vector.load %arg8[%c0_34, %c0_35] : memref<1x32xf32, #tpu.memory_space<vmem>>, vector<1x32xf32>
    %cst_36 = arith.constant dense<0.000000e+00> : vector<8xf32>
    %113 = vector.multi_reduction <add>, %110, %cst_36 [1] : vector<8x32xf32> to vector<8xf32>
    %114 = vector.shape_cast %113 : vector<8xf32> to vector<8x1xf32>
    %cst_37 = arith.constant 3.200000e+01 : f32
    %115 = vector.broadcast %cst_37 : f32 to vector<8x1xf32>
    %116 = arith.divf %114, %115 : vector<8x1xf32>
    %117 = vector.broadcast %116 : vector<8x1xf32> to vector<8x32xf32>
    %118 = arith.subf %110, %117 : vector<8x32xf32>
    %119 = arith.mulf %118, %118 : vector<8x32xf32>
    %cst_38 = arith.constant dense<0.000000e+00> : vector<8xf32>
    %120 = vector.multi_reduction <add>, %119, %cst_38 [1] : vector<8x32xf32> to vector<8xf32>
    %121 = vector.shape_cast %120 : vector<8xf32> to vector<8x1xf32>
    %cst_39 = arith.constant 3.200000e+01 : f32
    %122 = vector.broadcast %cst_39 : f32 to vector<8x1xf32>
    %123 = arith.divf %121, %122 : vector<8x1xf32>
    %cst_40 = arith.constant 9.99999974E-6 : f32
    %124 = vector.broadcast %cst_40 : f32 to vector<8x1xf32>
    %125 = arith.addf %123, %124 : vector<8x1xf32>
    %126 = math.rsqrt %125 : vector<8x1xf32>
    %127 = vector.broadcast %126 : vector<8x1xf32> to vector<8x32xf32>
    %128 = arith.mulf %118, %127 : vector<8x32xf32>
    %129 = vector.broadcast %111 : vector<1x32xf32> to vector<8x32xf32>
    %130 = arith.mulf %128, %129 : vector<8x32xf32>
    %131 = vector.broadcast %112 : vector<1x32xf32> to vector<8x32xf32>
    %132 = arith.addf %130, %131 : vector<8x32xf32>
    %c0_41 = arith.constant 0 : index
    %c0_42 = arith.constant 0 : index
    %133 = vector.load %arg9[%c0_41, %c0_42] : memref<32x64xbf16, #tpu.memory_space<vmem>>, vector<32x64xbf16>
    %134 = arith.truncf %132 : vector<8x32xf32> to vector<8x32xbf16>
    %cst_43 = arith.constant dense<0.000000e+00> : vector<8x64xf32>
    %135 = tpu.matmul %134, %133, %cst_43 {dimension_numbers = #tpu.dot_dimension_numbers<[1], [0], [0], [1], [0, 0, 1, 1], [], []>} : vector<8x32xbf16>, vector<32x64xbf16>, vector<8x64xf32> -> vector<8x64xf32>
    %c0_44 = arith.constant 0 : index
    %c0_45 = arith.constant 0 : index
    %136 = vector.load %arg10[%c0_44, %c0_45] : memref<1x64xf32, #tpu.memory_space<vmem>>, vector<1x64xf32>
    %137 = vector.broadcast %136 : vector<1x64xf32> to vector<8x64xf32>
    %138 = arith.addf %135, %137 : vector<8x64xf32>
    %cst_46 = arith.constant 0.000000e+00 : f32
    %139 = vector.broadcast %cst_46 : f32 to vector<8x64xf32>
    %140 = arith.maximumf %138, %139 : vector<8x64xf32>
    %c0_47 = arith.constant 0 : index
    %c0_48 = arith.constant 0 : index
    %141 = vector.load %arg11[%c0_47, %c0_48] : memref<64x32xbf16, #tpu.memory_space<vmem>>, vector<64x32xbf16>
    %142 = arith.truncf %140 : vector<8x64xf32> to vector<8x64xbf16>
    %cst_49 = arith.constant dense<0.000000e+00> : vector<8x32xf32>
    %143 = tpu.matmul %142, %141, %cst_49 {dimension_numbers = #tpu.dot_dimension_numbers<[1], [0], [0], [1], [0, 0, 1, 1], [], []>} : vector<8x64xbf16>, vector<64x32xbf16>, vector<8x32xf32> -> vector<8x32xf32>
    %c0_50 = arith.constant 0 : index
    %c0_51 = arith.constant 0 : index
    %144 = vector.load %arg12[%c0_50, %c0_51] : memref<1x32xf32, #tpu.memory_space<vmem>>, vector<1x32xf32>
    %145 = vector.broadcast %144 : vector<1x32xf32> to vector<8x32xf32>
    %146 = arith.addf %143, %145 : vector<8x32xf32>
    %147 = arith.addf %132, %146 : vector<8x32xf32>
    %c0_52 = arith.constant 0 : index
    %c0_53 = arith.constant 0 : index
    %148 = vector.load %arg13[%c0_52, %c0_53] : memref<1x32xf32, #tpu.memory_space<vmem>>, vector<1x32xf32>
    %c0_54 = arith.constant 0 : index
    %c0_55 = arith.constant 0 : index
    %149 = vector.load %arg14[%c0_54, %c0_55] : memref<1x32xf32, #tpu.memory_space<vmem>>, vector<1x32xf32>
    %cst_56 = arith.constant dense<0.000000e+00> : vector<8xf32>
    %150 = vector.multi_reduction <add>, %147, %cst_56 [1] : vector<8x32xf32> to vector<8xf32>
    %151 = vector.shape_cast %150 : vector<8xf32> to vector<8x1xf32>
    %cst_57 = arith.constant 3.200000e+01 : f32
    %152 = vector.broadcast %cst_57 : f32 to vector<8x1xf32>
    %153 = arith.divf %151, %152 : vector<8x1xf32>
    %154 = vector.broadcast %153 : vector<8x1xf32> to vector<8x32xf32>
    %155 = arith.subf %147, %154 : vector<8x32xf32>
    %156 = arith.mulf %155, %155 : vector<8x32xf32>
    %cst_58 = arith.constant dense<0.000000e+00> : vector<8xf32>
    %157 = vector.multi_reduction <add>, %156, %cst_58 [1] : vector<8x32xf32> to vector<8xf32>
    %158 = vector.shape_cast %157 : vector<8xf32> to vector<8x1xf32>
    %cst_59 = arith.constant 3.200000e+01 : f32
    %159 = vector.broadcast %cst_59 : f32 to vector<8x1xf32>
    %160 = arith.divf %158, %159 : vector<8x1xf32>
    %cst_60 = arith.constant 9.99999974E-6 : f32
    %161 = vector.broadcast %cst_60 : f32 to vector<8x1xf32>
    %162 = arith.addf %160, %161 : vector<8x1xf32>
    %163 = math.rsqrt %162 : vector<8x1xf32>
    %164 = vector.broadcast %163 : vector<8x1xf32> to vector<8x32xf32>
    %165 = arith.mulf %155, %164 : vector<8x32xf32>
    %166 = vector.broadcast %148 : vector<1x32xf32> to vector<8x32xf32>
    %167 = arith.mulf %165, %166 : vector<8x32xf32>
    %168 = vector.broadcast %149 : vector<1x32xf32> to vector<8x32xf32>
    %169 = arith.addf %167, %168 : vector<8x32xf32>
    %c0_61 = arith.constant 0 : index
    %c0_62 = arith.constant 0 : index
    %170 = vector.load %arg15[%c0_61, %c0_62] : memref<1x32xf32, #tpu.memory_space<vmem>>, vector<1x32xf32>
    %c0_63 = arith.constant 0 : index
    %c0_64 = arith.constant 0 : index
    %171 = vector.load %arg16[%c0_63, %c0_64] : memref<1x32xf32, #tpu.memory_space<vmem>>, vector<1x32xf32>
    %cst_65 = arith.constant dense<0.000000e+00> : vector<8xf32>
    %172 = vector.multi_reduction <add>, %169, %cst_65 [1] : vector<8x32xf32> to vector<8xf32>
    %173 = vector.shape_cast %172 : vector<8xf32> to vector<8x1xf32>
    %cst_66 = arith.constant 3.200000e+01 : f32
    %174 = vector.broadcast %cst_66 : f32 to vector<8x1xf32>
    %175 = arith.divf %173, %174 : vector<8x1xf32>
    %176 = vector.broadcast %175 : vector<8x1xf32> to vector<8x32xf32>
    %177 = arith.subf %169, %176 : vector<8x32xf32>
    %178 = arith.mulf %177, %177 : vector<8x32xf32>
    %cst_67 = arith.constant dense<0.000000e+00> : vector<8xf32>
    %179 = vector.multi_reduction <add>, %178, %cst_67 [1] : vector<8x32xf32> to vector<8xf32>
    %180 = vector.shape_cast %179 : vector<8xf32> to vector<8x1xf32>
    %cst_68 = arith.constant 3.200000e+01 : f32
    %181 = vector.broadcast %cst_68 : f32 to vector<8x1xf32>
    %182 = arith.divf %180, %181 : vector<8x1xf32>
    %cst_69 = arith.constant 9.99999974E-6 : f32
    %183 = vector.broadcast %cst_69 : f32 to vector<8x1xf32>
    %184 = arith.addf %182, %183 : vector<8x1xf32>
    %185 = math.rsqrt %184 : vector<8x1xf32>
    %186 = vector.broadcast %185 : vector<8x1xf32> to vector<8x32xf32>
    %187 = arith.mulf %177, %186 : vector<8x32xf32>
    %188 = vector.broadcast %170 : vector<1x32xf32> to vector<8x32xf32>
    %189 = arith.mulf %187, %188 : vector<8x32xf32>
    %190 = vector.broadcast %171 : vector<1x32xf32> to vector<8x32xf32>
    %191 = arith.addf %189, %190 : vector<8x32xf32>
    %192 = arith.truncf %191 : vector<8x32xf32> to vector<8x32xbf16>
    %c0_70 = arith.constant 0 : index
    %c0_71 = arith.constant 0 : index
    %c0_72 = arith.constant 0 : index
    %193 = vector.load %arg17[%c0_70, %c0_71, %c0_72] : memref<1x8x32xbf16, #tpu.memory_space<vmem>>, vector<1x8x32xbf16>
    %194 = vector.shape_cast %193 : vector<1x8x32xbf16> to vector<8x32xbf16>
    %195 = vector.shape_cast %192 : vector<8x32xbf16> to vector<1x8x32xbf16>
    tpu.vector_store %arg17[%c0_70, %c0_71, %c0_72], %195 {strides = array<i32>} : memref<1x8x32xbf16, #tpu.memory_space<vmem>>, vector<1x8x32xbf16>,
    return
  }
  func.func @transform_0(%arg0: i32) -> (i32, i32, i32) {
    %c0_i32 = arith.constant 0 : i32
    %c0_i32_0 = arith.constant 0 : i32
    %c0_i32_1 = arith.constant 0 : i32
    return %arg0, %c0_i32, %c0_i32_0 : i32, i32, i32
  }
  func.func @transform_1(%arg0: i32) -> (i32, i32, i32) {
    %c0_i32 = arith.constant 0 : i32
    %c0_i32_0 = arith.constant 0 : i32
    %c0_i32_1 = arith.constant 0 : i32
    return %arg0, %c0_i32, %c0_i32_0 : i32, i32, i32
  }
  func.func @transform_2(%arg0: i32) -> (i32, i32) {
    %c0_i32 = arith.constant 0 : i32
    %c0_i32_0 = arith.constant 0 : i32
    %c0_i32_1 = arith.constant 0 : i32
    return %c0_i32, %c0_i32_0 : i32, i32
  }
  func.func @transform_3(%arg0: i32) -> (i32, i32) {
    %c0_i32 = arith.constant 0 : i32
    %c0_i32_0 = arith.constant 0 : i32
    %c0_i32_1 = arith.constant 0 : i32
    return %c0_i32, %c0_i32_0 : i32, i32
  }
  func.func @transform_4(%arg0: i32) -> (i32, i32) {
    %c0_i32 = arith.constant 0 : i32
    %c0_i32_0 = arith.constant 0 : i32
    %c0_i32_1 = arith.constant 0 : i32
    return %c0_i32, %c0_i32_0 : i32, i32
  }
  func.func @transform_5(%arg0: i32) -> (i32, i32) {
    %c0_i32 = arith.constant 0 : i32
    %c0_i32_0 = arith.constant 0 : i32
    %c0_i32_1 = arith.constant 0 : i32
    return %c0_i32, %c0_i32_0 : i32, i32
  }
  func.func @transform_6(%arg0: i32) -> (i32, i32) {
    %c0_i32 = arith.constant 0 : i32
    %c0_i32_0 = arith.constant 0 : i32
    %c0_i32_1 = arith.constant 0 : i32
    return %c0_i32, %c0_i32_0 : i32, i32
  }
  func.func @transform_7(%arg0: i32) -> (i32, i32) {
    %c0_i32 = arith.constant 0 : i32
    %c0_i32_0 = arith.constant 0 : i32
    %c0_i32_1 = arith.constant 0 : i32
    return %c0_i32, %c0_i32_0 : i32, i32
  }
  func.func @transform_8(%arg0: i32) -> (i32, i32) {
    %c0_i32 = arith.constant 0 : i32
    %c0_i32_0 = arith.constant 0 : i32
    %c0_i32_1 = arith.constant 0 : i32
    return %c0_i32, %c0_i32_0 : i32, i32
  }
  func.func @transform_9(%arg0: i32) -> (i32, i32) {
    %c0_i32 = arith.constant 0 : i32
    %c0_i32_0 = arith.constant 0 : i32
    %c0_i32_1 = arith.constant 0 : i32
    return %c0_i32, %c0_i32_0 : i32, i32
  }
  func.func @transform_10(%arg0: i32) -> (i32, i32) {
    %c0_i32 = arith.constant 0 : i32
    %c0_i32_0 = arith.constant 0 : i32
    %c0_i32_1 = arith.constant 0 : i32
    return %c0_i32, %c0_i32_0 : i32, i32
  }
  func.func @transform_11(%arg0: i32) -> (i32, i32) {
    %c0_i32 = arith.constant 0 : i32
    %c0_i32_0 = arith.constant 0 : i32
    %c0_i32_1 = arith.constant 0 : i32
    return %c0_i32, %c0_i32_0 : i32, i32
  }
  func.func @transform_12(%arg0: i32) -> (i32, i32) {
    %c0_i32 = arith.constant 0 : i32
    %c0_i32_0 = arith.constant 0 : i32
    %c0_i32_1 = arith.constant 0 : i32
    return %c0_i32, %c0_i32_0 : i32, i32
  }
  func.func @transform_13(%arg0: i32) -> (i32, i32) {
    %c0_i32 = arith.constant 0 : i32
    %c0_i32_0 = arith.constant 0 : i32
    %c0_i32_1 = arith.constant 0 : i32
    return %c0_i32, %c0_i32_0 : i32, i32
  }
  func.func @transform_14(%arg0: i32) -> (i32, i32) {
    %c0_i32 = arith.constant 0 : i32
    %c0_i32_0 = arith.constant 0 : i32
    %c0_i32_1 = arith.constant 0 : i32
    return %c0_i32, %c0_i32_0 : i32, i32
  }
  func.func @transform_15(%arg0: i32) -> (i32, i32) {
    %c0_i32 = arith.constant 0 : i32
    %c0_i32_0 = arith.constant 0 : i32
    %c0_i32_1 = arith.constant 0 : i32
    return %c0_i32, %c0_i32_0 : i32, i32
  }
  func.func @transform_16(%arg0: i32) -> (i32, i32, i32) {
    %c0_i32 = arith.constant 0 : i32
    %c0_i32_0 = arith.constant 0 : i32
    %c0_i32_1 = arith.constant 0 : i32
    return %arg0, %c0_i32, %c0_i32_0 : i32, i32, i32
  }
}

module attributes {stable_mosaic.version = 11 : i64} {
  func.func @_decoder_layer_kernel(%arg0: i32, %arg1: memref<1x6x32xbf16, #tpu.memory_space<vmem>>, %arg2: memref<1x8x32xbf16, #tpu.memory_space<vmem>>, %arg3: memref<32x96xbf16, #tpu.memory_space<vmem>>, %arg4: memref<1x96xf32, #tpu.memory_space<vmem>>, %arg5: memref<32x32xbf16, #tpu.memory_space<vmem>>, %arg6: memref<1x32xf32, #tpu.memory_space<vmem>>, %arg7: memref<1x32xf32, #tpu.memory_space<vmem>>, %arg8: memref<1x32xf32, #tpu.memory_space<vmem>>, %arg9: memref<32x32xbf16, #tpu.memory_space<vmem>>, %arg10: memref<1x32xf32, #tpu.memory_space<vmem>>, %arg11: memref<32x64xbf16, #tpu.memory_space<vmem>>, %arg12: memref<1x64xf32, #tpu.memory_space<vmem>>, %arg13: memref<32x32xbf16, #tpu.memory_space<vmem>>, %arg14: memref<1x32xf32, #tpu.memory_space<vmem>>, %arg15: memref<1x32xf32, #tpu.memory_space<vmem>>, %arg16: memref<1x32xf32, #tpu.memory_space<vmem>>, %arg17: memref<32x64xbf16, #tpu.memory_space<vmem>>, %arg18: memref<1x64xf32, #tpu.memory_space<vmem>>, %arg19: memref<64x32xbf16, #tpu.memory_space<vmem>>, %arg20: memref<1x32xf32, #tpu.memory_space<vmem>>, %arg21: memref<1x32xf32, #tpu.memory_space<vmem>>, %arg22: memref<1x32xf32, #tpu.memory_space<vmem>>, %arg23: memref<1x6x32xbf16, #tpu.memory_space<vmem>>) attributes {dimension_semantics = [#tpu.dimension_semantics<parallel>], iteration_bounds = array<i64: 2>, scalar_prefetch = 0 : i64, scratch_operands = 0 : i64, tpu.core_type = #tpu.core_type<tc>, window_params = [{transform_indices = @transform_0, window_bounds = array<i64: 1, 6, 32>}, {transform_indices = @transform_1, window_bounds = array<i64: 1, 8, 32>}, {pipeline_mode = #tpu.pipeline_mode<synchronous>, transform_indices = @transform_2, window_bounds = array<i64: 32, 96>}, {pipeline_mode = #tpu.pipeline_mode<synchronous>, transform_indices = @transform_3, window_bounds = array<i64: 1, 96>}, {pipeline_mode = #tpu.pipeline_mode<synchronous>, transform_indices = @transform_4, window_bounds = array<i64: 32, 32>}, {pipeline_mode = #tpu.pipeline_mode<synchronous>, transform_indices = @transform_5, window_bounds = array<i64: 1, 32>}, {pipeline_mode = #tpu.pipeline_mode<synchronous>, transform_indices = @transform_6, window_bounds = array<i64: 1, 32>}, {pipeline_mode = #tpu.pipeline_mode<synchronous>, transform_indices = @transform_7, window_bounds = array<i64: 1, 32>}, {pipeline_mode = #tpu.pipeline_mode<synchronous>, transform_indices = @transform_8, window_bounds = array<i64: 32, 32>}, {pipeline_mode = #tpu.pipeline_mode<synchronous>, transform_indices = @transform_9, window_bounds = array<i64: 1, 32>}, {pipeline_mode = #tpu.pipeline_mode<synchronous>, transform_indices = @transform_10, window_bounds = array<i64: 32, 64>}, {pipeline_mode = #tpu.pipeline_mode<synchronous>, transform_indices = @transform_11, window_bounds = array<i64: 1, 64>}, {pipeline_mode = #tpu.pipeline_mode<synchronous>, transform_indices = @transform_12, window_bounds = array<i64: 32, 32>}, {pipeline_mode = #tpu.pipeline_mode<synchronous>, transform_indices = @transform_13, window_bounds = array<i64: 1, 32>}, {pipeline_mode = #tpu.pipeline_mode<synchronous>, transform_indices = @transform_14, window_bounds = array<i64: 1, 32>}, {pipeline_mode = #tpu.pipeline_mode<synchronous>, transform_indices = @transform_15, window_bounds = array<i64: 1, 32>}, {pipeline_mode = #tpu.pipeline_mode<synchronous>, transform_indices = @transform_16, window_bounds = array<i64: 32, 64>}, {pipeline_mode = #tpu.pipeline_mode<synchronous>, transform_indices = @transform_17, window_bounds = array<i64: 1, 64>}, {pipeline_mode = #tpu.pipeline_mode<synchronous>, transform_indices = @transform_18, window_bounds = array<i64: 64, 32>}, {pipeline_mode = #tpu.pipeline_mode<synchronous>, transform_indices = @transform_19, window_bounds = array<i64: 1, 32>}, {pipeline_mode = #tpu.pipeline_mode<synchronous>, transform_indices = @transform_20, window_bounds = array<i64: 1, 32>}, {pipeline_mode = #tpu.pipeline_mode<synchronous>, transform_indices = @transform_21, window_bounds = array<i64: 1, 32>}, {transform_indices = @transform_22, window_bounds = array<i64: 1, 6, 32>}]} {
    %c0 = arith.constant 0 : index
    %c0_0 = arith.constant 0 : index
    %c0_1 = arith.constant 0 : index
    %0 = vector.load %arg1[%c0, %c0_0, %c0_1] : memref<1x6x32xbf16, #tpu.memory_space<vmem>>, vector<1x6x32xbf16>
    %1 = vector.shape_cast %0 : vector<1x6x32xbf16> to vector<6x32xbf16>
    %2 = arith.extf %1 : vector<6x32xbf16> to vector<6x32xf32>
    %c0_2 = arith.constant 0 : index
    %c0_3 = arith.constant 0 : index
    %c0_4 = arith.constant 0 : index
    %3 = vector.load %arg2[%c0_2, %c0_3, %c0_4] : memref<1x8x32xbf16, #tpu.memory_space<vmem>>, vector<1x8x32xbf16>
    %4 = vector.shape_cast %3 : vector<1x8x32xbf16> to vector<8x32xbf16>
    %c0_5 = arith.constant 0 : index
    %c0_6 = arith.constant 0 : index
    %5 = vector.load %arg3[%c0_5, %c0_6] : memref<32x96xbf16, #tpu.memory_space<vmem>>, vector<32x96xbf16>
    %6 = arith.truncf %2 : vector<6x32xf32> to vector<6x32xbf16>
    %cst = arith.constant dense<0.000000e+00> : vector<6x96xf32>
    %7 = tpu.matmul %6, %5, %cst {dimension_numbers = #tpu.dot_dimension_numbers<[1], [0], [0], [1], [0, 0, 1, 1], [], []>} : vector<6x32xbf16>, vector<32x96xbf16>, vector<6x96xf32> -> vector<6x96xf32>
    %c0_7 = arith.constant 0 : index
    %c0_8 = arith.constant 0 : index
    %8 = vector.load %arg4[%c0_7, %c0_8] : memref<1x96xf32, #tpu.memory_space<vmem>>, vector<1x96xf32>
    %9 = vector.broadcast %8 : vector<1x96xf32> to vector<6x96xf32>
    %10 = arith.addf %7, %9 : vector<6x96xf32>
    %11 = vector.extract_strided_slice %10 {offsets = [0, 0], sizes = [6, 32], strides = [1, 1]} : vector<6x96xf32> to vector<6x32xf32>
    %12 = vector.extract_strided_slice %10 {offsets = [0, 32], sizes = [6, 32], strides = [1, 1]} : vector<6x96xf32> to vector<6x32xf32>
    %13 = vector.extract_strided_slice %10 {offsets = [0, 64], sizes = [6, 32], strides = [1, 1]} : vector<6x96xf32> to vector<6x32xf32>
    %c0_9 = arith.constant 0 : index
    %c0_10 = arith.constant 0 : index
    %14 = vector.load %arg5[%c0_9, %c0_10] : memref<32x32xbf16, #tpu.memory_space<vmem>>, vector<32x32xbf16>
    %c0_11 = arith.constant 0 : index
    %c0_12 = arith.constant 0 : index
    %15 = vector.load %arg6[%c0_11, %c0_12] : memref<1x32xf32, #tpu.memory_space<vmem>>, vector<1x32xf32>
    %16 = tpu.iota {dimensions = array<i32: 0>} : vector<6x6xi32>
    %17 = tpu.iota {dimensions = array<i32: 1>} : vector<6x6xi32>
    %18 = arith.cmpi slt, %16, %17 : vector<6x6xi32>
    %cst_13 = arith.constant -1.000000e+30 : f32
    %cst_14 = arith.constant 0.000000e+00 : f32
    %19 = vector.broadcast %cst_13 : f32 to vector<6x6xf32>
    %20 = vector.broadcast %cst_14 : f32 to vector<6x6xf32>
    %21 = arith.select %18, %19, %20 : vector<6x6xi1>, vector<6x6xf32>
    %22 = vector.extract_strided_slice %11 {offsets = [0, 0], sizes = [6, 8], strides = [1, 1]} : vector<6x32xf32> to vector<6x8xf32>
    %23 = arith.truncf %22 : vector<6x8xf32> to vector<6x8xbf16>
    %24 = vector.extract_strided_slice %12 {offsets = [0, 0], sizes = [6, 8], strides = [1, 1]} : vector<6x32xf32> to vector<6x8xf32>
    %25 = arith.truncf %24 : vector<6x8xf32> to vector<6x8xbf16>
    %cst_15 = arith.constant dense<0.000000e+00> : vector<6x6xf32>
    %26 = tpu.matmul %23, %25, %cst_15 {dimension_numbers = #tpu.dot_dimension_numbers<[1], [1], [0], [0], [0, 0, 1, 0], [], []>} : vector<6x8xbf16>, vector<6x8xbf16>, vector<6x6xf32> -> vector<6x6xf32>
    %27 = arith.addf %26, %21 : vector<6x6xf32>
    %cst_16 = arith.constant dense<0xFF800000> : vector<6xf32>
    %28 = vector.multi_reduction <maximumf>, %27, %cst_16 [1] : vector<6x6xf32> to vector<6xf32>
    %29 = vector.shape_cast %28 : vector<6xf32> to vector<6x1xf32>
    %30 = vector.broadcast %29 : vector<6x1xf32> to vector<6x6xf32>
    %31 = arith.subf %27, %30 : vector<6x6xf32>
    %32 = math.exp %31 : vector<6x6xf32>
    %cst_17 = arith.constant dense<0.000000e+00> : vector<6xf32>
    %33 = vector.multi_reduction <add>, %32, %cst_17 [1] : vector<6x6xf32> to vector<6xf32>
    %34 = vector.shape_cast %33 : vector<6xf32> to vector<6x1xf32>
    %35 = tpu.reciprocal %34 {approx = true} : vector<6x1xf32> -> vector<6x1xf32>
    %36 = vector.extract_strided_slice %13 {offsets = [0, 0], sizes = [6, 8], strides = [1, 1]} : vector<6x32xf32> to vector<6x8xf32>
    %37 = arith.truncf %32 : vector<6x6xf32> to vector<6x6xbf16>
    %38 = arith.truncf %36 : vector<6x8xf32> to vector<6x8xbf16>
    %cst_18 = arith.constant dense<0.000000e+00> : vector<6x8xf32>
    %39 = tpu.matmul %37, %38, %cst_18 {dimension_numbers = #tpu.dot_dimension_numbers<[1], [0], [0], [1], [0, 0, 1, 1], [], []>} : vector<6x6xbf16>, vector<6x8xbf16>, vector<6x8xf32> -> vector<6x8xf32>
    %40 = vector.broadcast %35 : vector<6x1xf32> to vector<6x8xf32>
    %41 = arith.mulf %39, %40 : vector<6x8xf32>
    %42 = vector.extract_strided_slice %11 {offsets = [0, 8], sizes = [6, 8], strides = [1, 1]} : vector<6x32xf32> to vector<6x8xf32>
    %43 = arith.truncf %42 : vector<6x8xf32> to vector<6x8xbf16>
    %44 = vector.extract_strided_slice %12 {offsets = [0, 8], sizes = [6, 8], strides = [1, 1]} : vector<6x32xf32> to vector<6x8xf32>
    %45 = arith.truncf %44 : vector<6x8xf32> to vector<6x8xbf16>
    %cst_19 = arith.constant dense<0.000000e+00> : vector<6x6xf32>
    %46 = tpu.matmul %43, %45, %cst_19 {dimension_numbers = #tpu.dot_dimension_numbers<[1], [1], [0], [0], [0, 0, 1, 0], [], []>} : vector<6x8xbf16>, vector<6x8xbf16>, vector<6x6xf32> -> vector<6x6xf32>
    %47 = arith.addf %46, %21 : vector<6x6xf32>
    %cst_20 = arith.constant dense<0xFF800000> : vector<6xf32>
    %48 = vector.multi_reduction <maximumf>, %47, %cst_20 [1] : vector<6x6xf32> to vector<6xf32>
    %49 = vector.shape_cast %48 : vector<6xf32> to vector<6x1xf32>
    %50 = vector.broadcast %49 : vector<6x1xf32> to vector<6x6xf32>
    %51 = arith.subf %47, %50 : vector<6x6xf32>
    %52 = math.exp %51 : vector<6x6xf32>
    %cst_21 = arith.constant dense<0.000000e+00> : vector<6xf32>
    %53 = vector.multi_reduction <add>, %52, %cst_21 [1] : vector<6x6xf32> to vector<6xf32>
    %54 = vector.shape_cast %53 : vector<6xf32> to vector<6x1xf32>
    %55 = tpu.reciprocal %54 {approx = true} : vector<6x1xf32> -> vector<6x1xf32>
    %56 = vector.extract_strided_slice %13 {offsets = [0, 8], sizes = [6, 8], strides = [1, 1]} : vector<6x32xf32> to vector<6x8xf32>
    %57 = arith.truncf %52 : vector<6x6xf32> to vector<6x6xbf16>
    %58 = arith.truncf %56 : vector<6x8xf32> to vector<6x8xbf16>
    %cst_22 = arith.constant dense<0.000000e+00> : vector<6x8xf32>
    %59 = tpu.matmul %57, %58, %cst_22 {dimension_numbers = #tpu.dot_dimension_numbers<[1], [0], [0], [1], [0, 0, 1, 1], [], []>} : vector<6x6xbf16>, vector<6x8xbf16>, vector<6x8xf32> -> vector<6x8xf32>
    %60 = vector.broadcast %55 : vector<6x1xf32> to vector<6x8xf32>
    %61 = arith.mulf %59, %60 : vector<6x8xf32>
    %62 = vector.extract_strided_slice %11 {offsets = [0, 16], sizes = [6, 8], strides = [1, 1]} : vector<6x32xf32> to vector<6x8xf32>
    %63 = arith.truncf %62 : vector<6x8xf32> to vector<6x8xbf16>
    %64 = vector.extract_strided_slice %12 {offsets = [0, 16], sizes = [6, 8], strides = [1, 1]} : vector<6x32xf32> to vector<6x8xf32>
    %65 = arith.truncf %64 : vector<6x8xf32> to vector<6x8xbf16>
    %cst_23 = arith.constant dense<0.000000e+00> : vector<6x6xf32>
    %66 = tpu.matmul %63, %65, %cst_23 {dimension_numbers = #tpu.dot_dimension_numbers<[1], [1], [0], [0], [0, 0, 1, 0], [], []>} : vector<6x8xbf16>, vector<6x8xbf16>, vector<6x6xf32> -> vector<6x6xf32>
    %67 = arith.addf %66, %21 : vector<6x6xf32>
    %cst_24 = arith.constant dense<0xFF800000> : vector<6xf32>
    %68 = vector.multi_reduction <maximumf>, %67, %cst_24 [1] : vector<6x6xf32> to vector<6xf32>
    %69 = vector.shape_cast %68 : vector<6xf32> to vector<6x1xf32>
    %70 = vector.broadcast %69 : vector<6x1xf32> to vector<6x6xf32>
    %71 = arith.subf %67, %70 : vector<6x6xf32>
    %72 = math.exp %71 : vector<6x6xf32>
    %cst_25 = arith.constant dense<0.000000e+00> : vector<6xf32>
    %73 = vector.multi_reduction <add>, %72, %cst_25 [1] : vector<6x6xf32> to vector<6xf32>
    %74 = vector.shape_cast %73 : vector<6xf32> to vector<6x1xf32>
    %75 = tpu.reciprocal %74 {approx = true} : vector<6x1xf32> -> vector<6x1xf32>
    %76 = vector.extract_strided_slice %13 {offsets = [0, 16], sizes = [6, 8], strides = [1, 1]} : vector<6x32xf32> to vector<6x8xf32>
    %77 = arith.truncf %72 : vector<6x6xf32> to vector<6x6xbf16>
    %78 = arith.truncf %76 : vector<6x8xf32> to vector<6x8xbf16>
    %cst_26 = arith.constant dense<0.000000e+00> : vector<6x8xf32>
    %79 = tpu.matmul %77, %78, %cst_26 {dimension_numbers = #tpu.dot_dimension_numbers<[1], [0], [0], [1], [0, 0, 1, 1], [], []>} : vector<6x6xbf16>, vector<6x8xbf16>, vector<6x8xf32> -> vector<6x8xf32>
    %80 = vector.broadcast %75 : vector<6x1xf32> to vector<6x8xf32>
    %81 = arith.mulf %79, %80 : vector<6x8xf32>
    %82 = vector.extract_strided_slice %11 {offsets = [0, 24], sizes = [6, 8], strides = [1, 1]} : vector<6x32xf32> to vector<6x8xf32>
    %83 = arith.truncf %82 : vector<6x8xf32> to vector<6x8xbf16>
    %84 = vector.extract_strided_slice %12 {offsets = [0, 24], sizes = [6, 8], strides = [1, 1]} : vector<6x32xf32> to vector<6x8xf32>
    %85 = arith.truncf %84 : vector<6x8xf32> to vector<6x8xbf16>
    %cst_27 = arith.constant dense<0.000000e+00> : vector<6x6xf32>
    %86 = tpu.matmul %83, %85, %cst_27 {dimension_numbers = #tpu.dot_dimension_numbers<[1], [1], [0], [0], [0, 0, 1, 0], [], []>} : vector<6x8xbf16>, vector<6x8xbf16>, vector<6x6xf32> -> vector<6x6xf32>
    %87 = arith.addf %86, %21 : vector<6x6xf32>
    %cst_28 = arith.constant dense<0xFF800000> : vector<6xf32>
    %88 = vector.multi_reduction <maximumf>, %87, %cst_28 [1] : vector<6x6xf32> to vector<6xf32>
    %89 = vector.shape_cast %88 : vector<6xf32> to vector<6x1xf32>
    %90 = vector.broadcast %89 : vector<6x1xf32> to vector<6x6xf32>
    %91 = arith.subf %87, %90 : vector<6x6xf32>
    %92 = math.exp %91 : vector<6x6xf32>
    %cst_29 = arith.constant dense<0.000000e+00> : vector<6xf32>
    %93 = vector.multi_reduction <add>, %92, %cst_29 [1] : vector<6x6xf32> to vector<6xf32>
    %94 = vector.shape_cast %93 : vector<6xf32> to vector<6x1xf32>
    %95 = tpu.reciprocal %94 {approx = true} : vector<6x1xf32> -> vector<6x1xf32>
    %96 = vector.extract_strided_slice %13 {offsets = [0, 24], sizes = [6, 8], strides = [1, 1]} : vector<6x32xf32> to vector<6x8xf32>
    %97 = arith.truncf %92 : vector<6x6xf32> to vector<6x6xbf16>
    %98 = arith.truncf %96 : vector<6x8xf32> to vector<6x8xbf16>
    %cst_30 = arith.constant dense<0.000000e+00> : vector<6x8xf32>
    %99 = tpu.matmul %97, %98, %cst_30 {dimension_numbers = #tpu.dot_dimension_numbers<[1], [0], [0], [1], [0, 0, 1, 1], [], []>} : vector<6x6xbf16>, vector<6x8xbf16>, vector<6x8xf32> -> vector<6x8xf32>
    %100 = vector.broadcast %95 : vector<6x1xf32> to vector<6x8xf32>
    %101 = arith.mulf %99, %100 : vector<6x8xf32>
    %102 = tpu.concatenate %41, %61, %81, %101 in 1 : vector<6x8xf32>, vector<6x8xf32>, vector<6x8xf32>, vector<6x8xf32> -> vector<6x32xf32>
    %103 = arith.truncf %102 : vector<6x32xf32> to vector<6x32xbf16>
    %cst_31 = arith.constant dense<0.000000e+00> : vector<6x32xf32>
    %104 = tpu.matmul %103, %14, %cst_31 {dimension_numbers = #tpu.dot_dimension_numbers<[1], [0], [0], [1], [0, 0, 1, 1], [], []>} : vector<6x32xbf16>, vector<32x32xbf16>, vector<6x32xf32> -> vector<6x32xf32>
    %105 = vector.broadcast %15 : vector<1x32xf32> to vector<6x32xf32>
    %106 = arith.addf %104, %105 : vector<6x32xf32>
    %107 = arith.addf %2, %106 : vector<6x32xf32>
    %c0_32 = arith.constant 0 : index
    %c0_33 = arith.constant 0 : index
    %108 = vector.load %arg7[%c0_32, %c0_33] : memref<1x32xf32, #tpu.memory_space<vmem>>, vector<1x32xf32>
    %c0_34 = arith.constant 0 : index
    %c0_35 = arith.constant 0 : index
    %109 = vector.load %arg8[%c0_34, %c0_35] : memref<1x32xf32, #tpu.memory_space<vmem>>, vector<1x32xf32>
    %cst_36 = arith.constant dense<0.000000e+00> : vector<6xf32>
    %110 = vector.multi_reduction <add>, %107, %cst_36 [1] : vector<6x32xf32> to vector<6xf32>
    %111 = vector.shape_cast %110 : vector<6xf32> to vector<6x1xf32>
    %cst_37 = arith.constant 3.200000e+01 : f32
    %112 = vector.broadcast %cst_37 : f32 to vector<6x1xf32>
    %113 = arith.divf %111, %112 : vector<6x1xf32>
    %114 = vector.broadcast %113 : vector<6x1xf32> to vector<6x32xf32>
    %115 = arith.subf %107, %114 : vector<6x32xf32>
    %116 = arith.mulf %115, %115 : vector<6x32xf32>
    %cst_38 = arith.constant dense<0.000000e+00> : vector<6xf32>
    %117 = vector.multi_reduction <add>, %116, %cst_38 [1] : vector<6x32xf32> to vector<6xf32>
    %118 = vector.shape_cast %117 : vector<6xf32> to vector<6x1xf32>
    %cst_39 = arith.constant 3.200000e+01 : f32
    %119 = vector.broadcast %cst_39 : f32 to vector<6x1xf32>
    %120 = arith.divf %118, %119 : vector<6x1xf32>
    %cst_40 = arith.constant 9.99999974E-6 : f32
    %121 = vector.broadcast %cst_40 : f32 to vector<6x1xf32>
    %122 = arith.addf %120, %121 : vector<6x1xf32>
    %123 = math.rsqrt %122 : vector<6x1xf32>
    %124 = vector.broadcast %123 : vector<6x1xf32> to vector<6x32xf32>
    %125 = arith.mulf %115, %124 : vector<6x32xf32>
    %126 = vector.broadcast %108 : vector<1x32xf32> to vector<6x32xf32>
    %127 = arith.mulf %125, %126 : vector<6x32xf32>
    %128 = vector.broadcast %109 : vector<1x32xf32> to vector<6x32xf32>
    %129 = arith.addf %127, %128 : vector<6x32xf32>
    %c0_41 = arith.constant 0 : index
    %c0_42 = arith.constant 0 : index
    %130 = vector.load %arg9[%c0_41, %c0_42] : memref<32x32xbf16, #tpu.memory_space<vmem>>, vector<32x32xbf16>
    %131 = arith.truncf %129 : vector<6x32xf32> to vector<6x32xbf16>
    %cst_43 = arith.constant dense<0.000000e+00> : vector<6x32xf32>
    %132 = tpu.matmul %131, %130, %cst_43 {dimension_numbers = #tpu.dot_dimension_numbers<[1], [0], [0], [1], [0, 0, 1, 1], [], []>} : vector<6x32xbf16>, vector<32x32xbf16>, vector<6x32xf32> -> vector<6x32xf32>
    %c0_44 = arith.constant 0 : index
    %c0_45 = arith.constant 0 : index
    %133 = vector.load %arg10[%c0_44, %c0_45] : memref<1x32xf32, #tpu.memory_space<vmem>>, vector<1x32xf32>
    %134 = vector.broadcast %133 : vector<1x32xf32> to vector<6x32xf32>
    %135 = arith.addf %132, %134 : vector<6x32xf32>
    %c0_46 = arith.constant 0 : index
    %c0_47 = arith.constant 0 : index
    %136 = vector.load %arg11[%c0_46, %c0_47] : memref<32x64xbf16, #tpu.memory_space<vmem>>, vector<32x64xbf16>
    %cst_48 = arith.constant dense<0.000000e+00> : vector<8x64xf32>
    %137 = tpu.matmul %4, %136, %cst_48 {dimension_numbers = #tpu.dot_dimension_numbers<[1], [0], [0], [1], [0, 0, 1, 1], [], []>} : vector<8x32xbf16>, vector<32x64xbf16>, vector<8x64xf32> -> vector<8x64xf32>
    %c0_49 = arith.constant 0 : index
    %c0_50 = arith.constant 0 : index
    %138 = vector.load %arg12[%c0_49, %c0_50] : memref<1x64xf32, #tpu.memory_space<vmem>>, vector<1x64xf32>
    %139 = vector.broadcast %138 : vector<1x64xf32> to vector<8x64xf32>
    %140 = arith.addf %137, %139 : vector<8x64xf32>
    %141 = vector.extract_strided_slice %140 {offsets = [0, 0], sizes = [8, 32], strides = [1, 1]} : vector<8x64xf32> to vector<8x32xf32>
    %142 = vector.extract_strided_slice %140 {offsets = [0, 32], sizes = [8, 32], strides = [1, 1]} : vector<8x64xf32> to vector<8x32xf32>
    %c0_51 = arith.constant 0 : index
    %c0_52 = arith.constant 0 : index
    %143 = vector.load %arg13[%c0_51, %c0_52] : memref<32x32xbf16, #tpu.memory_space<vmem>>, vector<32x32xbf16>
    %c0_53 = arith.constant 0 : index
    %c0_54 = arith.constant 0 : index
    %144 = vector.load %arg14[%c0_53, %c0_54] : memref<1x32xf32, #tpu.memory_space<vmem>>, vector<1x32xf32>
    %145 = vector.extract_strided_slice %135 {offsets = [0, 0], sizes = [6, 8], strides = [1, 1]} : vector<6x32xf32> to vector<6x8xf32>
    %146 = arith.truncf %145 : vector<6x8xf32> to vector<6x8xbf16>
    %147 = vector.extract_strided_slice %141 {offsets = [0, 0], sizes = [8, 8], strides = [1, 1]} : vector<8x32xf32> to vector<8x8xf32>
    %148 = arith.truncf %147 : vector<8x8xf32> to vector<8x8xbf16>
    %cst_55 = arith.constant dense<0.000000e+00> : vector<6x8xf32>
    %149 = tpu.matmul %146, %148, %cst_55 {dimension_numbers = #tpu.dot_dimension_numbers<[1], [1], [0], [0], [0, 0, 1, 0], [], []>} : vector<6x8xbf16>, vector<8x8xbf16>, vector<6x8xf32> -> vector<6x8xf32>
    %cst_56 = arith.constant dense<0xFF800000> : vector<6xf32>
    %150 = vector.multi_reduction <maximumf>, %149, %cst_56 [1] : vector<6x8xf32> to vector<6xf32>
    %151 = vector.shape_cast %150 : vector<6xf32> to vector<6x1xf32>
    %152 = vector.broadcast %151 : vector<6x1xf32> to vector<6x8xf32>
    %153 = arith.subf %149, %152 : vector<6x8xf32>
    %154 = math.exp %153 : vector<6x8xf32>
    %cst_57 = arith.constant dense<0.000000e+00> : vector<6xf32>
    %155 = vector.multi_reduction <add>, %154, %cst_57 [1] : vector<6x8xf32> to vector<6xf32>
    %156 = vector.shape_cast %155 : vector<6xf32> to vector<6x1xf32>
    %157 = tpu.reciprocal %156 {approx = true} : vector<6x1xf32> -> vector<6x1xf32>
    %158 = vector.extract_strided_slice %142 {offsets = [0, 0], sizes = [8, 8], strides = [1, 1]} : vector<8x32xf32> to vector<8x8xf32>
    %159 = arith.truncf %154 : vector<6x8xf32> to vector<6x8xbf16>
    %160 = arith.truncf %158 : vector<8x8xf32> to vector<8x8xbf16>
    %cst_58 = arith.constant dense<0.000000e+00> : vector<6x8xf32>
    %161 = tpu.matmul %159, %160, %cst_58 {dimension_numbers = #tpu.dot_dimension_numbers<[1], [0], [0], [1], [0, 0, 1, 1], [], []>} : vector<6x8xbf16>, vector<8x8xbf16>, vector<6x8xf32> -> vector<6x8xf32>
    %162 = vector.broadcast %157 : vector<6x1xf32> to vector<6x8xf32>
    %163 = arith.mulf %161, %162 : vector<6x8xf32>
    %164 = vector.extract_strided_slice %135 {offsets = [0, 8], sizes = [6, 8], strides = [1, 1]} : vector<6x32xf32> to vector<6x8xf32>
    %165 = arith.truncf %164 : vector<6x8xf32> to vector<6x8xbf16>
    %166 = vector.extract_strided_slice %141 {offsets = [0, 8], sizes = [8, 8], strides = [1, 1]} : vector<8x32xf32> to vector<8x8xf32>
    %167 = arith.truncf %166 : vector<8x8xf32> to vector<8x8xbf16>
    %cst_59 = arith.constant dense<0.000000e+00> : vector<6x8xf32>
    %168 = tpu.matmul %165, %167, %cst_59 {dimension_numbers = #tpu.dot_dimension_numbers<[1], [1], [0], [0], [0, 0, 1, 0], [], []>} : vector<6x8xbf16>, vector<8x8xbf16>, vector<6x8xf32> -> vector<6x8xf32>
    %cst_60 = arith.constant dense<0xFF800000> : vector<6xf32>
    %169 = vector.multi_reduction <maximumf>, %168, %cst_60 [1] : vector<6x8xf32> to vector<6xf32>
    %170 = vector.shape_cast %169 : vector<6xf32> to vector<6x1xf32>
    %171 = vector.broadcast %170 : vector<6x1xf32> to vector<6x8xf32>
    %172 = arith.subf %168, %171 : vector<6x8xf32>
    %173 = math.exp %172 : vector<6x8xf32>
    %cst_61 = arith.constant dense<0.000000e+00> : vector<6xf32>
    %174 = vector.multi_reduction <add>, %173, %cst_61 [1] : vector<6x8xf32> to vector<6xf32>
    %175 = vector.shape_cast %174 : vector<6xf32> to vector<6x1xf32>
    %176 = tpu.reciprocal %175 {approx = true} : vector<6x1xf32> -> vector<6x1xf32>
    %177 = vector.extract_strided_slice %142 {offsets = [0, 8], sizes = [8, 8], strides = [1, 1]} : vector<8x32xf32> to vector<8x8xf32>
    %178 = arith.truncf %173 : vector<6x8xf32> to vector<6x8xbf16>
    %179 = arith.truncf %177 : vector<8x8xf32> to vector<8x8xbf16>
    %cst_62 = arith.constant dense<0.000000e+00> : vector<6x8xf32>
    %180 = tpu.matmul %178, %179, %cst_62 {dimension_numbers = #tpu.dot_dimension_numbers<[1], [0], [0], [1], [0, 0, 1, 1], [], []>} : vector<6x8xbf16>, vector<8x8xbf16>, vector<6x8xf32> -> vector<6x8xf32>
    %181 = vector.broadcast %176 : vector<6x1xf32> to vector<6x8xf32>
    %182 = arith.mulf %180, %181 : vector<6x8xf32>
    %183 = vector.extract_strided_slice %135 {offsets = [0, 16], sizes = [6, 8], strides = [1, 1]} : vector<6x32xf32> to vector<6x8xf32>
    %184 = arith.truncf %183 : vector<6x8xf32> to vector<6x8xbf16>
    %185 = vector.extract_strided_slice %141 {offsets = [0, 16], sizes = [8, 8], strides = [1, 1]} : vector<8x32xf32> to vector<8x8xf32>
    %186 = arith.truncf %185 : vector<8x8xf32> to vector<8x8xbf16>
    %cst_63 = arith.constant dense<0.000000e+00> : vector<6x8xf32>
    %187 = tpu.matmul %184, %186, %cst_63 {dimension_numbers = #tpu.dot_dimension_numbers<[1], [1], [0], [0], [0, 0, 1, 0], [], []>} : vector<6x8xbf16>, vector<8x8xbf16>, vector<6x8xf32> -> vector<6x8xf32>
    %cst_64 = arith.constant dense<0xFF800000> : vector<6xf32>
    %188 = vector.multi_reduction <maximumf>, %187, %cst_64 [1] : vector<6x8xf32> to vector<6xf32>
    %189 = vector.shape_cast %188 : vector<6xf32> to vector<6x1xf32>
    %190 = vector.broadcast %189 : vector<6x1xf32> to vector<6x8xf32>
    %191 = arith.subf %187, %190 : vector<6x8xf32>
    %192 = math.exp %191 : vector<6x8xf32>
    %cst_65 = arith.constant dense<0.000000e+00> : vector<6xf32>
    %193 = vector.multi_reduction <add>, %192, %cst_65 [1] : vector<6x8xf32> to vector<6xf32>
    %194 = vector.shape_cast %193 : vector<6xf32> to vector<6x1xf32>
    %195 = tpu.reciprocal %194 {approx = true} : vector<6x1xf32> -> vector<6x1xf32>
    %196 = vector.extract_strided_slice %142 {offsets = [0, 16], sizes = [8, 8], strides = [1, 1]} : vector<8x32xf32> to vector<8x8xf32>
    %197 = arith.truncf %192 : vector<6x8xf32> to vector<6x8xbf16>
    %198 = arith.truncf %196 : vector<8x8xf32> to vector<8x8xbf16>
    %cst_66 = arith.constant dense<0.000000e+00> : vector<6x8xf32>
    %199 = tpu.matmul %197, %198, %cst_66 {dimension_numbers = #tpu.dot_dimension_numbers<[1], [0], [0], [1], [0, 0, 1, 1], [], []>} : vector<6x8xbf16>, vector<8x8xbf16>, vector<6x8xf32> -> vector<6x8xf32>
    %200 = vector.broadcast %195 : vector<6x1xf32> to vector<6x8xf32>
    %201 = arith.mulf %199, %200 : vector<6x8xf32>
    %202 = vector.extract_strided_slice %135 {offsets = [0, 24], sizes = [6, 8], strides = [1, 1]} : vector<6x32xf32> to vector<6x8xf32>
    %203 = arith.truncf %202 : vector<6x8xf32> to vector<6x8xbf16>
    %204 = vector.extract_strided_slice %141 {offsets = [0, 24], sizes = [8, 8], strides = [1, 1]} : vector<8x32xf32> to vector<8x8xf32>
    %205 = arith.truncf %204 : vector<8x8xf32> to vector<8x8xbf16>
    %cst_67 = arith.constant dense<0.000000e+00> : vector<6x8xf32>
    %206 = tpu.matmul %203, %205, %cst_67 {dimension_numbers = #tpu.dot_dimension_numbers<[1], [1], [0], [0], [0, 0, 1, 0], [], []>} : vector<6x8xbf16>, vector<8x8xbf16>, vector<6x8xf32> -> vector<6x8xf32>
    %cst_68 = arith.constant dense<0xFF800000> : vector<6xf32>
    %207 = vector.multi_reduction <maximumf>, %206, %cst_68 [1] : vector<6x8xf32> to vector<6xf32>
    %208 = vector.shape_cast %207 : vector<6xf32> to vector<6x1xf32>
    %209 = vector.broadcast %208 : vector<6x1xf32> to vector<6x8xf32>
    %210 = arith.subf %206, %209 : vector<6x8xf32>
    %211 = math.exp %210 : vector<6x8xf32>
    %cst_69 = arith.constant dense<0.000000e+00> : vector<6xf32>
    %212 = vector.multi_reduction <add>, %211, %cst_69 [1] : vector<6x8xf32> to vector<6xf32>
    %213 = vector.shape_cast %212 : vector<6xf32> to vector<6x1xf32>
    %214 = tpu.reciprocal %213 {approx = true} : vector<6x1xf32> -> vector<6x1xf32>
    %215 = vector.extract_strided_slice %142 {offsets = [0, 24], sizes = [8, 8], strides = [1, 1]} : vector<8x32xf32> to vector<8x8xf32>
    %216 = arith.truncf %211 : vector<6x8xf32> to vector<6x8xbf16>
    %217 = arith.truncf %215 : vector<8x8xf32> to vector<8x8xbf16>
    %cst_70 = arith.constant dense<0.000000e+00> : vector<6x8xf32>
    %218 = tpu.matmul %216, %217, %cst_70 {dimension_numbers = #tpu.dot_dimension_numbers<[1], [0], [0], [1], [0, 0, 1, 1], [], []>} : vector<6x8xbf16>, vector<8x8xbf16>, vector<6x8xf32> -> vector<6x8xf32>
    %219 = vector.broadcast %214 : vector<6x1xf32> to vector<6x8xf32>
    %220 = arith.mulf %218, %219 : vector<6x8xf32>
    %221 = tpu.concatenate %163, %182, %201, %220 in 1 : vector<6x8xf32>, vector<6x8xf32>, vector<6x8xf32>, vector<6x8xf32> -> vector<6x32xf32>
    %222 = arith.truncf %221 : vector<6x32xf32> to vector<6x32xbf16>
    %cst_71 = arith.constant dense<0.000000e+00> : vector<6x32xf32>
    %223 = tpu.matmul %222, %143, %cst_71 {dimension_numbers = #tpu.dot_dimension_numbers<[1], [0], [0], [1], [0, 0, 1, 1], [], []>} : vector<6x32xbf16>, vector<32x32xbf16>, vector<6x32xf32> -> vector<6x32xf32>
    %224 = vector.broadcast %144 : vector<1x32xf32> to vector<6x32xf32>
    %225 = arith.addf %223, %224 : vector<6x32xf32>
    %226 = arith.addf %129, %225 : vector<6x32xf32>
    %c0_72 = arith.constant 0 : index
    %c0_73 = arith.constant 0 : index
    %227 = vector.load %arg15[%c0_72, %c0_73] : memref<1x32xf32, #tpu.memory_space<vmem>>, vector<1x32xf32>
    %c0_74 = arith.constant 0 : index
    %c0_75 = arith.constant 0 : index
    %228 = vector.load %arg16[%c0_74, %c0_75] : memref<1x32xf32, #tpu.memory_space<vmem>>, vector<1x32xf32>
    %cst_76 = arith.constant dense<0.000000e+00> : vector<6xf32>
    %229 = vector.multi_reduction <add>, %226, %cst_76 [1] : vector<6x32xf32> to vector<6xf32>
    %230 = vector.shape_cast %229 : vector<6xf32> to vector<6x1xf32>
    %cst_77 = arith.constant 3.200000e+01 : f32
    %231 = vector.broadcast %cst_77 : f32 to vector<6x1xf32>
    %232 = arith.divf %230, %231 : vector<6x1xf32>
    %233 = vector.broadcast %232 : vector<6x1xf32> to vector<6x32xf32>
    %234 = arith.subf %226, %233 : vector<6x32xf32>
    %235 = arith.mulf %234, %234 : vector<6x32xf32>
    %cst_78 = arith.constant dense<0.000000e+00> : vector<6xf32>
    %236 = vector.multi_reduction <add>, %235, %cst_78 [1] : vector<6x32xf32> to vector<6xf32>
    %237 = vector.shape_cast %236 : vector<6xf32> to vector<6x1xf32>
    %cst_79 = arith.constant 3.200000e+01 : f32
    %238 = vector.broadcast %cst_79 : f32 to vector<6x1xf32>
    %239 = arith.divf %237, %238 : vector<6x1xf32>
    %cst_80 = arith.constant 9.99999974E-6 : f32
    %240 = vector.broadcast %cst_80 : f32 to vector<6x1xf32>
    %241 = arith.addf %239, %240 : vector<6x1xf32>
    %242 = math.rsqrt %241 : vector<6x1xf32>
    %243 = vector.broadcast %242 : vector<6x1xf32> to vector<6x32xf32>
    %244 = arith.mulf %234, %243 : vector<6x32xf32>
    %245 = vector.broadcast %227 : vector<1x32xf32> to vector<6x32xf32>
    %246 = arith.mulf %244, %245 : vector<6x32xf32>
    %247 = vector.broadcast %228 : vector<1x32xf32> to vector<6x32xf32>
    %248 = arith.addf %246, %247 : vector<6x32xf32>
    %c0_81 = arith.constant 0 : index
    %c0_82 = arith.constant 0 : index
    %249 = vector.load %arg17[%c0_81, %c0_82] : memref<32x64xbf16, #tpu.memory_space<vmem>>, vector<32x64xbf16>
    %250 = arith.truncf %248 : vector<6x32xf32> to vector<6x32xbf16>
    %cst_83 = arith.constant dense<0.000000e+00> : vector<6x64xf32>
    %251 = tpu.matmul %250, %249, %cst_83 {dimension_numbers = #tpu.dot_dimension_numbers<[1], [0], [0], [1], [0, 0, 1, 1], [], []>} : vector<6x32xbf16>, vector<32x64xbf16>, vector<6x64xf32> -> vector<6x64xf32>
    %c0_84 = arith.constant 0 : index
    %c0_85 = arith.constant 0 : index
    %252 = vector.load %arg18[%c0_84, %c0_85] : memref<1x64xf32, #tpu.memory_space<vmem>>, vector<1x64xf32>
    %253 = vector.broadcast %252 : vector<1x64xf32> to vector<6x64xf32>
    %254 = arith.addf %251, %253 : vector<6x64xf32>
    %cst_86 = arith.constant 0.000000e+00 : f32
    %255 = vector.broadcast %cst_86 : f32 to vector<6x64xf32>
    %256 = arith.maximumf %254, %255 : vector<6x64xf32>
    %c0_87 = arith.constant 0 : index
    %c0_88 = arith.constant 0 : index
    %257 = vector.load %arg19[%c0_87, %c0_88] : memref<64x32xbf16, #tpu.memory_space<vmem>>, vector<64x32xbf16>
    %258 = arith.truncf %256 : vector<6x64xf32> to vector<6x64xbf16>
    %cst_89 = arith.constant dense<0.000000e+00> : vector<6x32xf32>
    %259 = tpu.matmul %258, %257, %cst_89 {dimension_numbers = #tpu.dot_dimension_numbers<[1], [0], [0], [1], [0, 0, 1, 1], [], []>} : vector<6x64xbf16>, vector<64x32xbf16>, vector<6x32xf32> -> vector<6x32xf32>
    %c0_90 = arith.constant 0 : index
    %c0_91 = arith.constant 0 : index
    %260 = vector.load %arg20[%c0_90, %c0_91] : memref<1x32xf32, #tpu.memory_space<vmem>>, vector<1x32xf32>
    %261 = vector.broadcast %260 : vector<1x32xf32> to vector<6x32xf32>
    %262 = arith.addf %259, %261 : vector<6x32xf32>
    %263 = arith.addf %248, %262 : vector<6x32xf32>
    %c0_92 = arith.constant 0 : index
    %c0_93 = arith.constant 0 : index
    %264 = vector.load %arg21[%c0_92, %c0_93] : memref<1x32xf32, #tpu.memory_space<vmem>>, vector<1x32xf32>
    %c0_94 = arith.constant 0 : index
    %c0_95 = arith.constant 0 : index
    %265 = vector.load %arg22[%c0_94, %c0_95] : memref<1x32xf32, #tpu.memory_space<vmem>>, vector<1x32xf32>
    %cst_96 = arith.constant dense<0.000000e+00> : vector<6xf32>
    %266 = vector.multi_reduction <add>, %263, %cst_96 [1] : vector<6x32xf32> to vector<6xf32>
    %267 = vector.shape_cast %266 : vector<6xf32> to vector<6x1xf32>
    %cst_97 = arith.constant 3.200000e+01 : f32
    %268 = vector.broadcast %cst_97 : f32 to vector<6x1xf32>
    %269 = arith.divf %267, %268 : vector<6x1xf32>
    %270 = vector.broadcast %269 : vector<6x1xf32> to vector<6x32xf32>
    %271 = arith.subf %263, %270 : vector<6x32xf32>
    %272 = arith.mulf %271, %271 : vector<6x32xf32>
    %cst_98 = arith.constant dense<0.000000e+00> : vector<6xf32>
    %273 = vector.multi_reduction <add>, %272, %cst_98 [1] : vector<6x32xf32> to vector<6xf32>
    %274 = vector.shape_cast %273 : vector<6xf32> to vector<6x1xf32>
    %cst_99 = arith.constant 3.200000e+01 : f32
    %275 = vector.broadcast %cst_99 : f32 to vector<6x1xf32>
    %276 = arith.divf %274, %275 : vector<6x1xf32>
    %cst_100 = arith.constant 9.99999974E-6 : f32
    %277 = vector.broadcast %cst_100 : f32 to vector<6x1xf32>
    %278 = arith.addf %276, %277 : vector<6x1xf32>
    %279 = math.rsqrt %278 : vector<6x1xf32>
    %280 = vector.broadcast %279 : vector<6x1xf32> to vector<6x32xf32>
    %281 = arith.mulf %271, %280 : vector<6x32xf32>
    %282 = vector.broadcast %264 : vector<1x32xf32> to vector<6x32xf32>
    %283 = arith.mulf %281, %282 : vector<6x32xf32>
    %284 = vector.broadcast %265 : vector<1x32xf32> to vector<6x32xf32>
    %285 = arith.addf %283, %284 : vector<6x32xf32>
    %286 = arith.truncf %285 : vector<6x32xf32> to vector<6x32xbf16>
    %c0_101 = arith.constant 0 : index
    %c0_102 = arith.constant 0 : index
    %c0_103 = arith.constant 0 : index
    %287 = vector.load %arg23[%c0_101, %c0_102, %c0_103] : memref<1x6x32xbf16, #tpu.memory_space<vmem>>, vector<1x6x32xbf16>
    %288 = vector.shape_cast %287 : vector<1x6x32xbf16> to vector<6x32xbf16>
    %289 = vector.shape_cast %286 : vector<6x32xbf16> to vector<1x6x32xbf16>
    tpu.vector_store %arg23[%c0_101, %c0_102, %c0_103], %289 {strides = array<i32>} : memref<1x6x32xbf16, #tpu.memory_space<vmem>>, vector<1x6x32xbf16>,
    return
  }
  func.func @transform_0(%arg0: i32) -> (i32, i32, i32) {
    %c0_i32 = arith.constant 0 : i32
    %c0_i32_0 = arith.constant 0 : i32
    %c0_i32_1 = arith.constant 0 : i32
    return %arg0, %c0_i32, %c0_i32_0 : i32, i32, i32
  }
  func.func @transform_1(%arg0: i32) -> (i32, i32, i32) {
    %c0_i32 = arith.constant 0 : i32
    %c0_i32_0 = arith.constant 0 : i32
    %c0_i32_1 = arith.constant 0 : i32
    return %arg0, %c0_i32, %c0_i32_0 : i32, i32, i32
  }
  func.func @transform_2(%arg0: i32) -> (i32, i32) {
    %c0_i32 = arith.constant 0 : i32
    %c0_i32_0 = arith.constant 0 : i32
    %c0_i32_1 = arith.constant 0 : i32
    return %c0_i32, %c0_i32_0 : i32, i32
  }
  func.func @transform_3(%arg0: i32) -> (i32, i32) {
    %c0_i32 = arith.constant 0 : i32
    %c0_i32_0 = arith.constant 0 : i32
    %c0_i32_1 = arith.constant 0 : i32
    return %c0_i32, %c0_i32_0 : i32, i32
  }
  func.func @transform_4(%arg0: i32) -> (i32, i32) {
    %c0_i32 = arith.constant 0 : i32
    %c0_i32_0 = arith.constant 0 : i32
    %c0_i32_1 = arith.constant 0 : i32
    return %c0_i32, %c0_i32_0 : i32, i32
  }
  func.func @transform_5(%arg0: i32) -> (i32, i32) {
    %c0_i32 = arith.constant 0 : i32
    %c0_i32_0 = arith.constant 0 : i32
    %c0_i32_1 = arith.constant 0 : i32
    return %c0_i32, %c0_i32_0 : i32, i32
  }
  func.func @transform_6(%arg0: i32) -> (i32, i32) {
    %c0_i32 = arith.constant 0 : i32
    %c0_i32_0 = arith.constant 0 : i32
    %c0_i32_1 = arith.constant 0 : i32
    return %c0_i32, %c0_i32_0 : i32, i32
  }
  func.func @transform_7(%arg0: i32) -> (i32, i32) {
    %c0_i32 = arith.constant 0 : i32
    %c0_i32_0 = arith.constant 0 : i32
    %c0_i32_1 = arith.constant 0 : i32
    return %c0_i32, %c0_i32_0 : i32, i32
  }
  func.func @transform_8(%arg0: i32) -> (i32, i32) {
    %c0_i32 = arith.constant 0 : i32
    %c0_i32_0 = arith.constant 0 : i32
    %c0_i32_1 = arith.constant 0 : i32
    return %c0_i32, %c0_i32_0 : i32, i32
  }
  func.func @transform_9(%arg0: i32) -> (i32, i32) {
    %c0_i32 = arith.constant 0 : i32
    %c0_i32_0 = arith.constant 0 : i32
    %c0_i32_1 = arith.constant 0 : i32
    return %c0_i32, %c0_i32_0 : i32, i32
  }
  func.func @transform_10(%arg0: i32) -> (i32, i32) {
    %c0_i32 = arith.constant 0 : i32
    %c0_i32_0 = arith.constant 0 : i32
    %c0_i32_1 = arith.constant 0 : i32
    return %c0_i32, %c0_i32_0 : i32, i32
  }
  func.func @transform_11(%arg0: i32) -> (i32, i32) {
    %c0_i32 = arith.constant 0 : i32
    %c0_i32_0 = arith.constant 0 : i32
    %c0_i32_1 = arith.constant 0 : i32
    return %c0_i32, %c0_i32_0 : i32, i32
  }
  func.func @transform_12(%arg0: i32) -> (i32, i32) {
    %c0_i32 = arith.constant 0 : i32
    %c0_i32_0 = arith.constant 0 : i32
    %c0_i32_1 = arith.constant 0 : i32
    return %c0_i32, %c0_i32_0 : i32, i32
  }
  func.func @transform_13(%arg0: i32) -> (i32, i32) {
    %c0_i32 = arith.constant 0 : i32
    %c0_i32_0 = arith.constant 0 : i32
    %c0_i32_1 = arith.constant 0 : i32
    return %c0_i32, %c0_i32_0 : i32, i32
  }
  func.func @transform_14(%arg0: i32) -> (i32, i32) {
    %c0_i32 = arith.constant 0 : i32
    %c0_i32_0 = arith.constant 0 : i32
    %c0_i32_1 = arith.constant 0 : i32
    return %c0_i32, %c0_i32_0 : i32, i32
  }
  func.func @transform_15(%arg0: i32) -> (i32, i32) {
    %c0_i32 = arith.constant 0 : i32
    %c0_i32_0 = arith.constant 0 : i32
    %c0_i32_1 = arith.constant 0 : i32
    return %c0_i32, %c0_i32_0 : i32, i32
  }
  func.func @transform_16(%arg0: i32) -> (i32, i32) {
    %c0_i32 = arith.constant 0 : i32
    %c0_i32_0 = arith.constant 0 : i32
    %c0_i32_1 = arith.constant 0 : i32
    return %c0_i32, %c0_i32_0 : i32, i32
  }
  func.func @transform_17(%arg0: i32) -> (i32, i32) {
    %c0_i32 = arith.constant 0 : i32
    %c0_i32_0 = arith.constant 0 : i32
    %c0_i32_1 = arith.constant 0 : i32
    return %c0_i32, %c0_i32_0 : i32, i32
  }
  func.func @transform_18(%arg0: i32) -> (i32, i32) {
    %c0_i32 = arith.constant 0 : i32
    %c0_i32_0 = arith.constant 0 : i32
    %c0_i32_1 = arith.constant 0 : i32
    return %c0_i32, %c0_i32_0 : i32, i32
  }
  func.func @transform_19(%arg0: i32) -> (i32, i32) {
    %c0_i32 = arith.constant 0 : i32
    %c0_i32_0 = arith.constant 0 : i32
    %c0_i32_1 = arith.constant 0 : i32
    return %c0_i32, %c0_i32_0 : i32, i32
  }
  func.func @transform_20(%arg0: i32) -> (i32, i32) {
    %c0_i32 = arith.constant 0 : i32
    %c0_i32_0 = arith.constant 0 : i32
    %c0_i32_1 = arith.constant 0 : i32
    return %c0_i32, %c0_i32_0 : i32, i32
  }
  func.func @transform_21(%arg0: i32) -> (i32, i32) {
    %c0_i32 = arith.constant 0 : i32
    %c0_i32_0 = arith.constant 0 : i32
    %c0_i32_1 = arith.constant 0 : i32
    return %c0_i32, %c0_i32_0 : i32, i32
  }
  func.func @transform_22(%arg0: i32) -> (i32, i32, i32) {
    %c0_i32 = arith.constant 0 : i32
    %c0_i32_0 = arith.constant 0 : i32
    %c0_i32_1 = arith.constant 0 : i32
    return %arg0, %c0_i32, %c0_i32_0 : i32, i32, i32
  }
}

module attributes {stable_mosaic.version = 11 : i64} {
  func.func @_final_kernel(%arg0: i32, %arg1: memref<1x6x32xbf16, #tpu.memory_space<vmem>>, %arg2: memref<1x32xf32, #tpu.memory_space<vmem>>, %arg3: memref<1x32xf32, #tpu.memory_space<vmem>>, %arg4: memref<32x128xbf16, #tpu.memory_space<vmem>>, %arg5: memref<1x128xf32, #tpu.memory_space<vmem>>, %arg6: memref<1x6x128xf32, #tpu.memory_space<vmem>>) attributes {dimension_semantics = [#tpu.dimension_semantics<parallel>], iteration_bounds = array<i64: 2>, scalar_prefetch = 0 : i64, scratch_operands = 0 : i64, tpu.core_type = #tpu.core_type<tc>, window_params = [{transform_indices = @transform_0, window_bounds = array<i64: 1, 6, 32>}, {pipeline_mode = #tpu.pipeline_mode<synchronous>, transform_indices = @transform_1, window_bounds = array<i64: 1, 32>}, {pipeline_mode = #tpu.pipeline_mode<synchronous>, transform_indices = @transform_2, window_bounds = array<i64: 1, 32>}, {pipeline_mode = #tpu.pipeline_mode<synchronous>, transform_indices = @transform_3, window_bounds = array<i64: 32, 128>}, {pipeline_mode = #tpu.pipeline_mode<synchronous>, transform_indices = @transform_4, window_bounds = array<i64: 1, 128>}, {transform_indices = @transform_5, window_bounds = array<i64: 1, 6, 128>}]} {
    %c0 = arith.constant 0 : index
    %c0_0 = arith.constant 0 : index
    %c0_1 = arith.constant 0 : index
    %0 = vector.load %arg1[%c0, %c0_0, %c0_1] : memref<1x6x32xbf16, #tpu.memory_space<vmem>>, vector<1x6x32xbf16>
    %1 = vector.shape_cast %0 : vector<1x6x32xbf16> to vector<6x32xbf16>
    %2 = arith.extf %1 : vector<6x32xbf16> to vector<6x32xf32>
    %c0_2 = arith.constant 0 : index
    %c0_3 = arith.constant 0 : index
    %3 = vector.load %arg2[%c0_2, %c0_3] : memref<1x32xf32, #tpu.memory_space<vmem>>, vector<1x32xf32>
    %c0_4 = arith.constant 0 : index
    %c0_5 = arith.constant 0 : index
    %4 = vector.load %arg3[%c0_4, %c0_5] : memref<1x32xf32, #tpu.memory_space<vmem>>, vector<1x32xf32>
    %cst = arith.constant dense<0.000000e+00> : vector<6xf32>
    %5 = vector.multi_reduction <add>, %2, %cst [1] : vector<6x32xf32> to vector<6xf32>
    %6 = vector.shape_cast %5 : vector<6xf32> to vector<6x1xf32>
    %cst_6 = arith.constant 3.200000e+01 : f32
    %7 = vector.broadcast %cst_6 : f32 to vector<6x1xf32>
    %8 = arith.divf %6, %7 : vector<6x1xf32>
    %9 = vector.broadcast %8 : vector<6x1xf32> to vector<6x32xf32>
    %10 = arith.subf %2, %9 : vector<6x32xf32>
    %11 = arith.mulf %10, %10 : vector<6x32xf32>
    %cst_7 = arith.constant dense<0.000000e+00> : vector<6xf32>
    %12 = vector.multi_reduction <add>, %11, %cst_7 [1] : vector<6x32xf32> to vector<6xf32>
    %13 = vector.shape_cast %12 : vector<6xf32> to vector<6x1xf32>
    %cst_8 = arith.constant 3.200000e+01 : f32
    %14 = vector.broadcast %cst_8 : f32 to vector<6x1xf32>
    %15 = arith.divf %13, %14 : vector<6x1xf32>
    %cst_9 = arith.constant 9.99999974E-6 : f32
    %16 = vector.broadcast %cst_9 : f32 to vector<6x1xf32>
    %17 = arith.addf %15, %16 : vector<6x1xf32>
    %18 = math.rsqrt %17 : vector<6x1xf32>
    %19 = vector.broadcast %18 : vector<6x1xf32> to vector<6x32xf32>
    %20 = arith.mulf %10, %19 : vector<6x32xf32>
    %21 = vector.broadcast %3 : vector<1x32xf32> to vector<6x32xf32>
    %22 = arith.mulf %20, %21 : vector<6x32xf32>
    %23 = vector.broadcast %4 : vector<1x32xf32> to vector<6x32xf32>
    %24 = arith.addf %22, %23 : vector<6x32xf32>
    %c0_10 = arith.constant 0 : index
    %c0_11 = arith.constant 0 : index
    %25 = vector.load %arg4[%c0_10, %c0_11] : memref<32x128xbf16, #tpu.memory_space<vmem>>, vector<32x128xbf16>
    %26 = arith.truncf %24 : vector<6x32xf32> to vector<6x32xbf16>
    %cst_12 = arith.constant dense<0.000000e+00> : vector<6x128xf32>
    %27 = tpu.matmul %26, %25, %cst_12 {dimension_numbers = #tpu.dot_dimension_numbers<[1], [0], [0], [1], [0, 0, 1, 1], [], []>} : vector<6x32xbf16>, vector<32x128xbf16>, vector<6x128xf32> -> vector<6x128xf32>
    %c0_13 = arith.constant 0 : index
    %c0_14 = arith.constant 0 : index
    %28 = vector.load %arg5[%c0_13, %c0_14] : memref<1x128xf32, #tpu.memory_space<vmem>>, vector<1x128xf32>
    %29 = vector.broadcast %28 : vector<1x128xf32> to vector<6x128xf32>
    %30 = arith.addf %27, %29 : vector<6x128xf32>
    %cst_15 = arith.constant dense<0xFF800000> : vector<6xf32>
    %31 = vector.multi_reduction <maximumf>, %30, %cst_15 [1] : vector<6x128xf32> to vector<6xf32>
    %32 = vector.shape_cast %31 : vector<6xf32> to vector<6x1xf32>
    %33 = vector.broadcast %32 : vector<6x1xf32> to vector<6x128xf32>
    %34 = arith.subf %30, %33 : vector<6x128xf32>
    %35 = math.exp %34 : vector<6x128xf32>
    %cst_16 = arith.constant dense<0.000000e+00> : vector<6xf32>
    %36 = vector.multi_reduction <add>, %35, %cst_16 [1] : vector<6x128xf32> to vector<6xf32>
    %37 = vector.shape_cast %36 : vector<6xf32> to vector<6x1xf32>
    %38 = vector.broadcast %37 : vector<6x1xf32> to vector<6x128xf32>
    %39 = arith.divf %35, %38 : vector<6x128xf32>
    %c0_17 = arith.constant 0 : index
    %c0_18 = arith.constant 0 : index
    %c0_19 = arith.constant 0 : index
    %40 = vector.load %arg6[%c0_17, %c0_18, %c0_19] : memref<1x6x128xf32, #tpu.memory_space<vmem>>, vector<1x6x128xf32>
    %41 = vector.shape_cast %40 : vector<1x6x128xf32> to vector<6x128xf32>
    %42 = vector.shape_cast %39 : vector<6x128xf32> to vector<1x6x128xf32>
    tpu.vector_store %arg6[%c0_17, %c0_18, %c0_19], %42 {strides = array<i32>} : memref<1x6x128xf32, #tpu.memory_space<vmem>>, vector<1x6x128xf32>,
    return
  }
  func.func @transform_0(%arg0: i32) -> (i32, i32, i32) {
    %c0_i32 = arith.constant 0 : i32
    %c0_i32_0 = arith.constant 0 : i32
    %c0_i32_1 = arith.constant 0 : i32
    return %arg0, %c0_i32, %c0_i32_0 : i32, i32, i32
  }
  func.func @transform_1(%arg0: i32) -> (i32, i32) {
    %c0_i32 = arith.constant 0 : i32
    %c0_i32_0 = arith.constant 0 : i32
    %c0_i32_1 = arith.constant 0 : i32
    return %c0_i32, %c0_i32_0 : i32, i32
  }
  func.func @transform_2(%arg0: i32) -> (i32, i32) {
    %c0_i32 = arith.constant 0 : i32
    %c0_i32_0 = arith.constant 0 : i32
    %c0_i32_1 = arith.constant 0 : i32
    return %c0_i32, %c0_i32_0 : i32, i32
  }
  func.func @transform_3(%arg0: i32) -> (i32, i32) {
    %c0_i32 = arith.constant 0 : i32
    %c0_i32_0 = arith.constant 0 : i32
    %c0_i32_1 = arith.constant 0 : i32
    return %c0_i32, %c0_i32_0 : i32, i32
  }
  func.func @transform_4(%arg0: i32) -> (i32, i32) {
    %c0_i32 = arith.constant 0 : i32
    %c0_i32_0 = arith.constant 0 : i32
    %c0_i32_1 = arith.constant 0 : i32
    return %c0_i32, %c0_i32_0 : i32, i32
  }
  func.func @transform_5(%arg0: i32) -> (i32, i32, i32) {
    %c0_i32 = arith.constant 0 : i32
    %c0_i32_0 = arith.constant 0 : i32
    %c0_i32_1 = arith.constant 0 : i32
    return %arg0, %c0_i32, %c0_i32_0 : i32, i32, i32
  }
}

</mosaic_0001>

<bundles_post_ra>
// kernel: _lambda_.9
= control target key start
LH: loop header
LB: loop body
LE: loop exit
PB: predicated region body
PF: predicated region fallthrough
CT: control target
= control target key end

     0   :  { %s472_s18 = smov 0   ;;  %s508_s0 = inlined_call_operand.vmem [shape: bf16[2,6,32], index: 0, kind: input, shape index: {}]   ;;  %s509_s1 = inlined_call_operand.vmem [shape: f32[1,32], index: 1, kind: input, shape index: {}]   ;;  %s510_s2 = inlined_call_operand.vmem [shape: f32[1,32], index: 2, kind: input, shape index: {}]   ;;  %s511_s3 = inlined_call_operand.vmem [shape: bf16[32,128], index: 3, kind: input, shape index: {}]   ;;  %s512_s4 = inlined_call_operand.vmem [shape: f32[1,128], index: 4, kind: input, shape index: {}]   ;;  %s513_s5 = inlined_call_operand.vmem [shape: f32[2,6,128], index: 5, kind: output, shape index: {}]  }
   0x1 LB: > { %s388_s19 = sadd.s32 4294967295, %s438_s18   ;;  %p392_p0 = scmp.ge.s32.totalorder %s438_s18, 1  ;;  %s438_s18 = sphi %s472_s18, %s15_s18  }
   0x2   : > { %p186_p1 = scmp.lt.s32.totalorder %s438_s18, 3 }
   0x4   : > { %p187_p2 = pnand %p392_p0, %p186_p1 }
   0x5   : > { %p212_p3 = scmp.lt.s32.totalorder (!%p187_p2), %s388_s19, 1 }
   0x6   : > { %190 = sbr.rel (%p187_p2) target bundleno = 835 (0x343), region = 40 }
   0xb   : > { %s515_s19 = smov (!%p212_p3, %s388_s19), 1  ;;  %vm225_vm0 = vcmask 259072   ;;  %v424_v8 = vld [vmem:[%s511_s3 + $0x8] sm:$0xff]   ;;  %v440_v9 = vmov 0.0   ;;  %vm441_vm1 = vmmov 0   ;;  %v425_v10 = vld [vmem:[%s511_s3] sm:$0xff]  }
   0xc   : > { %s393_s20 = sshll.u32 %s515_s19, 2  ;;  %406 = vmatprep.subr.bf16.mxu0 %v440_v9  ;;  %410 = vmatprep.mubr.msk.bf16.mxu0 %vm441_vm1, %v440_v9  ;;  %v395_v15 = vld [vmem:[%s509_s1] ss:$0 sm:$0xff]  ;;  %vm278_vm2 = vcmask 261120   ;;  %vm322_vm3 = vcmask 1045504   ;;  %s394_s9 = sshll.u32 %s515_s19, 3 }
   0xd   : > { %s215_s23 = scalar_lea.vmem %s508_s0, %s393_s20  ;;  %407 = vmatpush3.bf16.msra.mxu0 %v424_v8  ;;  %v396_v17 = vld [vmem:[%s510_s2] ss:$0 sm:$0xff]  ;;  %s219_s12 = scalar_lea.vmem %s513_s5, %s394_s9 }
   0xe   : > { %v221_v0 = vld [vmem:[%s215_s23] sm:$0x7]  ;;  %408 = vmatprep.subr.bf16.mxu0 %v440_v9 }
   0xf   : > { %v222_v1 = vunpack.c.l.bf16 %v221_v0  ;;  %v397_v21 = vld [vmem:[%s512_s4] ss:$0 sm:$0xff] }
  0x11   : > { %v226_v2 = vsel %vm225_vm0, %v222_v1, 0.0  ;;  %409 = vmatpush3.bf16.msra.mxu0 %v425_v10 }
  0x12   : > { %227 = vadd.xlane.f32.xlu0 %v226_v2 }
  0x9b   : > { %v228_v3 = vpop.xlane.xlu0 %227 }
  0x9c   : > { %v230_v4 = vmul.f32 0.03125, %v228_v3 }
  0x9e   : > { %v231_v5 = vsub.f32 %v222_v1, %v230_v4 }
  0xa0   : > { %v232_v6 = vmul.f32 %v231_v5, %v231_v5 }
  0xa2   : > { %v233_v7 = vsel %vm225_vm0, %v232_v6, 0.0 }
  0xa3   : > { %234 = vadd.xlane.f32.xlu0 %v233_v7 }
 0x12c   : > { %v235_v11 = vpop.xlane.xlu0 %234 }
 0x12d   : > { %v236_v12 = vmul.f32 0.03125, %v235_v11 }
 0x12f   : > { %v237_v13 = vadd.f32 1e-05, %v236_v12 }
 0x131   : > { %426 = vrsqrt.f32 %v237_v13 }
 0x13e   : > { %v427_v14 = vpop.eup %426 }
 0x13f   : > { %v239_v16 = vmul.f32 %v427_v14, %v231_v5 }
 0x141   : > { %v246_v18 = vmul.f32 %v395_v15, %v239_v16 }
 0x143   : > { %v253_v19 = vadd.f32 %v396_v17, %v246_v18 }
 0x145   : > { %v258_v20 = vpack.c.bf16 %v253_v19, %v253_v19 }
 0x147   : > { %411 = vmatmul.mubr.msk.bf16.vlgmr.msra.gmra.mxu0 %vm278_vm2, %v258_v20 }
 0x207   : > { %v316_v22 = vpop.f32.mrf.mxu0 }
 0x208   : > { %v317_v23 = vadd.f32 %v397_v21, %v316_v22 }
 0x209   : > { %v412_v24 = vpop.f32.mrf.mxu0 }
 0x20a   : > { %v323_v25 = vsel %vm322_vm3, %v317_v23, -inf }
 0x20b   : > { %324 = vmax.xlane.f32.xlu1 %v323_v25  ;;  %v319_v26 = vpop.f32.mrf.mxu0 }
 0x20d   : > { %v413_v27 = vpop.f32.mrf.mxu0 }
 0x294   : > { %v325_v28 = vpop.xlane.xlu1 %324 }
 0x295   : > { %v326_v29 = vsub.f32 %v317_v23, %v325_v28 }
 0x297   : > { %v327_v30 = vmul.f32 1.442695, %v326_v29 }
 0x299   : > { %428 = vpow2.f32 %v327_v30 }
 0x2a6   : > { %v429_v31 = vpop.eup %428 }
 0x2a7   : > { %v329_v32 = vsel %vm322_vm3, %v429_v31, 0.0 }
 0x2a8   : > { %330 = vadd.xlane.f32.xlu1 %v329_v32 }
 0x331   : > { %v331_v33 = vpop.xlane.xlu1 %330 }
 0x332   : > { %430 = vrcp.f32 %v331_v33 }
 0x33f   : > { %v431_v34 = vpop.eup %430 }
 0x340   : > { %v333_v35 = vmul.f32 %v431_v34, %v429_v31 }
 0x342   : > { %334 = vst [vmem:[%s219_s12] sm:$0x3f] %v333_v35 }
 0x343 PF: > { %s15_s18 = sadd.s32 1, %s438_s18  }
 0x344   : > { %p12_p4 = scmp.ge.s32.totalorder %s15_s18, 4  }
 0x346   :  { %14 = sbr.rel (!%p12_p4) target bundleno = 1 (0x1), region = 70 }

// kernel: _lambda_.5
= control target key start
LH: loop header
LB: loop body
LE: loop exit
PB: predicated region body
PF: predicated region fallthrough
CT: control target
= control target key end

     0   :  { %s1666_s29 = smov 0   ;;  %s1841_s0 = inlined_call_operand.vmem [shape: bf16[2,8,32], index: 0, kind: input, shape index: {}]   ;;  %s1842_s1 = inlined_call_operand.vmem [shape: s32[2,1,8], index: 1, kind: input, shape index: {}]   ;;  %s1843_s2 = inlined_call_operand.vmem [shape: bf16[32,96], index: 2, kind: input, shape index: {}]   ;;  %s1844_s3 = inlined_call_operand.vmem [shape: f32[1,96], index: 3, kind: input, shape index: {}]   ;;  %s1845_s4 = inlined_call_operand.vmem [shape: bf16[32,32], index: 4, kind: input, shape index: {}]   ;;  %s1846_s5 = inlined_call_operand.vmem [shape: f32[1,32], index: 5, kind: input, shape index: {}]   ;;  %s1847_s6 = inlined_call_operand.vmem [shape: f32[1,32], index: 6, kind: input, shape index: {}]   ;;  %s1848_s7 = inlined_call_operand.vmem [shape: f32[1,32], index: 7, kind: input, shape index: {}]   ;;  %s1849_s8 = inlined_call_operand.vmem [shape: bf16[32,64], index: 8, kind: input, shape index: {}]   ;;  %s1850_s9 = inlined_call_operand.vmem [shape: f32[1,64], index: 9, kind: input, shape index: {}]   ;;  %s1851_s10 = inlined_call_operand.vmem [shape: bf16[64,32], index: 10, kind: input, shape index: {}]   ;;  %s1852_s11 = inlined_call_operand.vmem [shape: f32[1,32], index: 11, kind: input, shape index: {}]   ;;  %s1853_s12 = inlined_call_operand.vmem [shape: f32[1,32], index: 12, kind: input, shape index: {}]   ;;  %s1854_s13 = inlined_call_operand.vmem [shape: f32[1,32], index: 13, kind: input, shape index: {}]   ;;  %s1855_s14 = inlined_call_operand.vmem [shape: bf16[2,8,32], index: 14, kind: output, shape index: {}]  }
   0x1 LB: > { %s1360_s30 = sadd.s32 4294967295, %s1573_s29   ;;  %p1364_p0 = scmp.ge.s32.totalorder %s1573_s29, 1  ;;  %s1573_s29 = sphi %s1666_s29, %s24_s29  }
   0x2   : > { %p419_p1 = scmp.lt.s32.totalorder %s1573_s29, 3 }
   0x4   : > { %p420_p2 = pnand %p1364_p0, %p419_p1 }
   0x5   : > { %p466_p3 = scmp.lt.s32.totalorder (!%p420_p2), %s1360_s30, 1  ;;  %s1577_s25 = smov (!%p420_p2), 120  }
   0x6   : > { %423 = sbr.rel (%p420_p2) target bundleno = 2274 (0x8e2), region = 76  ;;  %s1578_s26 = smov (!%p420_p2), 96  }
   0x7   : > { %s1579_s27 = smov (!%p420_p2), 80   ;;  %s1580_s28 = smov (!%p420_p2), 88  }
   0x8   : > { %s1581_s15 = smov (!%p420_p2), 72   ;;  %s1582_s16 = smov (!%p420_p2), 112  }
   0x9   : > { %s1583_s17 = smov (!%p420_p2), 104   ;;  %s1585_s23 = smov (!%p420_p2), 64  }
   0xa   : > { %s1586_s24 = smov (!%p420_p2), 40   ;;  %s1590_s18 = smov (!%p420_p2), 24  }
   0xb   : > { %v1537_v0 = vld [vmem:[%s1843_s2 + $0x8] sm:$0xff]   ;;  %v1575_v1 = vmov 0.0   ;;  %v1538_v2 = vld [vmem:[%s1843_s2] sm:$0xff]   ;;  %vm1576_vm0 = vmmov 0   ;;  %s1857_s30 = smov (!%p466_p3, %s1360_s30), 1  ;;  %vm506_vm1 = vcmask 261120   ;;  %v557_v22 = vlaneseq }
   0xc   : > { %1429 = vmatprep.subr.bf16.mxu0 %v1575_v1  ;;  %1437 = vmatprep.subr.bf16.mxu1 %v1575_v1  ;;  %s1365_s19 = sshll.u32 %s1857_s30, 2  ;;  %v1367_v4 = vld [vmem:[%s1844_s3] ss:$0 sm:$0xff]  ;;  %vm565_vm2 = vcmask 64512   ;;  %s472_s21 = scalar_lea.vmem %s1842_s1, %s1857_s30  ;;  %vm628_vm4 = vcmask 1043456   ;;  %vm1016_vm5 = vcmask 130048  }
   0xd   : > { %1430 = vmatpush3.bf16.msra.mxu0 %v1537_v0  ;;  %1433 = vmatprep.mubr.msk.bf16.mxu0 %vm1576_vm0, %v1575_v1  ;;  %s469_s22 = scalar_lea.vmem %s1841_s0, %s1365_s19  ;;  %v480_v23 = vld [vmem:[%s472_s21] sm:$0x1]  ;;  %v558_v24 = vshrl.u32 %v557_v22, 7  ;;  %vm1018_vm6 = vcmask 195584   ;;  %vm1221_vm7 = vcmask 523264   ;;  %vm1296_vm8 = vcmask 257024  }
   0xe   : > { %1431 = vmatprep.subr.bf16.mxu0 %v1575_v1  ;;  %1439 = vmatprep.mubr.msk.bf16.mxu1 %vm1576_vm0, %v1575_v1  ;;  %v1696_v3 = vld [vmem:[%s469_s22] sm:$0xf]  ;;  %vm481_vm3 = vcmp.eq.s32.totalorder %v480_v23, 0  ;;  %s1584_s22 = smov 56  }
   0xf   : > { %v559_v25 = vsub.s32 0, %v558_v24  ;;  %v482_v26 = vsel %vm481_vm3, -1e+30, %v1575_v1 }
  0x11   : > { %1432 = vmatpush3.bf16.msra.mxu0 %v1538_v2  ;;  %v560_v27 = vrot.slane %v482_v26, %v559_v25 }
  0x12   : > { %1443 = vmatprep.subr.bf16.mxu0 %v1575_v1 }
  0x14   : > { %1434 = vmatmul.mubr.msk.bf16.vlgmr.msra.gmra.mxu0 %vm506_vm1, %v1696_v3 }
  0x15   : > { %1445 = vmatprep.mubr.msk.bf16.mxu0 %vm1576_vm0, %v1575_v1 }
  0xd4   : > { %v544_v5 = vpop.f32.mrf.mxu0 }
  0xd5   : > { %v545_v6 = vadd.f32 %v1367_v4, %v544_v5 }
  0xd6   : > { %v1435_v7 = vpop.f32.mrf.mxu0 }
  0xd7   : > { %v1705_v8 = vpack.c.bf16 %v545_v6, %v545_v6 }
  0xd8   : > { %v547_v9 = vpop.f32.mrf.mxu0 }
  0xd9   : > { %673 = vrot.lane.b32.xlu1 %v1705_v8, %s1577_s25  ;;  %563 = vrot.lane.b32.xlu0 %v1705_v8, %s1578_s26  ;;  %s1587_s25 = smov 48   ;;  %s1588_s26 = smov 8  }
  0xda   : > { %v1436_v10 = vpop.f32.mrf.mxu0 }
  0xdd   : > { %785 = vrot.lane.b32.xlu1 %v1705_v8, %s1579_s27  ;;  %675 = vrot.lane.b32.xlu0 %v1705_v8, %s1580_s28 }
  0xe1   : > { %895 = vrot.lane.b32.xlu1 %v1705_v8, %s1581_s15  ;;  %783 = vrot.lane.b32.xlu0 %v1705_v8, %s1582_s16 }
  0xe5   : > { %893 = vrot.lane.b32.xlu0 %v1705_v8, %s1583_s17  ;;  %s1589_s17 = smov 16  }
 0x14b   : > { %v564_v11 = vpop.permute.xlu0 %563  ;;  %v674_v14 = vpop.permute.xlu1 %673 }
 0x14c   : > { %v570_v12 = vsel %vm565_vm2, %v564_v11, 0 }
 0x14d   : > { %1438 = vmatpush3.bf16.xpose.msra.mxu1 %v570_v12 }
 0x14e   : > { %1449 = vmatprep.subr.bf16.mxu1 %v1575_v1 }
 0x14f   : > { %v676_v13 = vpop.permute.xlu0 %675  ;;  %v786_v16 = vpop.permute.xlu1 %785 }
 0x150   : > { %v681_v15 = vsel %vm565_vm2, %v676_v13, 0  ;;  %v791_v17 = vsel %vm565_vm2, %v786_v16, 0 }
 0x153   : > { %v896_v18 = vpop.permute.xlu1 %895  ;;  %v784_v19 = vpop.permute.xlu0 %783 }
 0x154   : > { %1440 = vmatmul.mubr.msk.bf16.vlgmr.msra.gmra.mxu1 %vm565_vm2, %v1705_v8  ;;  %v901_v20 = vsel %vm565_vm2, %v896_v18, 0 }
 0x155   : > { %1450 = vmatpush3.bf16.xpose.msra.mxu1 %v681_v15  ;;  %1451 = vmatprep.mubr.msk.bf16.mxu1 %vm1576_vm0, %v1575_v1 }
 0x156   : > { %1461 = vmatprep.subr.bf16.mxu1 %v1575_v1 }
 0x157   : > { %v894_v21 = vpop.permute.xlu0 %893 }
 0x15c   : > { %1452 = vmatmul.mubr.msk.bf16.vlgmr.msra.gmra.mxu1 %vm565_vm2, %v674_v14 }
 0x15d   : > { %1462 = vmatpush3.bf16.xpose.msra.mxu1 %v791_v17  ;;  %1463 = vmatprep.mubr.msk.bf16.mxu1 %vm1576_vm0, %v1575_v1 }
 0x15e   : > { %1473 = vmatprep.subr.bf16.mxu1 %v1575_v1 }
 0x164   : > { %1464 = vmatmul.mubr.msk.bf16.vlgmr.msra.gmra.mxu1 %vm565_vm2, %v784_v19 }
 0x165   : > { %1474 = vmatpush3.bf16.xpose.msra.mxu1 %v901_v20  ;;  %1475 = vmatprep.mubr.msk.bf16.mxu1 %vm1576_vm0, %v1575_v1 }
 0x166   : > { %1485 = vmatprep.subr.bf16.mxu1 %v1575_v1 }
 0x16c   : > { %1476 = vmatmul.mubr.msk.bf16.vlgmr.msra.gmra.mxu1 %vm565_vm2, %v894_v21 }
 0x16d   : > { %1489 = vmatprep.mubr.msk.bf16.mxu1 %vm1576_vm0, %v1575_v1 }
 0x214   : > { %v606_v28 = vpop.f32.mrf.mxu1 }
 0x215   : > { %v607_v29 = vadd.f32 %v606_v28, %v560_v27 }
 0x216   : > { %v1441_v30 = vpop.f32.mrf.mxu1 }
 0x217   : > { %v612_v31 = vsel %vm565_vm2, %v607_v29, -inf }
 0x218   : > { %613 = vmax.xlane.f32.xlu1 %v612_v31  ;;  %v609_v32 = vpop.f32.mrf.mxu1 }
 0x21a   : > { %v1442_v33 = vpop.f32.mrf.mxu1 }
 0x21c   : > { %v717_v34 = vpop.f32.mrf.mxu1 }
 0x21d   : > { %v718_v35 = vadd.f32 %v717_v34, %v560_v27  ;;  %v1539_v34 = vld [vmem:[%s1845_s4 + $0x8] sm:$0xff]  }
 0x21e   : > { %v1453_v36 = vpop.f32.mrf.mxu1  ;;  %1486 = vmatpush3.bf16.msra.mxu1 %v1539_v34 }
 0x21f   : > { %v723_v37 = vsel %vm565_vm2, %v718_v35, -inf  ;;  %1487 = vmatprep.subr.bf16.mxu1 %v1575_v1 }
 0x220   : > { %724 = vmax.xlane.f32.xlu0 %v723_v37  ;;  %v720_v38 = vpop.f32.mrf.mxu1 }
 0x221   : > { %v1540_v38 = vld [vmem:[%s1845_s4] sm:$0xff]  }
 0x222   : > { %v1454_v39 = vpop.f32.mrf.mxu1  ;;  %1488 = vmatpush3.bf16.msra.mxu1 %v1540_v38 }
 0x223   : > { %1501 = vmatprep.subr.bf16.mxu1 %v1575_v1 }
 0x224   : > { %v827_v40 = vpop.f32.mrf.mxu1 }
 0x225   : > { %v828_v41 = vadd.f32 %v827_v40, %v560_v27 }
 0x226   : > { %v1465_v42 = vpop.f32.mrf.mxu1 }
 0x227   : > { %v833_v43 = vsel %vm565_vm2, %v828_v41, -inf }
 0x228   : > { %834 = vmax.xlane.f32.xlu0 %v833_v43  ;;  %v830_v44 = vpop.f32.mrf.mxu1 }
 0x229   : > { %734 = vrot.lane.b32.xlu1 %v1705_v8, %s1584_s22  ;;  %s476_s22 = scalar_lea.vmem %s1855_s14, %s1365_s19 }
 0x22a   : > { %v1466_v45 = vpop.f32.mrf.mxu1 }
 0x22c   : > { %v937_v46 = vpop.f32.mrf.mxu1 }
 0x22d   : > { %v938_v50 = vadd.f32 %v937_v46, %v560_v27 }
 0x22e   : > { %v1477_v47 = vpop.f32.mrf.mxu1 }
 0x22f   : > { %v943_v51 = vsel %vm565_vm2, %v938_v50, -inf }
 0x230   : > { %v940_v48 = vpop.f32.mrf.mxu1 }
 0x232   : > { %v1478_v49 = vpop.f32.mrf.mxu1 }
 0x23e   : > { %623 = vrot.lane.b32.xlu0 %v1705_v8, %s1585_s23 }
 0x242   : > { %954 = vrot.lane.b32.xlu0 %v1705_v8, %s1586_s24 }
 0x24d   : > { %944 = vmax.xlane.f32.xlu1 %v943_v51 }
 0x25e   : > { %844 = vrot.lane.b32.xlu1 %v1705_v8, %s1587_s25 }
 0x2a1   : > { %v614_v52 = vpop.xlane.xlu1 %613 }
 0x2a2   : > { %v615_v53 = vsub.f32 %v607_v29, %v614_v52 }
 0x2a4   : > { %v616_v54 = vmul.f32 1.442695, %v615_v53 }
 0x2a5   : > { %v735_v0 = vpop.permute.xlu1 %734 }
 0x2a6   : > { %1547 = vpow2.f32 %v616_v54  ;;  %v740_v4 = vsel %vm628_vm4, %v735_v0, 0 }
 0x2a9   : > { %v725_v55 = vpop.xlane.xlu0 %724 }
 0x2aa   : > { %v726_v56 = vsub.f32 %v718_v35, %v725_v55 }
 0x2ac   : > { %v727_v57 = vmul.f32 1.442695, %v726_v56 }
 0x2ae   : > { %1549 = vpow2.f32 %v727_v57 }
 0x2b1   : > { %v835_v58 = vpop.xlane.xlu0 %834 }
 0x2b2   : > { %v836_v59 = vsub.f32 %v828_v41, %v835_v58 }
 0x2b3   : > { %v1548_v61 = vpop.eup %1547 }
 0x2b4   : > { %v837_v60 = vmul.f32 1.442695, %v836_v59  ;;  %v622_v2 = vpack.c.bf16 %v1548_v61, %v1548_v61  ;;  %v618_v7 = vsel %vm565_vm2, %v1548_v61, 0.0  ;;  %v1379_v59 = vld [vmem:[%s1846_s5] ss:$0 sm:$0xff] }
 0x2b5   : > { %v624_v62 = vpop.permute.xlu0 %623 }
 0x2b6   : > { %1551 = vpow2.f32 %v837_v60  ;;  %v630_v63 = vsel %vm628_vm4, %v624_v62, 0  ;;  %v479_v60 = vunpack.c.l.bf16 %v1696_v3  ;;  %v1541_v3 = vld [vmem:[%s1849_s8 + $0x8] sm:$0xff]  }
 0x2b7   : > { %1444 = vmatpush3.bf16.msra.mxu0 %v630_v63 }
 0x2b8   : > { %1455 = vmatprep.subr.bf16.mxu0 %v1575_v1 }
 0x2b9   : > { %v955_v16 = vpop.permute.xlu0 %954 }
 0x2ba   : > { %1446 = vmatmul.mubr.msk.bf16.vlgmr.msra.gmra.mxu0 %vm565_vm2, %v622_v2  ;;  %v960_v18 = vsel %vm628_vm4, %v955_v16, 0 }
 0x2bb   : > { %v1550_v5 = vpop.eup %1549  ;;  %1456 = vmatpush3.bf16.msra.mxu0 %v740_v4  ;;  %1457 = vmatprep.mubr.msk.bf16.mxu0 %vm1576_vm0, %v1575_v1 }
 0x2bc   : > { %v729_v6 = vsel %vm565_vm2, %v1550_v5, 0.0  ;;  %1467 = vmatprep.subr.bf16.mxu0 %v1575_v1  ;;  %v733_v8 = vpack.c.bf16 %v1550_v5, %v1550_v5 }
 0x2bd   : > { %730 = vadd.xlane.f32.xlu1 %v729_v6 }
 0x2c1   : > { %619 = vadd.xlane.f32.xlu1 %v618_v7 }
 0x2c2   : > { %1458 = vmatmul.mubr.msk.bf16.vlgmr.msra.gmra.mxu0 %vm565_vm2, %v733_v8 }
 0x2c3   : > { %v1552_v9 = vpop.eup %1551  ;;  %1469 = vmatprep.mubr.msk.bf16.mxu0 %vm1576_vm0, %v1575_v1 }
 0x2c4   : > { %v839_v10 = vsel %vm565_vm2, %v1552_v9, 0.0  ;;  %v843_v17 = vpack.c.bf16 %v1552_v9, %v1552_v9 }
 0x2c5   : > { %840 = vadd.xlane.f32.xlu0 %v839_v10 }
 0x2d6   : > { %v945_v11 = vpop.xlane.xlu1 %944 }
 0x2d7   : > { %v946_v12 = vsub.f32 %v938_v50, %v945_v11  ;;  %v1542_v11 = vld [vmem:[%s1849_s8] sm:$0xff]  }
 0x2d9   : > { %v947_v13 = vmul.f32 1.442695, %v946_v12  ;;  %v1543_v12 = vld [vmem:[%s1851_s10 + $0x18] sm:$0xff]  }
 0x2da   : > { %v845_v14 = vpop.permute.xlu1 %844 }
 0x2db   : > { %1553 = vpow2.f32 %v947_v13  ;;  %v850_v15 = vsel %vm628_vm4, %v845_v14, 0  ;;  %v1544_v13 = vld [vmem:[%s1851_s10 + $0x10] sm:$0xff]  }
 0x2dc   : > { %1468 = vmatpush3.bf16.msra.mxu0 %v850_v15 }
 0x2dd   : > { %1479 = vmatprep.subr.bf16.mxu0 %v1575_v1 }
 0x2df   : > { %1470 = vmatmul.mubr.msk.bf16.vlgmr.msra.gmra.mxu0 %vm565_vm2, %v843_v17 }
 0x2e0   : > { %1480 = vmatpush3.bf16.msra.mxu0 %v960_v18  ;;  %1481 = vmatprep.mubr.msk.bf16.mxu0 %vm1576_vm0, %v1575_v1  ;;  %v1383_v18 = vld [vmem:[%s1847_s6] ss:$0 sm:$0xff] }
 0x2e1   : > { %1493 = vmatprep.subr.bf16.mxu0 %v1575_v1 }
 0x2e8   : > { %v1554_v19 = vpop.eup %1553 }
 0x2e9   : > { %v949_v20 = vsel %vm565_vm2, %v1554_v19, 0.0  ;;  %v953_v21 = vpack.c.bf16 %v1554_v19, %v1554_v19 }
 0x2ea   : > { %950 = vadd.xlane.f32.xlu0 %v949_v20  ;;  %v1384_v20 = vld [vmem:[%s1848_s7] ss:$0 sm:$0xff] }
 0x2eb   : > { %1482 = vmatmul.mubr.msk.bf16.vlgmr.msra.gmra.mxu0 %vm565_vm2, %v953_v21 }
 0x2ec   : > { %1497 = vmatprep.mubr.msk.bf16.mxu0 %vm1576_vm0, %v1575_v1  ;;  %1494 = vmatpush3.bf16.msra.mxu0 %v1541_v3 }
 0x2ed   : > { %1495 = vmatprep.subr.bf16.mxu0 %v1575_v1 }
 0x2f0   : > { %1496 = vmatpush3.bf16.msra.mxu0 %v1542_v11 }
 0x346   : > { %v731_v22 = vpop.xlane.xlu1 %730 }
 0x347   : > { %1555 = vrcp.f32 %v731_v22 }
 0x34a   : > { %v620_v49 = vpop.xlane.xlu1 %619 }
 0x34e   : > { %v841_v33 = vpop.xlane.xlu0 %840 }
 0x34f   : > { %1557 = vrcp.f32 %v841_v33 }
 0x354   : > { %v1556_v27 = vpop.eup %1555 }
 0x35c   : > { %v1558_v36 = vpop.eup %1557 }
 0x373   : > { %v951_v35 = vpop.xlane.xlu0 %950 }
 0x374   : > { %1559 = vrcp.f32 %v951_v35 }
 0x375   : > { %1561 = vrcp.f32 %v620_v49 }
 0x37a   : > { %v666_v23 = vpop.f32.mrf.mxu0 }
 0x37c   : > { %v1447_v24 = vpop.f32.mrf.mxu0 }
 0x37d   : > { %v1545_v24 = vld [vmem:[%s1851_s10 + $0x8] sm:$0xff]  }
 0x37e   : > { %v669_v25 = vpop.f32.mrf.mxu0 }
 0x37f   : > { %v1546_v25 = vld [vmem:[%s1851_s10] sm:$0xff]  }
 0x380   : > { %v1448_v26 = vpop.f32.mrf.mxu0 }
 0x381   : > { %v1560_v43 = vpop.eup %1559  ;;  %v1385_v26 = vld [vmem:[%s1850_s9] ss:$0 sm:$0xff] }
 0x382   : > { %v776_v28 = vpop.f32.mrf.mxu0  ;;  %v1562_v50 = vpop.eup %1561 }
 0x383   : > { %v782_v29 = vmul.f32 %v1556_v27, %v776_v28  ;;  %v672_v53 = vmul.f32 %v1562_v50, %v666_v23  ;;  %v1395_v50 = vld [vmem:[%s1853_s12] ss:$0 sm:$0xff] }
 0x384   : > { %v1459_v30 = vpop.f32.mrf.mxu0 }
 0x385   : > { %1004 = vrot.lane.b32.xlu0 %v782_v29, %s1588_s26 }
 0x386   : > { %v779_v31 = vpop.f32.mrf.mxu0 }
 0x388   : > { %v1460_v32 = vpop.f32.mrf.mxu0 }
 0x39f   : > { %v886_v37 = vpop.f32.mrf.mxu0 }
 0x3a0   : > { %v892_v39 = vmul.f32 %v1558_v36, %v886_v37 }
 0x3a1   : > { %v1471_v40 = vpop.f32.mrf.mxu0 }
 0x3a2   : > { %1008 = vrot.lane.b32.xlu1 %v892_v39, %s1589_s17 }
 0x3a3   : > { %v889_v41 = vpop.f32.mrf.mxu0 }
 0x3a5   : > { %v1472_v42 = vpop.f32.mrf.mxu0 }
 0x3ab   : > { %v996_v44 = vpop.f32.mrf.mxu0 }
 0x3ac   : > { %v1002_v45 = vmul.f32 %v1560_v43, %v996_v44 }
 0x3ad   : > { %v1483_v46 = vpop.f32.mrf.mxu0 }
 0x3ae   : > { %1012 = vrot.lane.b32.xlu1 %v1002_v45, %s1590_s18 }
 0x3af   : > { %v999_v47 = vpop.f32.mrf.mxu0 }
 0x3b1   : > { %v1484_v48 = vpop.f32.mrf.mxu0 }
 0x3f7   : > { %v1005_v51 = vpop.permute.xlu0 %1004 }
 0x3f8   : > { %v1015_v54 = vsel %vm565_vm2, %v672_v53, %v1005_v51 }
 0x414   : > { %v1009_v52 = vpop.permute.xlu1 %1008 }
 0x415   : > { %v1017_v55 = vsel %vm1016_vm5, %v1015_v54, %v1009_v52  ;;  %v1396_v52 = vld [vmem:[%s1854_s13] ss:$0 sm:$0xff] }
 0x420   : > { %v1013_v56 = vpop.permute.xlu1 %1012 }
 0x421   : > { %v1019_v57 = vsel %vm1018_vm6, %v1017_v55, %v1013_v56 }
 0x422   : > { %v1020_v58 = vpack.c.bf16 %v1019_v57, %v1019_v57 }
 0x424   : > { %1490 = vmatmul.mubr.msk.bf16.vlgmr.msra.gmra.mxu1 %vm506_vm1, %v1020_v58 }
 0x425   : > { %1509 = vmatprep.mubr.msk.bf16.mxu1 %vm1576_vm0, %v1575_v1  ;;  %1502 = vmatpush3.bf16.msra.mxu1 %v1543_v12 }
 0x426   : > { %1503 = vmatprep.subr.bf16.mxu1 %v1575_v1 }
 0x429   : > { %1504 = vmatpush3.bf16.msra.mxu1 %v1544_v13 }
 0x42a   : > { %1505 = vmatprep.subr.bf16.mxu1 %v1575_v1 }
 0x42d   : > { %1506 = vmatpush3.bf16.msra.mxu1 %v1545_v24 }
 0x42e   : > { %1507 = vmatprep.subr.bf16.mxu1 %v1575_v1  ;;  %v1389_v1 = vld [vmem:[%s1852_s11] ss:$0 sm:$0xff] }
 0x431   : > { %1508 = vmatpush3.bf16.msra.mxu1 %v1546_v25 }
 0x4e4   : > { %v1076_v61 = vpop.f32.mrf.mxu1 }
 0x4e5   : > { %v1077_v62 = vadd.f32 %v1379_v59, %v1076_v61 }
 0x4e6   : > { %v1491_v63 = vpop.f32.mrf.mxu1 }
 0x4e7   : > { %v1082_v0 = vadd.f32 %v1077_v62, %v479_v60 }
 0x4e8   : > { %v1079_v2 = vpop.f32.mrf.mxu1 }
 0x4e9   : > { %v1085_v4 = vsel %vm506_vm1, %v1082_v0, 0.0 }
 0x4ea   : > { %v1492_v5 = vpop.f32.mrf.mxu1  ;;  %1086 = vadd.xlane.f32.xlu0 %v1085_v4 }
 0x573   : > { %v1087_v6 = vpop.xlane.xlu0 %1086 }
 0x574   : > { %v1089_v7 = vmul.f32 0.03125, %v1087_v6 }
 0x576   : > { %v1090_v8 = vsub.f32 %v1082_v0, %v1089_v7 }
 0x578   : > { %v1091_v9 = vmul.f32 %v1090_v8, %v1090_v8 }
 0x57a   : > { %v1092_v10 = vsel %vm506_vm1, %v1091_v9, 0.0 }
 0x57b   : > { %1093 = vadd.xlane.f32.xlu1 %v1092_v10 }
 0x604   : > { %v1094_v14 = vpop.xlane.xlu1 %1093 }
 0x605   : > { %v1095_v15 = vmul.f32 0.03125, %v1094_v14 }
 0x607   : > { %v1096_v16 = vadd.f32 1e-05, %v1095_v15 }
 0x609   : > { %1563 = vrsqrt.f32 %v1096_v16 }
 0x616   : > { %v1564_v17 = vpop.eup %1563 }
 0x617   : > { %v1098_v19 = vmul.f32 %v1564_v17, %v1090_v8 }
 0x619   : > { %v1105_v21 = vmul.f32 %v1383_v18, %v1098_v19 }
 0x61b   : > { %v1112_v22 = vadd.f32 %v1384_v20, %v1105_v21 }
 0x61d   : > { %v1117_v23 = vpack.c.bf16 %v1112_v22, %v1112_v22 }
 0x61f   : > { %1498 = vmatmul.mubr.msk.bf16.vlgmr.msra.gmra.mxu0 %vm506_vm1, %v1117_v23 }
 0x6df   : > { %v1174_v27 = vpop.f32.mrf.mxu0 }
 0x6e0   : > { %v1175_v28 = vadd.f32 %v1385_v26, %v1174_v27 }
 0x6e1   : > { %v1499_v29 = vpop.f32.mrf.mxu0 }
 0x6e2   : > { %v1180_v30 = vmax.f32 %v1175_v28, 0.0 }
 0x6e3   : > { %v1177_v31 = vpop.f32.mrf.mxu0 }
 0x6e4   : > { %v1189_v32 = vpack.c.bf16 %v1180_v30, %v1180_v30 }
 0x6e5   : > { %v1500_v33 = vpop.f32.mrf.mxu0 }
 0x6e6   : > { %1510 = vmatmul.mubr.msk.bf16.vlgmr.msra.gmra.mxu1 %vm1221_vm7, %v1189_v32 }
 0x7a6   : > { %v1259_v34 = vpop.f32.mrf.mxu1 }
 0x7a7   : > { %v1260_v35 = vadd.f32 %v1389_v1, %v1259_v34 }
 0x7a8   : > { %v1511_v36 = vpop.f32.mrf.mxu1 }
 0x7a9   : > { %v1265_v37 = vadd.f32 %v1260_v35, %v1112_v22 }
 0x7aa   : > { %v1262_v38 = vpop.f32.mrf.mxu1 }
 0x7ab   : > { %v1268_v39 = vsel %vm506_vm1, %v1265_v37, 0.0 }
 0x7ac   : > { %1269 = vadd.xlane.f32.xlu0 %v1268_v39  ;;  %v1512_v40 = vpop.f32.mrf.mxu1 }
 0x835   : > { %v1270_v41 = vpop.xlane.xlu0 %1269 }
 0x836   : > { %v1271_v42 = vmul.f32 0.03125, %v1270_v41 }
 0x838   : > { %v1272_v43 = vsub.f32 %v1265_v37, %v1271_v42 }
 0x83a   : > { %v1273_v44 = vmul.f32 %v1272_v43, %v1272_v43 }
 0x83c   : > { %v1274_v45 = vsel %vm506_vm1, %v1273_v44, 0.0 }
 0x83d   : > { %1275 = vadd.xlane.f32.xlu0 %v1274_v45 }
 0x8c6   : > { %v1276_v46 = vpop.xlane.xlu0 %1275 }
 0x8c7   : > { %v1277_v47 = vmul.f32 0.03125, %v1276_v46 }
 0x8c9   : > { %v1278_v48 = vadd.f32 1e-05, %v1277_v47 }
 0x8cb   : > { %1565 = vrsqrt.f32 %v1278_v48 }
 0x8d8   : > { %v1566_v49 = vpop.eup %1565 }
 0x8d9   : > { %v1280_v51 = vmul.f32 %v1566_v49, %v1272_v43 }
 0x8db   : > { %v1287_v53 = vmul.f32 %v1395_v50, %v1280_v51 }
 0x8dd   : > { %v1294_v54 = vadd.f32 %v1396_v52, %v1287_v53 }
 0x8df   : > { %v1295_v55 = vpack.c.bf16 %v1294_v54, %v1294_v54 }
 0x8e1   : > { %1297 = vst.msk [vmem:[%s476_s22] sm:$0xf] %vm1296_vm8, %v1295_v55 }
 0x8e2 PF: > { %s24_s29 = sadd.s32 1, %s1573_s29  }
 0x8e3   : > { %p21_p4 = scmp.ge.s32.totalorder %s24_s29, 4  }
 0x8e5   :  { %23 = sbr.rel (!%p21_p4) target bundleno = 1 (0x1), region = 109 }

// kernel: _lambda_.6
= control target key start
LH: loop header
LB: loop body
LE: loop exit
PB: predicated region body
PF: predicated region fallthrough
CT: control target
= control target key end

     0   :  { %s1763_s21 = smov 0   ;;  %s1946_s0 = inlined_call_operand.vmem [shape: bf16[2,8,32], index: 0, kind: input, shape index: {}]   ;;  %s1947_s1 = inlined_call_operand.vmem [shape: s32[2,1,8], index: 1, kind: input, shape index: {}]   ;;  %s1948_s2 = inlined_call_operand.vmem [shape: bf16[32,96], index: 2, kind: input, shape index: {}]   ;;  %s1949_s3 = inlined_call_operand.vmem [shape: f32[1,96], index: 3, kind: input, shape index: {}]   ;;  %s1950_s4 = inlined_call_operand.vmem [shape: bf16[32,32], index: 4, kind: input, shape index: {}]   ;;  %s1951_s5 = inlined_call_operand.vmem [shape: f32[1,32], index: 5, kind: input, shape index: {}]   ;;  %s1952_s6 = inlined_call_operand.vmem [shape: f32[1,32], index: 6, kind: input, shape index: {}]   ;;  %s1953_s7 = inlined_call_operand.vmem [shape: f32[1,32], index: 7, kind: input, shape index: {}]   ;;  %s1954_s8 = inlined_call_operand.vmem [shape: bf16[32,64], index: 8, kind: input, shape index: {}]   ;;  %s1955_s9 = inlined_call_operand.vmem [shape: f32[1,64], index: 9, kind: input, shape index: {}]   ;;  %s1956_s10 = inlined_call_operand.vmem [shape: bf16[64,32], index: 10, kind: input, shape index: {}]   ;;  %s1957_s11 = inlined_call_operand.vmem [shape: f32[1,32], index: 11, kind: input, shape index: {}]   ;;  %s1958_s12 = inlined_call_operand.vmem [shape: f32[1,32], index: 12, kind: input, shape index: {}]   ;;  %s1959_s13 = inlined_call_operand.vmem [shape: f32[1,32], index: 13, kind: input, shape index: {}]   ;;  %s1960_s14 = inlined_call_operand.vmem [shape: f32[1,32], index: 14, kind: input, shape index: {}]   ;;  %s1961_s15 = inlined_call_operand.vmem [shape: f32[1,32], index: 15, kind: input, shape index: {}]   ;;  %s1962_s16 = inlined_call_operand.vmem [shape: bf16[2,8,32], index: 16, kind: output, shape index: {}]  }
   0x1   :  { %1963 = sst [smem:[#allocation2_spill]] %s1946_s0 }
   0x2 LB: > { %s1443_s22 = sadd.s32 4294967295, %s1660_s21   ;;  %p1447_p0 = scmp.ge.s32.totalorder %s1660_s21, 1  ;;  %s1660_s21 = sphi %s1763_s21, %s26_s21  }
   0x3   : > { %p469_p1 = scmp.lt.s32.totalorder %s1660_s21, 3 }
   0x5   : > { %p470_p2 = pnand %p1447_p0, %p469_p1 }
   0x6   : > { %p520_p3 = scmp.lt.s32.totalorder (!%p470_p2), %s1443_s22, 1  ;;  %s1964_s30 = sld [smem:[#allocation2_spill]] (!%p470_p2) }
   0x7   : > { %473 = sbr.rel (%p470_p2) target bundleno = 2583 (0xa17), region = 84  ;;  %s1664_s19 = smov (!%p470_p2), 120  }
   0x8   : > { %s1665_s20 = smov (!%p470_p2), 96   ;;  %s1666_s23 = smov (!%p470_p2), 80  }
   0x9   : > { %s1667_s24 = smov (!%p470_p2), 88   ;;  %s1668_s25 = smov (!%p470_p2), 72  }
   0xa   : > { %s1669_s26 = smov (!%p470_p2), 112   ;;  %s1670_s28 = smov (!%p470_p2), 104  }
   0xb   : > { %s1671_s17 = smov (!%p470_p2), 56   ;;  %s1672_s18 = smov (!%p470_p2), 64  }
   0xc   : > { %v1622_v0 = vld [vmem:[%s1948_s2 + $0x8] sm:$0xff]   ;;  %v1662_v1 = vmov 0.0   ;;  %v1623_v2 = vld [vmem:[%s1948_s2] sm:$0xff]   ;;  %vm1663_vm0 = vmmov 0   ;;  %s1966_s22 = smov (!%p520_p3, %s1443_s22), 1  ;;  %vm560_vm1 = vcmask 261120   ;;  %v611_v22 = vlaneseq }
   0xd   : > { %1514 = vmatprep.subr.bf16.mxu0 %v1662_v1  ;;  %1522 = vmatprep.subr.bf16.mxu1 %v1662_v1  ;;  %s1448_s27 = sshll.u32 %s1966_s22, 2  ;;  %v1450_v4 = vld [vmem:[%s1949_s3] ss:$0 sm:$0xff]  ;;  %vm619_vm2 = vcmask 64512   ;;  %vm682_vm4 = vcmask 1043456   ;;  %s1676_s29 = smov 16  }
   0xe   : > { %1515 = vmatpush3.bf16.msra.mxu0 %v1622_v0  ;;  %1518 = vmatprep.mubr.msk.bf16.mxu0 %vm1663_vm0, %v1662_v1  ;;  %s523_s0 = scalar_lea.vmem %s1964_s30, %s1448_s27  ;;  %v612_v24 = vshrl.u32 %v611_v22, 7  ;;  %s1677_s30 = smov 24   ;;  %vm1070_vm5 = vcmask 130048   ;;  %vm1072_vm6 = vcmask 195584   ;;  %vm1275_vm7 = vcmask 523264  }
   0xf   : > { %1516 = vmatprep.subr.bf16.mxu0 %v1662_v1  ;;  %1524 = vmatprep.mubr.msk.bf16.mxu1 %vm1663_vm0, %v1662_v1  ;;  %v1793_v3 = vld [vmem:[%s523_s0] sm:$0xf]  ;;  %s526_s0 = scalar_lea.vmem %s1947_s1, %s1966_s22  ;;  %vm1379_vm8 = vcmask 257024  }
  0x10   : > { %v534_v23 = vld [vmem:[%s526_s0] sm:$0x1]  ;;  %v613_v25 = vsub.s32 0, %v612_v24 }
  0x11   : > { %vm535_vm3 = vcmp.eq.s32.totalorder %v534_v23, 0 }
  0x12   : > { %1517 = vmatpush3.bf16.msra.mxu0 %v1623_v2  ;;  %v536_v26 = vsel %vm535_vm3, -1e+30, %v1662_v1 }
  0x13   : > { %1528 = vmatprep.subr.bf16.mxu0 %v1662_v1  ;;  %v614_v27 = vrot.slane %v536_v26, %v613_v25 }
  0x15   : > { %1519 = vmatmul.mubr.msk.bf16.vlgmr.msra.gmra.mxu0 %vm560_vm1, %v1793_v3 }
  0x16   : > { %1530 = vmatprep.mubr.msk.bf16.mxu0 %vm1663_vm0, %v1662_v1 }
  0xd5   : > { %v598_v5 = vpop.f32.mrf.mxu0 }
  0xd6   : > { %v599_v6 = vadd.f32 %v1450_v4, %v598_v5 }
  0xd7   : > { %v1520_v7 = vpop.f32.mrf.mxu0 }
  0xd8   : > { %v1802_v8 = vpack.c.bf16 %v599_v6, %v599_v6 }
  0xd9   : > { %v601_v9 = vpop.f32.mrf.mxu0 }
  0xda   : > { %727 = vrot.lane.b32.xlu1 %v1802_v8, %s1664_s19  ;;  %617 = vrot.lane.b32.xlu0 %v1802_v8, %s1665_s20  ;;  %s1673_s19 = smov 40   ;;  %s1674_s20 = smov 48  }
  0xdb   : > { %v1521_v10 = vpop.f32.mrf.mxu0 }
  0xde   : > { %839 = vrot.lane.b32.xlu1 %v1802_v8, %s1666_s23  ;;  %729 = vrot.lane.b32.xlu0 %v1802_v8, %s1667_s24  ;;  %s1675_s23 = smov 8  }
  0xe2   : > { %949 = vrot.lane.b32.xlu1 %v1802_v8, %s1668_s25  ;;  %837 = vrot.lane.b32.xlu0 %v1802_v8, %s1669_s26  ;;  %s530_s26 = scalar_lea.vmem %s1962_s16, %s1448_s27 }
  0xe6   : > { %947 = vrot.lane.b32.xlu0 %v1802_v8, %s1670_s28 }
 0x14c   : > { %v618_v11 = vpop.permute.xlu0 %617  ;;  %v728_v14 = vpop.permute.xlu1 %727 }
 0x14d   : > { %v624_v12 = vsel %vm619_vm2, %v618_v11, 0 }
 0x14e   : > { %1523 = vmatpush3.bf16.xpose.msra.mxu1 %v624_v12 }
 0x14f   : > { %1534 = vmatprep.subr.bf16.mxu1 %v1662_v1 }
 0x150   : > { %v730_v13 = vpop.permute.xlu0 %729  ;;  %v840_v16 = vpop.permute.xlu1 %839 }
 0x151   : > { %v735_v15 = vsel %vm619_vm2, %v730_v13, 0  ;;  %v845_v17 = vsel %vm619_vm2, %v840_v16, 0 }
 0x154   : > { %v950_v18 = vpop.permute.xlu1 %949  ;;  %v838_v19 = vpop.permute.xlu0 %837 }
 0x155   : > { %1525 = vmatmul.mubr.msk.bf16.vlgmr.msra.gmra.mxu1 %vm619_vm2, %v1802_v8  ;;  %v955_v20 = vsel %vm619_vm2, %v950_v18, 0 }
 0x156   : > { %1535 = vmatpush3.bf16.xpose.msra.mxu1 %v735_v15  ;;  %1536 = vmatprep.mubr.msk.bf16.mxu1 %vm1663_vm0, %v1662_v1 }
 0x157   : > { %1546 = vmatprep.subr.bf16.mxu1 %v1662_v1 }
 0x158   : > { %v948_v21 = vpop.permute.xlu0 %947 }
 0x15d   : > { %1537 = vmatmul.mubr.msk.bf16.vlgmr.msra.gmra.mxu1 %vm619_vm2, %v728_v14 }
 0x15e   : > { %1547 = vmatpush3.bf16.xpose.msra.mxu1 %v845_v17  ;;  %1548 = vmatprep.mubr.msk.bf16.mxu1 %vm1663_vm0, %v1662_v1 }
 0x15f   : > { %1558 = vmatprep.subr.bf16.mxu1 %v1662_v1 }
 0x165   : > { %1549 = vmatmul.mubr.msk.bf16.vlgmr.msra.gmra.mxu1 %vm619_vm2, %v838_v19 }
 0x166   : > { %1559 = vmatpush3.bf16.xpose.msra.mxu1 %v955_v20  ;;  %1560 = vmatprep.mubr.msk.bf16.mxu1 %vm1663_vm0, %v1662_v1 }
 0x167   : > { %1570 = vmatprep.subr.bf16.mxu1 %v1662_v1 }
 0x16d   : > { %1561 = vmatmul.mubr.msk.bf16.vlgmr.msra.gmra.mxu1 %vm619_vm2, %v948_v21 }
 0x16e   : > { %1574 = vmatprep.mubr.msk.bf16.mxu1 %vm1663_vm0, %v1662_v1 }
 0x215   : > { %v660_v28 = vpop.f32.mrf.mxu1 }
 0x216   : > { %v661_v29 = vadd.f32 %v660_v28, %v614_v27 }
 0x217   : > { %v1526_v30 = vpop.f32.mrf.mxu1 }
 0x218   : > { %v666_v31 = vsel %vm619_vm2, %v661_v29, -inf }
 0x219   : > { %667 = vmax.xlane.f32.xlu1 %v666_v31  ;;  %v663_v32 = vpop.f32.mrf.mxu1 }
 0x21b   : > { %v1527_v33 = vpop.f32.mrf.mxu1 }
 0x21d   : > { %v771_v34 = vpop.f32.mrf.mxu1 }
 0x21e   : > { %v772_v35 = vadd.f32 %v771_v34, %v614_v27  ;;  %v1624_v34 = vld [vmem:[%s1950_s4 + $0x8] sm:$0xff]  }
 0x21f   : > { %v1538_v36 = vpop.f32.mrf.mxu1  ;;  %1571 = vmatpush3.bf16.msra.mxu1 %v1624_v34 }
 0x220   : > { %v777_v37 = vsel %vm619_vm2, %v772_v35, -inf  ;;  %1572 = vmatprep.subr.bf16.mxu1 %v1662_v1 }
 0x221   : > { %778 = vmax.xlane.f32.xlu0 %v777_v37  ;;  %v774_v38 = vpop.f32.mrf.mxu1 }
 0x222   : > { %v1625_v38 = vld [vmem:[%s1950_s4] sm:$0xff]  }
 0x223   : > { %v1539_v39 = vpop.f32.mrf.mxu1  ;;  %1573 = vmatpush3.bf16.msra.mxu1 %v1625_v38 }
 0x224   : > { %1586 = vmatprep.subr.bf16.mxu1 %v1662_v1 }
 0x225   : > { %v881_v40 = vpop.f32.mrf.mxu1 }
 0x226   : > { %v882_v41 = vadd.f32 %v881_v40, %v614_v27 }
 0x227   : > { %v1550_v42 = vpop.f32.mrf.mxu1 }
 0x228   : > { %v887_v43 = vsel %vm619_vm2, %v882_v41, -inf }
 0x229   : > { %888 = vmax.xlane.f32.xlu0 %v887_v43  ;;  %v884_v44 = vpop.f32.mrf.mxu1 }
 0x22a   : > { %788 = vrot.lane.b32.xlu1 %v1802_v8, %s1671_s17 }
 0x22b   : > { %v1551_v45 = vpop.f32.mrf.mxu1 }
 0x22d   : > { %v991_v46 = vpop.f32.mrf.mxu1 }
 0x22e   : > { %v992_v50 = vadd.f32 %v991_v46, %v614_v27 }
 0x22f   : > { %v1562_v47 = vpop.f32.mrf.mxu1 }
 0x230   : > { %v997_v51 = vsel %vm619_vm2, %v992_v50, -inf }
 0x231   : > { %v994_v48 = vpop.f32.mrf.mxu1 }
 0x233   : > { %v1563_v49 = vpop.f32.mrf.mxu1 }
 0x23f   : > { %677 = vrot.lane.b32.xlu0 %v1802_v8, %s1672_s18 }
 0x243   : > { %1008 = vrot.lane.b32.xlu0 %v1802_v8, %s1673_s19 }
 0x24e   : > { %998 = vmax.xlane.f32.xlu1 %v997_v51 }
 0x25f   : > { %898 = vrot.lane.b32.xlu1 %v1802_v8, %s1674_s20 }
 0x2a2   : > { %v668_v52 = vpop.xlane.xlu1 %667 }
 0x2a3   : > { %v669_v53 = vsub.f32 %v661_v29, %v668_v52 }
 0x2a5   : > { %v670_v54 = vmul.f32 1.442695, %v669_v53 }
 0x2a6   : > { %v789_v0 = vpop.permute.xlu1 %788 }
 0x2a7   : > { %1632 = vpow2.f32 %v670_v54  ;;  %v794_v4 = vsel %vm682_vm4, %v789_v0, 0 }
 0x2aa   : > { %v779_v55 = vpop.xlane.xlu0 %778 }
 0x2ab   : > { %v780_v56 = vsub.f32 %v772_v35, %v779_v55 }
 0x2ad   : > { %v781_v57 = vmul.f32 1.442695, %v780_v56 }
 0x2af   : > { %1634 = vpow2.f32 %v781_v57 }
 0x2b2   : > { %v889_v58 = vpop.xlane.xlu0 %888 }
 0x2b3   : > { %v890_v59 = vsub.f32 %v882_v41, %v889_v58 }
 0x2b4   : > { %v1633_v61 = vpop.eup %1632 }
 0x2b5   : > { %v891_v60 = vmul.f32 1.442695, %v890_v59  ;;  %v676_v2 = vpack.c.bf16 %v1633_v61, %v1633_v61  ;;  %v672_v7 = vsel %vm619_vm2, %v1633_v61, 0.0  ;;  %v1462_v59 = vld [vmem:[%s1951_s5] ss:$0 sm:$0xff] }
 0x2b6   : > { %v678_v62 = vpop.permute.xlu0 %677 }
 0x2b7   : > { %1636 = vpow2.f32 %v891_v60  ;;  %v684_v63 = vsel %vm682_vm4, %v678_v62, 0  ;;  %v533_v60 = vunpack.c.l.bf16 %v1793_v3  ;;  %v1626_v3 = vld [vmem:[%s1954_s8 + $0x8] sm:$0xff]  }
 0x2b8   : > { %1529 = vmatpush3.bf16.msra.mxu0 %v684_v63 }
 0x2b9   : > { %1540 = vmatprep.subr.bf16.mxu0 %v1662_v1 }
 0x2ba   : > { %v1009_v16 = vpop.permute.xlu0 %1008 }
 0x2bb   : > { %1531 = vmatmul.mubr.msk.bf16.vlgmr.msra.gmra.mxu0 %vm619_vm2, %v676_v2  ;;  %v1014_v18 = vsel %vm682_vm4, %v1009_v16, 0 }
 0x2bc   : > { %v1635_v5 = vpop.eup %1634  ;;  %1541 = vmatpush3.bf16.msra.mxu0 %v794_v4  ;;  %1542 = vmatprep.mubr.msk.bf16.mxu0 %vm1663_vm0, %v1662_v1 }
 0x2bd   : > { %v783_v6 = vsel %vm619_vm2, %v1635_v5, 0.0  ;;  %1552 = vmatprep.subr.bf16.mxu0 %v1662_v1  ;;  %v787_v8 = vpack.c.bf16 %v1635_v5, %v1635_v5 }
 0x2be   : > { %784 = vadd.xlane.f32.xlu1 %v783_v6 }
 0x2c2   : > { %673 = vadd.xlane.f32.xlu1 %v672_v7 }
 0x2c3   : > { %1543 = vmatmul.mubr.msk.bf16.vlgmr.msra.gmra.mxu0 %vm619_vm2, %v787_v8 }
 0x2c4   : > { %v1637_v9 = vpop.eup %1636  ;;  %1554 = vmatprep.mubr.msk.bf16.mxu0 %vm1663_vm0, %v1662_v1 }
 0x2c5   : > { %v893_v10 = vsel %vm619_vm2, %v1637_v9, 0.0  ;;  %v897_v17 = vpack.c.bf16 %v1637_v9, %v1637_v9 }
 0x2c6   : > { %894 = vadd.xlane.f32.xlu0 %v893_v10 }
 0x2d7   : > { %v999_v11 = vpop.xlane.xlu1 %998 }
 0x2d8   : > { %v1000_v12 = vsub.f32 %v992_v50, %v999_v11  ;;  %v1627_v11 = vld [vmem:[%s1954_s8] sm:$0xff]  }
 0x2da   : > { %v1001_v13 = vmul.f32 1.442695, %v1000_v12  ;;  %v1628_v12 = vld [vmem:[%s1956_s10 + $0x18] sm:$0xff]  }
 0x2db   : > { %v899_v14 = vpop.permute.xlu1 %898 }
 0x2dc   : > { %1638 = vpow2.f32 %v1001_v13  ;;  %v904_v15 = vsel %vm682_vm4, %v899_v14, 0  ;;  %v1629_v13 = vld [vmem:[%s1956_s10 + $0x10] sm:$0xff]  }
 0x2dd   : > { %1553 = vmatpush3.bf16.msra.mxu0 %v904_v15 }
 0x2de   : > { %1564 = vmatprep.subr.bf16.mxu0 %v1662_v1 }
 0x2e0   : > { %1555 = vmatmul.mubr.msk.bf16.vlgmr.msra.gmra.mxu0 %vm619_vm2, %v897_v17 }
 0x2e1   : > { %1565 = vmatpush3.bf16.msra.mxu0 %v1014_v18  ;;  %1566 = vmatprep.mubr.msk.bf16.mxu0 %vm1663_vm0, %v1662_v1  ;;  %v1466_v18 = vld [vmem:[%s1952_s6] ss:$0 sm:$0xff] }
 0x2e2   : > { %1578 = vmatprep.subr.bf16.mxu0 %v1662_v1 }
 0x2e9   : > { %v1639_v19 = vpop.eup %1638 }
 0x2ea   : > { %v1003_v20 = vsel %vm619_vm2, %v1639_v19, 0.0  ;;  %v1007_v21 = vpack.c.bf16 %v1639_v19, %v1639_v19 }
 0x2eb   : > { %1004 = vadd.xlane.f32.xlu0 %v1003_v20  ;;  %v1467_v20 = vld [vmem:[%s1953_s7] ss:$0 sm:$0xff] }
 0x2ec   : > { %1567 = vmatmul.mubr.msk.bf16.vlgmr.msra.gmra.mxu0 %vm619_vm2, %v1007_v21 }
 0x2ed   : > { %1582 = vmatprep.mubr.msk.bf16.mxu0 %vm1663_vm0, %v1662_v1  ;;  %1579 = vmatpush3.bf16.msra.mxu0 %v1626_v3 }
 0x2ee   : > { %1580 = vmatprep.subr.bf16.mxu0 %v1662_v1 }
 0x2f1   : > { %1581 = vmatpush3.bf16.msra.mxu0 %v1627_v11 }
 0x347   : > { %v785_v22 = vpop.xlane.xlu1 %784 }
 0x348   : > { %1640 = vrcp.f32 %v785_v22 }
 0x34b   : > { %v674_v49 = vpop.xlane.xlu1 %673 }
 0x34f   : > { %v895_v33 = vpop.xlane.xlu0 %894 }
 0x350   : > { %1642 = vrcp.f32 %v895_v33 }
 0x355   : > { %v1641_v27 = vpop.eup %1640 }
 0x35d   : > { %v1643_v36 = vpop.eup %1642 }
 0x374   : > { %v1005_v35 = vpop.xlane.xlu0 %1004 }
 0x375   : > { %1644 = vrcp.f32 %v1005_v35 }
 0x376   : > { %1646 = vrcp.f32 %v674_v49 }
 0x37b   : > { %v720_v23 = vpop.f32.mrf.mxu0 }
 0x37d   : > { %v1532_v24 = vpop.f32.mrf.mxu0 }
 0x37e   : > { %v1630_v24 = vld [vmem:[%s1956_s10 + $0x8] sm:$0xff]  }
 0x37f   : > { %v723_v25 = vpop.f32.mrf.mxu0 }
 0x380   : > { %v1631_v25 = vld [vmem:[%s1956_s10] sm:$0xff]  }
 0x381   : > { %v1533_v26 = vpop.f32.mrf.mxu0 }
 0x382   : > { %v1645_v43 = vpop.eup %1644  ;;  %v1468_v26 = vld [vmem:[%s1955_s9] ss:$0 sm:$0xff] }
 0x383   : > { %v830_v28 = vpop.f32.mrf.mxu0  ;;  %v1647_v50 = vpop.eup %1646 }
 0x384   : > { %v836_v29 = vmul.f32 %v1641_v27, %v830_v28  ;;  %v726_v53 = vmul.f32 %v1647_v50, %v720_v23  ;;  %v1478_v50 = vld [vmem:[%s1958_s12] ss:$0 sm:$0xff] }
 0x385   : > { %v1544_v30 = vpop.f32.mrf.mxu0 }
 0x386   : > { %1058 = vrot.lane.b32.xlu0 %v836_v29, %s1675_s23 }
 0x387   : > { %v833_v31 = vpop.f32.mrf.mxu0 }
 0x389   : > { %v1545_v32 = vpop.f32.mrf.mxu0 }
 0x3a0   : > { %v940_v37 = vpop.f32.mrf.mxu0 }
 0x3a1   : > { %v946_v39 = vmul.f32 %v1643_v36, %v940_v37 }
 0x3a2   : > { %v1556_v40 = vpop.f32.mrf.mxu0 }
 0x3a3   : > { %1062 = vrot.lane.b32.xlu1 %v946_v39, %s1676_s29 }
 0x3a4   : > { %v943_v41 = vpop.f32.mrf.mxu0 }
 0x3a6   : > { %v1557_v42 = vpop.f32.mrf.mxu0 }
 0x3ac   : > { %v1050_v44 = vpop.f32.mrf.mxu0 }
 0x3ad   : > { %v1056_v45 = vmul.f32 %v1645_v43, %v1050_v44 }
 0x3ae   : > { %v1568_v46 = vpop.f32.mrf.mxu0 }
 0x3af   : > { %1066 = vrot.lane.b32.xlu1 %v1056_v45, %s1677_s30 }
 0x3b0   : > { %v1053_v47 = vpop.f32.mrf.mxu0 }
 0x3b2   : > { %v1569_v48 = vpop.f32.mrf.mxu0 }
 0x3f8   : > { %v1059_v51 = vpop.permute.xlu0 %1058 }
 0x3f9   : > { %v1069_v54 = vsel %vm619_vm2, %v726_v53, %v1059_v51 }
 0x415   : > { %v1063_v52 = vpop.permute.xlu1 %1062 }
 0x416   : > { %v1071_v55 = vsel %vm1070_vm5, %v1069_v54, %v1063_v52  ;;  %v1479_v52 = vld [vmem:[%s1959_s13] ss:$0 sm:$0xff] }
 0x421   : > { %v1067_v56 = vpop.permute.xlu1 %1066 }
 0x422   : > { %v1073_v57 = vsel %vm1072_vm6, %v1071_v55, %v1067_v56 }
 0x423   : > { %v1074_v58 = vpack.c.bf16 %v1073_v57, %v1073_v57 }
 0x425   : > { %1575 = vmatmul.mubr.msk.bf16.vlgmr.msra.gmra.mxu1 %vm560_vm1, %v1074_v58 }
 0x426   : > { %1594 = vmatprep.mubr.msk.bf16.mxu1 %vm1663_vm0, %v1662_v1  ;;  %1587 = vmatpush3.bf16.msra.mxu1 %v1628_v12 }
 0x427   : > { %1588 = vmatprep.subr.bf16.mxu1 %v1662_v1 }
 0x42a   : > { %1589 = vmatpush3.bf16.msra.mxu1 %v1629_v13 }
 0x42b   : > { %1590 = vmatprep.subr.bf16.mxu1 %v1662_v1 }
 0x42e   : > { %1591 = vmatpush3.bf16.msra.mxu1 %v1630_v24 }
 0x42f   : > { %1592 = vmatprep.subr.bf16.mxu1 %v1662_v1  ;;  %v1472_v1 = vld [vmem:[%s1957_s11] ss:$0 sm:$0xff] }
 0x432   : > { %1593 = vmatpush3.bf16.msra.mxu1 %v1631_v25 }
 0x4e5   : > { %v1130_v61 = vpop.f32.mrf.mxu1 }
 0x4e6   : > { %v1131_v62 = vadd.f32 %v1462_v59, %v1130_v61 }
 0x4e7   : > { %v1576_v63 = vpop.f32.mrf.mxu1 }
 0x4e8   : > { %v1136_v0 = vadd.f32 %v1131_v62, %v533_v60 }
 0x4e9   : > { %v1133_v2 = vpop.f32.mrf.mxu1 }
 0x4ea   : > { %v1139_v4 = vsel %vm560_vm1, %v1136_v0, 0.0  ;;  %v1480_v2 = vld [vmem:[%s1960_s14] ss:$0 sm:$0xff] }
 0x4eb   : > { %v1577_v5 = vpop.f32.mrf.mxu1  ;;  %1140 = vadd.xlane.f32.xlu0 %v1139_v4 }
 0x4ec   : > { %v1481_v5 = vld [vmem:[%s1961_s15] ss:$0 sm:$0xff] }
 0x574   : > { %v1141_v6 = vpop.xlane.xlu0 %1140 }
 0x575   : > { %v1143_v7 = vmul.f32 0.03125, %v1141_v6 }
 0x577   : > { %v1144_v8 = vsub.f32 %v1136_v0, %v1143_v7 }
 0x579   : > { %v1145_v9 = vmul.f32 %v1144_v8, %v1144_v8 }
 0x57b   : > { %v1146_v10 = vsel %vm560_vm1, %v1145_v9, 0.0 }
 0x57c   : > { %1147 = vadd.xlane.f32.xlu1 %v1146_v10 }
 0x605   : > { %v1148_v14 = vpop.xlane.xlu1 %1147 }
 0x606   : > { %v1149_v15 = vmul.f32 0.03125, %v1148_v14 }
 0x608   : > { %v1150_v16 = vadd.f32 1e-05, %v1149_v15 }
 0x60a   : > { %1648 = vrsqrt.f32 %v1150_v16 }
 0x617   : > { %v1649_v17 = vpop.eup %1648 }
 0x618   : > { %v1152_v19 = vmul.f32 %v1649_v17, %v1144_v8 }
 0x61a   : > { %v1159_v21 = vmul.f32 %v1466_v18, %v1152_v19 }
 0x61c   : > { %v1166_v22 = vadd.f32 %v1467_v20, %v1159_v21 }
 0x61e   : > { %v1171_v23 = vpack.c.bf16 %v1166_v22, %v1166_v22 }
 0x620   : > { %1583 = vmatmul.mubr.msk.bf16.vlgmr.msra.gmra.mxu0 %vm560_vm1, %v1171_v23 }
 0x6e0   : > { %v1228_v27 = vpop.f32.mrf.mxu0 }
 0x6e1   : > { %v1229_v28 = vadd.f32 %v1468_v26, %v1228_v27 }
 0x6e2   : > { %v1584_v29 = vpop.f32.mrf.mxu0 }
 0x6e3   : > { %v1234_v30 = vmax.f32 %v1229_v28, 0.0 }
 0x6e4   : > { %v1231_v31 = vpop.f32.mrf.mxu0 }
 0x6e5   : > { %v1243_v32 = vpack.c.bf16 %v1234_v30, %v1234_v30 }
 0x6e6   : > { %v1585_v33 = vpop.f32.mrf.mxu0 }
 0x6e7   : > { %1595 = vmatmul.mubr.msk.bf16.vlgmr.msra.gmra.mxu1 %vm1275_vm7, %v1243_v32 }
 0x7a7   : > { %v1313_v34 = vpop.f32.mrf.mxu1 }
 0x7a8   : > { %v1314_v35 = vadd.f32 %v1472_v1, %v1313_v34 }
 0x7a9   : > { %v1596_v36 = vpop.f32.mrf.mxu1 }
 0x7aa   : > { %v1319_v37 = vadd.f32 %v1314_v35, %v1166_v22 }
 0x7ab   : > { %v1316_v38 = vpop.f32.mrf.mxu1 }
 0x7ac   : > { %v1322_v39 = vsel %vm560_vm1, %v1319_v37, 0.0 }
 0x7ad   : > { %1323 = vadd.xlane.f32.xlu0 %v1322_v39  ;;  %v1597_v40 = vpop.f32.mrf.mxu1 }
 0x836   : > { %v1324_v41 = vpop.xlane.xlu0 %1323 }
 0x837   : > { %v1325_v42 = vmul.f32 0.03125, %v1324_v41 }
 0x839   : > { %v1326_v43 = vsub.f32 %v1319_v37, %v1325_v42 }
 0x83b   : > { %v1327_v44 = vmul.f32 %v1326_v43, %v1326_v43 }
 0x83d   : > { %v1328_v45 = vsel %vm560_vm1, %v1327_v44, 0.0 }
 0x83e   : > { %1329 = vadd.xlane.f32.xlu0 %v1328_v45 }
 0x8c7   : > { %v1330_v46 = vpop.xlane.xlu0 %1329 }
 0x8c8   : > { %v1331_v47 = vmul.f32 0.03125, %v1330_v46 }
 0x8ca   : > { %v1332_v48 = vadd.f32 1e-05, %v1331_v47 }
 0x8cc   : > { %1650 = vrsqrt.f32 %v1332_v48 }
 0x8d9   : > { %v1651_v49 = vpop.eup %1650 }
 0x8da   : > { %v1334_v51 = vmul.f32 %v1651_v49, %v1326_v43 }
 0x8dc   : > { %v1341_v53 = vmul.f32 %v1478_v50, %v1334_v51 }
 0x8de   : > { %v1348_v54 = vadd.f32 %v1479_v52, %v1341_v53 }
 0x8e0   : > { %v1351_v55 = vsel %vm560_vm1, %v1348_v54, 0.0 }
 0x8e1   : > { %1352 = vadd.xlane.f32.xlu1 %v1351_v55 }
 0x96a   : > { %v1353_v56 = vpop.xlane.xlu1 %1352 }
 0x96b   : > { %v1354_v57 = vmul.f32 0.03125, %v1353_v56 }
 0x96d   : > { %v1355_v58 = vsub.f32 %v1348_v54, %v1354_v57 }
 0x96f   : > { %v1356_v59 = vmul.f32 %v1355_v58, %v1355_v58 }
 0x971   : > { %v1357_v60 = vsel %vm560_vm1, %v1356_v59, 0.0 }
 0x972   : > { %1358 = vadd.xlane.f32.xlu0 %v1357_v60 }
 0x9fb   : > { %v1359_v61 = vpop.xlane.xlu0 %1358 }
 0x9fc   : > { %v1360_v62 = vmul.f32 0.03125, %v1359_v61 }
 0x9fe   : > { %v1361_v63 = vadd.f32 1e-05, %v1360_v62 }
 0xa00   : > { %1652 = vrsqrt.f32 %v1361_v63 }
 0xa0d   : > { %v1653_v0 = vpop.eup %1652 }
 0xa0e   : > { %v1363_v4 = vmul.f32 %v1653_v0, %v1355_v58 }
 0xa10   : > { %v1370_v6 = vmul.f32 %v1480_v2, %v1363_v4 }
 0xa12   : > { %v1377_v7 = vadd.f32 %v1481_v5, %v1370_v6 }
 0xa14   : > { %v1378_v8 = vpack.c.bf16 %v1377_v7, %v1377_v7 }
 0xa16   : > { %1380 = vst.msk [vmem:[%s530_s26] sm:$0xf] %vm1379_vm8, %v1378_v8 }
 0xa17 PF: > { %s26_s21 = sadd.s32 1, %s1660_s21  }
 0xa18   : > { %p23_p4 = scmp.ge.s32.totalorder %s26_s21, 4  }
 0xa1a   :  { %25 = sbr.rel (!%p23_p4) target bundleno = 2 (0x2), region = 117 }

// kernel: _lambda_.7
= control target key start
LH: loop header
LB: loop body
LE: loop exit
PB: predicated region body
PF: predicated region fallthrough
CT: control target
= control target key end

     0   :  { %s3073_s0 = inlined_call_operand.vmem [shape: bf16[2,6,32], index: 0, kind: input, shape index: {}]   ;;  %s3074_s1 = inlined_call_operand.vmem [shape: bf16[2,8,32], index: 1, kind: input, shape index: {}]   ;;  %s3075_s2 = inlined_call_operand.vmem [shape: bf16[32,96], index: 2, kind: input, shape index: {}]   ;;  %s3076_s3 = inlined_call_operand.vmem [shape: f32[1,96], index: 3, kind: input, shape index: {}]   ;;  %s3077_s4 = inlined_call_operand.vmem [shape: bf16[32,32], index: 4, kind: input, shape index: {}]   ;;  %s3078_s5 = inlined_call_operand.vmem [shape: f32[1,32], index: 5, kind: input, shape index: {}]   ;;  %s3079_s6 = inlined_call_operand.vmem [shape: f32[1,32], index: 6, kind: input, shape index: {}]   ;;  %s3080_s7 = inlined_call_operand.vmem [shape: f32[1,32], index: 7, kind: input, shape index: {}]   ;;  %s3081_s8 = inlined_call_operand.vmem [shape: bf16[32,32], index: 8, kind: input, shape index: {}]   ;;  %s3082_s9 = inlined_call_operand.vmem [shape: f32[1,32], index: 9, kind: input, shape index: {}]   ;;  %s3083_s10 = inlined_call_operand.vmem [shape: bf16[32,64], index: 10, kind: input, shape index: {}]   ;;  %s3084_s11 = inlined_call_operand.vmem [shape: f32[1,64], index: 11, kind: input, shape index: {}]   ;;  %s3085_s12 = inlined_call_operand.vmem [shape: bf16[32,32], index: 12, kind: input, shape index: {}]   ;;  %s3086_s13 = inlined_call_operand.vmem [shape: f32[1,32], index: 13, kind: input, shape index: {}]   ;;  %s3087_s14 = inlined_call_operand.vmem [shape: f32[1,32], index: 14, kind: input, shape index: {}]   ;;  %s3088_s15 = inlined_call_operand.vmem [shape: f32[1,32], index: 15, kind: input, shape index: {}]   ;;  %s3089_s16 = inlined_call_operand.vmem [shape: bf16[32,64], index: 16, kind: input, shape index: {}]   ;;  %s3090_s17 = inlined_call_operand.vmem [shape: f32[1,64], index: 17, kind: input, shape index: {}]   ;;  %s3091_s18 = inlined_call_operand.vmem [shape: bf16[64,32], index: 18, kind: input, shape index: {}]   ;;  %s3092_s19 = inlined_call_operand.vmem [shape: f32[1,32], index: 19, kind: input, shape index: {}]   ;;  %s3093_s20 = inlined_call_operand.vmem [shape: f32[1,32], index: 20, kind: input, shape index: {}]   ;;  %s3094_s21 = inlined_call_operand.vmem [shape: f32[1,32], index: 21, kind: input, shape index: {}]   ;;  %s3095_s22 = inlined_call_operand.vmem [shape: bf16[2,6,32], index: 22, kind: output, shape index: {}]  }
   0x1   :  { %3105 = sst [smem:[#allocation2_spill]] %s3073_s0 }
   0x2   :  { %3106 = sst [smem:[#allocation3_spill]] %s3074_s1 }
   0x3   :  { %3107 = sst [smem:[#allocation4_spill]] %s3075_s2 }
   0x4   :  { %3108 = sst [smem:[#allocation5_spill]] %s3076_s3  ;;  %s2760_s3 = smov 0  }
   0x5   :  { %3109 = sst [smem:[#allocation6_spill]] %s3077_s4 }
   0x6   :  { %3110 = sst [smem:[#allocation7_spill]] %s3078_s5 }
   0x7   :  { %3111 = sst [smem:[#allocation8_spill]] %s3079_s6 }
   0x8 LB: > { %s2270_s28 = sadd.s32 4294967295, %s2627_s3   ;;  %p2274_p0 = scmp.ge.s32.totalorder %s2627_s3, 1  ;;  %s2627_s3 = sphi %s2760_s3, %s32_s3  }
   0x9   : > { %p620_p1 = scmp.lt.s32.totalorder %s2627_s3, 3 }
   0xb   : > { %p621_p2 = pnand %p2274_p0, %p620_p1 }
   0xc   : > { %s3112_s4 = sld [smem:[#allocation4_spill]] (!%p621_p2)  ;;  %p684_p3 = scmp.lt.s32.totalorder (!%p621_p2), %s2270_s28, 1 }
   0xd   : > { %624 = sbr.rel (%p621_p2) target bundleno = 3785 (0xec9), region = 108  ;;  %s3113_s6 = sld [smem:[#allocation2_spill]] (!%p621_p2) }
   0xe   : > { %s3114_s27 = sld [smem:[#allocation5_spill]] (!%p621_p2)  ;;  %s3104_s29 = smov (!%p621_p2), 96  }
   0xf   : > { %s3103_s30 = smov (!%p621_p2), 80   ;;  %s3098_s0 = smov (!%p621_p2), 88  }
  0x10   : > { %s3102_s23 = smov (!%p621_p2), 72   ;;  %s2636_s5 = smov (!%p621_p2), 112  }
  0x11   : > { %s2637_s24 = smov (!%p621_p2), 104   ;;  %s2640_s26 = smov (!%p621_p2), 40  }
  0x12   : > { %v2567_v0 = vld [vmem:[%s3112_s4 + $0x8] sm:$0xff]   ;;  %v2629_v1 = vmov 0.0   ;;  %v2568_v2 = vld [vmem:[%s3112_s4] sm:$0xff]   ;;  %vm2630_vm0 = vmmov 0   ;;  %s3127_s28 = smov (!%p684_p3, %s2270_s28), 1  ;;  %vm723_vm1 = vcmask 261120   ;;  %v772_v22 = vlaneseq }
  0x13   : > { %2387 = vmatprep.subr.bf16.mxu1 %v2629_v1  ;;  %2401 = vmatprep.subr.bf16.mxu0 %v2629_v1  ;;  %s2781_s1 = sshll.u32 %s3127_s28, 2  ;;  %s2631_s28 = smov 120   ;;  %vm782_vm2 = vcmask 64512   ;;  %vm829_vm4 = vcmask 46080   ;;  %vm847_vm5 = vcmask 1042432   ;;  %vm843_vm6 = vcmask 48128  }
  0x14   : > { %2388 = vmatpush3.bf16.msra.mxu1 %v2567_v0  ;;  %2391 = vmatprep.mubr.msk.bf16.mxu1 %vm2630_vm0, %v2629_v1  ;;  %s687_s25 = scalar_lea.vmem %s3113_s6, %s2781_s1  ;;  %v2278_v4 = vld [vmem:[%s3114_s27] ss:$0 sm:$0xff]  ;;  %v773_v23 = vshrl.u32 %v772_v22, 7  ;;  %v775_v24 = vand.u32 127, %v772_v22  ;;  %s2638_s6 = smov 56   ;;  %vm1235_vm7 = vcmask 130048  }
  0x15   : > { %2389 = vmatprep.subr.bf16.mxu1 %v2629_v1  ;;  %2403 = vmatprep.mubr.msk.bf16.mxu0 %vm2630_vm0, %v2629_v1  ;;  %v2788_v3 = vld [vmem:[%s687_s25] sm:$0x7]  ;;  %s2639_s25 = smov 64   ;;  %s2641_s2 = smov 48   ;;  %vm1237_vm8 = vcmask 195584   ;;  %vm1304_vm9 = vcmask 259072  }
  0x16   : > { %vm776_vm3 = vcmp.lt.s32.totalorder %v773_v23, %v775_v24  ;;  %s3099_s27 = smov 8   ;;  %vm1537_vm10 = vcmask 1043456   ;;  %vm1519_vm11 = vcmask 62464   ;;  %vm2128_vm12 = vcmask 523264  }
  0x17   : > { %v777_v25 = vsel %vm776_vm3, -1e+30, %v2629_v1  ;;  %vm2203_vm13 = vcmask 256000  }
  0x18   : > { %2390 = vmatpush3.bf16.msra.mxu1 %v2568_v2 }
  0x19   : > { %2395 = vmatprep.subr.bf16.mxu1 %v2629_v1 }
  0x1b   : > { %2392 = vmatmul.mubr.msk.bf16.vlgmr.msra.gmra.mxu1 %vm723_vm1, %v2788_v3 }
  0x1c   : > { %2397 = vmatprep.mubr.msk.bf16.mxu1 %vm2630_vm0, %v2629_v1 }
  0xdb   : > { %v761_v5 = vpop.f32.mrf.mxu1 }
  0xdc   : > { %v762_v6 = vadd.f32 %v2278_v4, %v761_v5 }
  0xdd   : > { %v2393_v7 = vpop.f32.mrf.mxu1 }
  0xde   : > { %v2797_v8 = vpack.c.bf16 %v762_v6, %v762_v6 }
  0xdf   : > { %v764_v9 = vpop.f32.mrf.mxu1 }
  0xe0   : > { %892 = vrot.lane.b32.xlu1 %v2797_v8, %s2631_s28  ;;  %780 = vrot.lane.b32.xlu0 %v2797_v8, %s3104_s29 }
  0xe1   : > { %v2394_v10 = vpop.f32.mrf.mxu1 }
  0xe4   : > { %1004 = vrot.lane.b32.xlu1 %v2797_v8, %s3103_s30  ;;  %894 = vrot.lane.b32.xlu0 %v2797_v8, %s3098_s0  ;;  %s3117_s30 = sld [smem:[#allocation3_spill]]  ;;  %s3123_s0 = smov 8  }
  0xe8   : > { %1114 = vrot.lane.b32.xlu1 %v2797_v8, %s3102_s23  ;;  %1002 = vrot.lane.b32.xlu0 %v2797_v8, %s2636_s5  ;;  %s3118_s23 = sld [smem:[#allocation8_spill]] }
  0xea   : > { %s691_s29 = scalar_lea.vmem %s3117_s30, %s2781_s1  ;;  %s3119_s30 = smov 96  }
  0xec   : > { %1112 = vrot.lane.b32.xlu0 %v2797_v8, %s2637_s24 }
 0x152   : > { %v781_v11 = vpop.permute.xlu0 %780  ;;  %v893_v14 = vpop.permute.xlu1 %892 }
 0x153   : > { %v787_v12 = vsel %vm782_vm2, %v781_v11, 0 }
 0x154   : > { %2396 = vmatpush3.bf16.xpose.msra.mxu1 %v787_v12 }
 0x155   : > { %2407 = vmatprep.subr.bf16.mxu1 %v2629_v1 }
 0x156   : > { %v895_v13 = vpop.permute.xlu0 %894  ;;  %v1005_v16 = vpop.permute.xlu1 %1004 }
 0x157   : > { %v900_v15 = vsel %vm782_vm2, %v895_v13, 0  ;;  %v1010_v17 = vsel %vm782_vm2, %v1005_v16, 0 }
 0x15a   : > { %v1115_v18 = vpop.permute.xlu1 %1114  ;;  %v1003_v19 = vpop.permute.xlu0 %1002 }
 0x15b   : > { %2398 = vmatmul.mubr.msk.bf16.vlgmr.msra.gmra.mxu1 %vm782_vm2, %v2797_v8  ;;  %v1120_v20 = vsel %vm782_vm2, %v1115_v18, 0 }
 0x15c   : > { %2408 = vmatpush3.bf16.xpose.msra.mxu1 %v900_v15  ;;  %2409 = vmatprep.mubr.msk.bf16.mxu1 %vm2630_vm0, %v2629_v1 }
 0x15d   : > { %2419 = vmatprep.subr.bf16.mxu1 %v2629_v1 }
 0x15e   : > { %v1113_v21 = vpop.permute.xlu0 %1112 }
 0x163   : > { %2410 = vmatmul.mubr.msk.bf16.vlgmr.msra.gmra.mxu1 %vm782_vm2, %v893_v14 }
 0x164   : > { %2420 = vmatpush3.bf16.xpose.msra.mxu1 %v1010_v17  ;;  %2421 = vmatprep.mubr.msk.bf16.mxu1 %vm2630_vm0, %v2629_v1 }
 0x165   : > { %2431 = vmatprep.subr.bf16.mxu1 %v2629_v1 }
 0x16b   : > { %2422 = vmatmul.mubr.msk.bf16.vlgmr.msra.gmra.mxu1 %vm782_vm2, %v1003_v19 }
 0x16c   : > { %2432 = vmatpush3.bf16.xpose.msra.mxu1 %v1120_v20  ;;  %2433 = vmatprep.mubr.msk.bf16.mxu1 %vm2630_vm0, %v2629_v1 }
 0x16d   : > { %2443 = vmatprep.subr.bf16.mxu1 %v2629_v1 }
 0x173   : > { %2434 = vmatmul.mubr.msk.bf16.vlgmr.msra.gmra.mxu1 %vm782_vm2, %v1113_v21 }
 0x174   : > { %2447 = vmatprep.mubr.msk.bf16.mxu1 %vm2630_vm0, %v2629_v1 }
 0x21b   : > { %v823_v26 = vpop.f32.mrf.mxu1 }
 0x21c   : > { %v824_v27 = vadd.f32 %v823_v26, %v777_v25 }
 0x21d   : > { %v2399_v28 = vpop.f32.mrf.mxu1 }
 0x21e   : > { %v830_v29 = vsel %vm829_vm4, %v824_v27, -inf }
 0x21f   : > { %831 = vmax.xlane.f32.xlu1 %v830_v29  ;;  %v826_v30 = vpop.f32.mrf.mxu1 }
 0x221   : > { %v2400_v31 = vpop.f32.mrf.mxu1 }
 0x223   : > { %v936_v32 = vpop.f32.mrf.mxu1 }
 0x224   : > { %v937_v33 = vadd.f32 %v936_v32, %v777_v25 }
 0x225   : > { %v2411_v34 = vpop.f32.mrf.mxu1 }
 0x226   : > { %v942_v35 = vsel %vm829_vm4, %v937_v33, -inf }
 0x227   : > { %943 = vmax.xlane.f32.xlu0 %v942_v35  ;;  %v939_v36 = vpop.f32.mrf.mxu1 }
 0x229   : > { %v2412_v37 = vpop.f32.mrf.mxu1 }
 0x22b   : > { %v1046_v38 = vpop.f32.mrf.mxu1 }
 0x22c   : > { %v1047_v39 = vadd.f32 %v1046_v38, %v777_v25 }
 0x22d   : > { %v2423_v40 = vpop.f32.mrf.mxu1 }
 0x22e   : > { %v1052_v41 = vsel %vm829_vm4, %v1047_v39, -inf }
 0x22f   : > { %1053 = vmax.xlane.f32.xlu0 %v1052_v41  ;;  %v1049_v42 = vpop.f32.mrf.mxu1 }
 0x230   : > { %953 = vrot.lane.b32.xlu1 %v2797_v8, %s2638_s6  ;;  %s3100_s6 = smov 24  }
 0x231   : > { %v2424_v43 = vpop.f32.mrf.mxu1 }
 0x233   : > { %v1156_v44 = vpop.f32.mrf.mxu1 }
 0x234   : > { %v1157_v48 = vadd.f32 %v1156_v44, %v777_v25 }
 0x235   : > { %v2435_v45 = vpop.f32.mrf.mxu1 }
 0x236   : > { %v1162_v49 = vsel %vm829_vm4, %v1157_v48, -inf }
 0x237   : > { %v1159_v46 = vpop.f32.mrf.mxu1 }
 0x239   : > { %v2436_v47 = vpop.f32.mrf.mxu1 }
 0x245   : > { %841 = vrot.lane.b32.xlu0 %v2797_v8, %s2639_s25 }
 0x249   : > { %1173 = vrot.lane.b32.xlu0 %v2797_v8, %s2640_s26  ;;  %s3115_s26 = sld [smem:[#allocation6_spill]] }
 0x24f   : > { %v2569_v32 = vld [vmem:[%s3115_s26 + $0x8] sm:$0xff]   ;;  %v2570_v36 = vld [vmem:[%s3115_s26] sm:$0xff]  }
 0x250   : > { %2444 = vmatpush3.bf16.msra.mxu1 %v2569_v32 }
 0x251   : > { %2445 = vmatprep.subr.bf16.mxu1 %v2629_v1 }
 0x254   : > { %1163 = vmax.xlane.f32.xlu1 %v1162_v49  ;;  %2446 = vmatpush3.bf16.msra.mxu1 %v2570_v36 }
 0x255   : > { %2459 = vmatprep.subr.bf16.mxu1 %v2629_v1 }
 0x265   : > { %1063 = vrot.lane.b32.xlu1 %v2797_v8, %s2641_s2  ;;  %s3116_s2 = sld [smem:[#allocation7_spill]] }
 0x2a8   : > { %v832_v50 = vpop.xlane.xlu1 %831 }
 0x2a9   : > { %v833_v51 = vsub.f32 %v824_v27, %v832_v50 }
 0x2ab   : > { %v834_v52 = vmul.f32 1.442695, %v833_v51 }
 0x2ac   : > { %v954_v62 = vpop.permute.xlu1 %953 }
 0x2ad   : > { %2583 = vpow2.f32 %v834_v52  ;;  %v959_v0 = vsel %vm847_vm5, %v954_v62, 0 }
 0x2b0   : > { %v944_v53 = vpop.xlane.xlu0 %943 }
 0x2b1   : > { %v945_v54 = vsub.f32 %v937_v33, %v944_v53 }
 0x2b3   : > { %v946_v55 = vmul.f32 1.442695, %v945_v54 }
 0x2b5   : > { %2585 = vpow2.f32 %v946_v55 }
 0x2b8   : > { %v1054_v56 = vpop.xlane.xlu0 %1053 }
 0x2b9   : > { %v1055_v57 = vsub.f32 %v1047_v39, %v1054_v56 }
 0x2ba   : > { %v2584_v59 = vpop.eup %2583 }
 0x2bb   : > { %v1056_v58 = vmul.f32 1.442695, %v1055_v57  ;;  %v840_v63 = vpack.c.bf16 %v2584_v59, %v2584_v59  ;;  %v836_v5 = vsel %vm829_vm4, %v2584_v59, 0.0  ;;  %v2290_v57 = vld [vmem:[%s3116_s2] ss:$0 sm:$0xff]  ;;  %s3124_s2 = smov 16  }
 0x2bc   : > { %v842_v60 = vpop.permute.xlu0 %841 }
 0x2bd   : > { %2587 = vpow2.f32 %v1056_v58  ;;  %v849_v61 = vsel %vm847_vm5, %v842_v60, 0  ;;  %v698_v58 = vunpack.c.l.bf16 %v2788_v3  ;;  %v2571_v3 = vld [vmem:[%s3083_s10 + $0x8] sm:$0xff]  }
 0x2be   : > { %2402 = vmatpush3.bf16.msra.mxu0 %v849_v61 }
 0x2bf   : > { %2413 = vmatprep.subr.bf16.mxu0 %v2629_v1 }
 0x2c0   : > { %v1174_v14 = vpop.permute.xlu0 %1173 }
 0x2c1   : > { %2404 = vmatmul.mubr.msk.bf16.vlgmr.msra.gmra.mxu0 %vm843_vm6, %v840_v63  ;;  %v1179_v16 = vsel %vm847_vm5, %v1174_v14, 0 }
 0x2c2   : > { %v2586_v2 = vpop.eup %2585  ;;  %2414 = vmatpush3.bf16.msra.mxu0 %v959_v0  ;;  %2415 = vmatprep.mubr.msk.bf16.mxu0 %vm2630_vm0, %v2629_v1 }
 0x2c3   : > { %v948_v4 = vsel %vm829_vm4, %v2586_v2, 0.0  ;;  %2425 = vmatprep.subr.bf16.mxu0 %v2629_v1  ;;  %v952_v6 = vpack.c.bf16 %v2586_v2, %v2586_v2 }
 0x2c4   : > { %949 = vadd.xlane.f32.xlu1 %v948_v4 }
 0x2c8   : > { %837 = vadd.xlane.f32.xlu1 %v836_v5 }
 0x2c9   : > { %2416 = vmatmul.mubr.msk.bf16.vlgmr.msra.gmra.mxu0 %vm843_vm6, %v952_v6 }
 0x2ca   : > { %v2588_v7 = vpop.eup %2587  ;;  %2427 = vmatprep.mubr.msk.bf16.mxu0 %vm2630_vm0, %v2629_v1 }
 0x2cb   : > { %v1058_v8 = vsel %vm829_vm4, %v2588_v7, 0.0  ;;  %v1062_v15 = vpack.c.bf16 %v2588_v7, %v2588_v7 }
 0x2cc   : > { %1059 = vadd.xlane.f32.xlu0 %v1058_v8 }
 0x2dd   : > { %v1164_v9 = vpop.xlane.xlu1 %1163 }
 0x2de   : > { %v1165_v10 = vsub.f32 %v1157_v48, %v1164_v9  ;;  %v2572_v9 = vld [vmem:[%s3083_s10] sm:$0xff]  }
 0x2e0   : > { %v1166_v11 = vmul.f32 1.442695, %v1165_v10  ;;  %v699_v10 = vld [vmem:[%s691_s29] sm:$0xf]  ;;  %s3125_s29 = smov 24  }
 0x2e1   : > { %v1064_v12 = vpop.permute.xlu1 %1063 }
 0x2e2   : > { %2589 = vpow2.f32 %v1166_v11  ;;  %v1069_v13 = vsel %vm847_vm5, %v1064_v12, 0  ;;  %v2573_v11 = vld [vmem:[%s3081_s8 + $0x8] sm:$0xff]   ;;  %v2574_v12 = vld [vmem:[%s3081_s8] sm:$0xff]  }
 0x2e3   : > { %2426 = vmatpush3.bf16.msra.mxu0 %v1069_v13 }
 0x2e4   : > { %2437 = vmatprep.subr.bf16.mxu0 %v2629_v1 }
 0x2e6   : > { %2428 = vmatmul.mubr.msk.bf16.vlgmr.msra.gmra.mxu0 %vm843_vm6, %v1062_v15 }
 0x2e7   : > { %2438 = vmatpush3.bf16.msra.mxu0 %v1179_v16  ;;  %2439 = vmatprep.mubr.msk.bf16.mxu0 %vm2630_vm0, %v2629_v1 }
 0x2e8   : > { %2451 = vmatprep.subr.bf16.mxu0 %v2629_v1 }
 0x2ef   : > { %v2590_v17 = vpop.eup %2589 }
 0x2f0   : > { %v1168_v18 = vsel %vm829_vm4, %v2590_v17, 0.0  ;;  %v1172_v19 = vpack.c.bf16 %v2590_v17, %v2590_v17  ;;  %v2294_v17 = vld [vmem:[%s3118_s23] ss:$0 sm:$0xff] }
 0x2f1   : > { %1169 = vadd.xlane.f32.xlu0 %v1168_v18 }
 0x2f2   : > { %2440 = vmatmul.mubr.msk.bf16.vlgmr.msra.gmra.mxu0 %vm843_vm6, %v1172_v19  ;;  %v2295_v19 = vld [vmem:[%s3080_s7] ss:$0 sm:$0xff] }
 0x2f3   : > { %2455 = vmatprep.mubr.msk.bf16.mxu0 %vm2630_vm0, %v2629_v1  ;;  %2452 = vmatpush3.bf16.msra.mxu0 %v2573_v11 }
 0x2f4   : > { %2453 = vmatprep.subr.bf16.mxu0 %v2629_v1 }
 0x2f7   : > { %2454 = vmatpush3.bf16.msra.mxu0 %v2574_v12 }
 0x2f8   : > { %2467 = vmatprep.subr.bf16.mxu0 %v2629_v1 }
 0x34d   : > { %v950_v20 = vpop.xlane.xlu1 %949 }
 0x34e   : > { %2591 = vrcp.f32 %v950_v20 }
 0x351   : > { %v838_v47 = vpop.xlane.xlu1 %837 }
 0x355   : > { %v1060_v31 = vpop.xlane.xlu0 %1059 }
 0x356   : > { %2593 = vrcp.f32 %v1060_v31  ;;  %v2296_v31 = vld [vmem:[%s3082_s9] ss:$0 sm:$0xff] }
 0x35b   : > { %v2592_v25 = vpop.eup %2591 }
 0x363   : > { %v2594_v34 = vpop.eup %2593 }
 0x37a   : > { %v1170_v33 = vpop.xlane.xlu0 %1169 }
 0x37b   : > { %2595 = vrcp.f32 %v1170_v33 }
 0x37c   : > { %2597 = vrcp.f32 %v838_v47 }
 0x381   : > { %v885_v21 = vpop.f32.mrf.mxu0 }
 0x383   : > { %v2405_v22 = vpop.f32.mrf.mxu0 }
 0x385   : > { %v888_v23 = vpop.f32.mrf.mxu0 }
 0x386   : > { %v2300_v23 = vld [vmem:[%s3084_s11] ss:$0 sm:$0xff] }
 0x387   : > { %v2406_v24 = vpop.f32.mrf.mxu0 }
 0x388   : > { %v2596_v41 = vpop.eup %2595 }
 0x389   : > { %v995_v26 = vpop.f32.mrf.mxu0  ;;  %v2598_v48 = vpop.eup %2597 }
 0x38a   : > { %v1001_v27 = vmul.f32 %v2592_v25, %v995_v26  ;;  %v891_v51 = vmul.f32 %v2598_v48, %v885_v21 }
 0x38b   : > { %v2417_v28 = vpop.f32.mrf.mxu0 }
 0x38c   : > { %1223 = vrot.lane.b32.xlu0 %v1001_v27, %s3099_s27  ;;  %s3101_s27 = smov 16  }
 0x38d   : > { %v998_v29 = vpop.f32.mrf.mxu0 }
 0x38f   : > { %v2418_v30 = vpop.f32.mrf.mxu0 }
 0x3a6   : > { %v1105_v35 = vpop.f32.mrf.mxu0 }
 0x3a7   : > { %v1111_v37 = vmul.f32 %v2594_v34, %v1105_v35 }
 0x3a8   : > { %v2429_v38 = vpop.f32.mrf.mxu0 }
 0x3a9   : > { %1227 = vrot.lane.b32.xlu1 %v1111_v37, %s3101_s27 }
 0x3aa   : > { %v1108_v39 = vpop.f32.mrf.mxu0 }
 0x3ac   : > { %v2430_v40 = vpop.f32.mrf.mxu0 }
 0x3b2   : > { %v1215_v42 = vpop.f32.mrf.mxu0 }
 0x3b3   : > { %v1221_v43 = vmul.f32 %v2596_v41, %v1215_v42 }
 0x3b4   : > { %v2441_v44 = vpop.f32.mrf.mxu0 }
 0x3b5   : > { %1231 = vrot.lane.b32.xlu1 %v1221_v43, %s3100_s6 }
 0x3b6   : > { %v1218_v45 = vpop.f32.mrf.mxu0 }
 0x3b8   : > { %v2442_v46 = vpop.f32.mrf.mxu0 }
 0x3fe   : > { %v1224_v49 = vpop.permute.xlu0 %1223 }
 0x3ff   : > { %v1234_v52 = vsel %vm782_vm2, %v891_v51, %v1224_v49 }
 0x41b   : > { %v1228_v50 = vpop.permute.xlu1 %1227 }
 0x41c   : > { %v1236_v53 = vsel %vm1235_vm7, %v1234_v52, %v1228_v50 }
 0x427   : > { %v1232_v54 = vpop.permute.xlu1 %1231 }
 0x428   : > { %v1238_v55 = vsel %vm1237_vm8, %v1236_v53, %v1232_v54 }
 0x429   : > { %v1239_v56 = vpack.c.bf16 %v1238_v55, %v1238_v55 }
 0x42b   : > { %2448 = vmatmul.mubr.msk.bf16.vlgmr.msra.gmra.mxu1 %vm723_vm1, %v1239_v56 }
 0x42c   : > { %2463 = vmatprep.mubr.msk.bf16.mxu1 %vm2630_vm0, %v2629_v1  ;;  %2460 = vmatpush3.bf16.msra.mxu1 %v2571_v3 }
 0x42d   : > { %2461 = vmatprep.subr.bf16.mxu1 %v2629_v1 }
 0x430   : > { %2462 = vmatpush3.bf16.msra.mxu1 %v2572_v9 }
 0x431   : > { %2473 = vmatprep.subr.bf16.mxu1 %v2629_v1 }
 0x433   : > { %2464 = vmatmul.mubr.msk.bf16.vlgmr.msra.gmra.mxu1 %vm723_vm1, %v699_v10 }
 0x434   : > { %2475 = vmatprep.mubr.msk.bf16.mxu1 %vm2630_vm0, %v2629_v1 }
 0x4eb   : > { %v1295_v59 = vpop.f32.mrf.mxu1 }
 0x4ec   : > { %v1296_v60 = vadd.f32 %v2290_v57, %v1295_v59 }
 0x4ed   : > { %v2449_v61 = vpop.f32.mrf.mxu1 }
 0x4ee   : > { %v1301_v62 = vadd.f32 %v1296_v60, %v698_v58 }
 0x4ef   : > { %v1298_v63 = vpop.f32.mrf.mxu1 }
 0x4f0   : > { %v1305_v0 = vsel %vm1304_vm9, %v1301_v62, 0.0 }
 0x4f1   : > { %v2450_v2 = vpop.f32.mrf.mxu1  ;;  %1306 = vadd.xlane.f32.xlu0 %v1305_v0 }
 0x4f3   : > { %v1460_v24 = vpop.f32.mrf.mxu1 }
 0x4f4   : > { %v1461_v25 = vadd.f32 %v2300_v23, %v1460_v24 }
 0x4f5   : > { %v2465_v26 = vpop.f32.mrf.mxu1 }
 0x4f6   : > { %v2929_v27 = vpack.c.bf16 %v1461_v25, %v1461_v25 }
 0x4f7   : > { %v1463_v28 = vpop.f32.mrf.mxu1 }
 0x4f8   : > { %v1477_v29 = vsel %vm782_vm2, %v2929_v27, 0 }
 0x4f9   : > { %v2466_v30 = vpop.f32.mrf.mxu1 }
 0x507   : > { %1585 = vrot.lane.b32.xlu0 %v2929_v27, %s2631_s28 }
 0x50b   : > { %1695 = vrot.lane.b32.xlu0 %v2929_v27, %s2636_s5 }
 0x50f   : > { %1805 = vrot.lane.b32.xlu0 %v2929_v27, %s2637_s24 }
 0x57a   : > { %v1307_v4 = vpop.xlane.xlu0 %1306 }
 0x57b   : > { %v1309_v5 = vmul.f32 0.03125, %v1307_v4 }
 0x57d   : > { %v1310_v6 = vsub.f32 %v1301_v62, %v1309_v5 }
 0x57e   : > { %v1586_v35 = vpop.permute.xlu0 %1585 }
 0x57f   : > { %v1311_v7 = vmul.f32 %v1310_v6, %v1310_v6  ;;  %v1591_v37 = vsel %vm782_vm2, %v1586_v35, 0 }
 0x581   : > { %v1312_v8 = vsel %vm1304_vm9, %v1311_v7, 0.0 }
 0x582   : > { %1313 = vadd.xlane.f32.xlu1 %v1312_v8  ;;  %v1696_v40 = vpop.permute.xlu0 %1695 }
 0x583   : > { %v1701_v42 = vsel %vm782_vm2, %v1696_v40, 0 }
 0x586   : > { %v1806_v44 = vpop.permute.xlu0 %1805 }
 0x587   : > { %v1811_v46 = vsel %vm782_vm2, %v1806_v44, 0 }
 0x60b   : > { %v1314_v13 = vpop.xlane.xlu1 %1313 }
 0x60c   : > { %v1315_v14 = vmul.f32 0.03125, %v1314_v13 }
 0x60e   : > { %v1316_v15 = vadd.f32 1e-05, %v1315_v14 }
 0x610   : > { %2599 = vrsqrt.f32 %v1316_v15 }
 0x61d   : > { %v2600_v16 = vpop.eup %2599 }
 0x61e   : > { %v1318_v18 = vmul.f32 %v2600_v16, %v1310_v6 }
 0x620   : > { %v1325_v20 = vmul.f32 %v2294_v17, %v1318_v18 }
 0x622   : > { %v2919_v21 = vadd.f32 %v2295_v19, %v1325_v20 }
 0x624   : > { %v1337_v22 = vpack.c.bf16 %v2919_v21, %v2919_v21 }
 0x626   : > { %2456 = vmatmul.mubr.msk.bf16.vlgmr.msra.gmra.mxu0 %vm723_vm1, %v1337_v22 }
 0x627   : > { %2469 = vmatprep.mubr.msk.bf16.mxu0 %vm2630_vm0, %v2629_v1  ;;  %2468 = vmatpush3.bf16.xpose.msra.mxu0 %v1477_v29 }
 0x628   : > { %2479 = vmatprep.subr.bf16.mxu0 %v2629_v1 }
 0x6e6   : > { %v1394_v32 = vpop.f32.mrf.mxu0 }
 0x6e7   : > { %v1395_v33 = vadd.f32 %v2296_v31, %v1394_v32 }
 0x6e8   : > { %v2457_v34 = vpop.f32.mrf.mxu0 }
 0x6e9   : > { %v1471_v36 = vpack.c.bf16 %v1395_v33, %v1395_v33 }
 0x6ea   : > { %v1397_v38 = vpop.f32.mrf.mxu0 }
 0x6eb   : > { %1583 = vrot.lane.b32.xlu1 %v1471_v36, %s2631_s28  ;;  %2470 = vmatmul.mubr.msk.bf16.vlgmr.msra.gmra.mxu0 %vm782_vm2, %v1471_v36  ;;  %s3120_s28 = smov 80  }
 0x6ec   : > { %v2458_v39 = vpop.f32.mrf.mxu0  ;;  %2480 = vmatpush3.bf16.xpose.msra.mxu0 %v1591_v37  ;;  %2481 = vmatprep.mubr.msk.bf16.mxu0 %vm2630_vm0, %v2629_v1 }
 0x6ed   : > { %2491 = vmatprep.subr.bf16.mxu0 %v2629_v1 }
 0x6ef   : > { %1693 = vrot.lane.b32.xlu1 %v1471_v36, %s2636_s5  ;;  %s3121_s5 = smov 72  }
 0x6f3   : > { %1803 = vrot.lane.b32.xlu1 %v1471_v36, %s2637_s24  ;;  %s3122_s24 = smov 88  }
 0x6f7   : > { %1532 = vrot.lane.b32.xlu1 %v2929_v27, %s3119_s30 }
 0x75d   : > { %v1584_v41 = vpop.permute.xlu1 %1583 }
 0x75e   : > { %2482 = vmatmul.mubr.msk.bf16.vlgmr.msra.gmra.mxu0 %vm782_vm2, %v1584_v41 }
 0x75f   : > { %2492 = vmatpush3.bf16.xpose.msra.mxu0 %v1701_v42  ;;  %2493 = vmatprep.mubr.msk.bf16.mxu0 %vm2630_vm0, %v2629_v1 }
 0x760   : > { %2503 = vmatprep.subr.bf16.mxu0 %v2629_v1 }
 0x761   : > { %v1694_v43 = vpop.permute.xlu1 %1693 }
 0x765   : > { %v1804_v45 = vpop.permute.xlu1 %1803 }
 0x766   : > { %2494 = vmatmul.mubr.msk.bf16.vlgmr.msra.gmra.mxu0 %vm782_vm2, %v1694_v43  ;;  %v2575_v43 = vld [vmem:[%s3085_s12 + $0x8] sm:$0xff]  }
 0x767   : > { %2504 = vmatpush3.bf16.xpose.msra.mxu0 %v1811_v46  ;;  %2505 = vmatprep.mubr.msk.bf16.mxu0 %vm2630_vm0, %v2629_v1 }
 0x768   : > { %2515 = vmatprep.subr.bf16.mxu0 %v2629_v1 }
 0x769   : > { %v1533_v47 = vpop.permute.xlu1 %1532 }
 0x76a   : > { %v1539_v48 = vsel %vm1537_vm10, %v1533_v47, 0 }
 0x76b   : > { %2474 = vmatpush3.bf16.msra.mxu1 %v1539_v48 }
 0x76c   : > { %2485 = vmatprep.subr.bf16.mxu1 %v2629_v1 }
 0x76e   : > { %2506 = vmatmul.mubr.msk.bf16.vlgmr.msra.gmra.mxu0 %vm782_vm2, %v1804_v45 }
 0x76f   : > { %2519 = vmatprep.mubr.msk.bf16.mxu0 %vm2630_vm0, %v2629_v1  ;;  %2516 = vmatpush3.bf16.msra.mxu0 %v2575_v43 }
 0x770   : > { %2517 = vmatprep.subr.bf16.mxu0 %v2629_v1 }
 0x7ab   : > { %v1513_v49 = vpop.f32.mrf.mxu0 }
 0x7ac   : > { %v1520_v50 = vsel %vm1519_vm11, %v1513_v49, -inf }
 0x7ad   : > { %1521 = vmax.xlane.f32.xlu0 %v1520_v50  ;;  %v2471_v51 = vpop.f32.mrf.mxu0  ;;  %v2576_v50 = vld [vmem:[%s3085_s12] sm:$0xff]  }
 0x7ae   : > { %2518 = vmatpush3.bf16.msra.mxu0 %v2576_v50 }
 0x7af   : > { %v1516_v52 = vpop.f32.mrf.mxu0  ;;  %2531 = vmatprep.subr.bf16.mxu0 %v2629_v1 }
 0x7b1   : > { %v2472_v53 = vpop.f32.mrf.mxu0 }
 0x81e   : > { %v1627_v54 = vpop.f32.mrf.mxu0 }
 0x81f   : > { %v1633_v55 = vsel %vm1519_vm11, %v1627_v54, -inf }
 0x820   : > { %1634 = vmax.xlane.f32.xlu1 %v1633_v55  ;;  %v2483_v56 = vpop.f32.mrf.mxu0 }
 0x822   : > { %v1630_v57 = vpop.f32.mrf.mxu0 }
 0x824   : > { %v2484_v58 = vpop.f32.mrf.mxu0 }
 0x826   : > { %v1737_v59 = vpop.f32.mrf.mxu0 }
 0x827   : > { %v1743_v60 = vsel %vm1519_vm11, %v1737_v59, -inf }
 0x828   : > { %1744 = vmax.xlane.f32.xlu0 %v1743_v60  ;;  %v2495_v61 = vpop.f32.mrf.mxu0 }
 0x82a   : > { %v1740_v62 = vpop.f32.mrf.mxu0 }
 0x82c   : > { %v2496_v63 = vpop.f32.mrf.mxu0 }
 0x82e   : > { %v1847_v0 = vpop.f32.mrf.mxu0 }
 0x82f   : > { %v1853_v2 = vsel %vm1519_vm11, %v1847_v0, -inf }
 0x830   : > { %1854 = vmax.xlane.f32.xlu0 %v1853_v2  ;;  %v2507_v4 = vpop.f32.mrf.mxu0 }
 0x831   : > { %1754 = vrot.lane.b32.xlu1 %v2929_v27, %s3120_s28 }
 0x832   : > { %v1850_v5 = vpop.f32.mrf.mxu0 }
 0x834   : > { %v2508_v6 = vpop.f32.mrf.mxu0 }
 0x835   : > { %1864 = vrot.lane.b32.xlu1 %v2929_v27, %s3121_s5 }
 0x836   : > { %v1522_v7 = vpop.xlane.xlu0 %1521 }
 0x837   : > { %v1523_v8 = vsub.f32 %v1513_v49, %v1522_v7 }
 0x839   : > { %v1524_v3 = vmul.f32 1.442695, %v1523_v8 }
 0x83b   : > { %2601 = vpow2.f32 %v1524_v3 }
 0x846   : > { %1644 = vrot.lane.b32.xlu0 %v2929_v27, %s3122_s24 }
 0x848   : > { %v2602_v9 = vpop.eup %2601 }
 0x849   : > { %v1530_v10 = vpack.c.bf16 %v2602_v9, %v2602_v9  ;;  %v1526_v35 = vsel %vm1519_vm11, %v2602_v9, 0.0 }
 0x84b   : > { %2476 = vmatmul.mubr.msk.bf16.vlgmr.msra.gmra.mxu1 %vm782_vm2, %v1530_v10 }
 0x84c   : > { %2487 = vmatprep.mubr.msk.bf16.mxu1 %vm2630_vm0, %v2629_v1 }
 0x8a9   : > { %v1635_v11 = vpop.xlane.xlu1 %1634 }
 0x8aa   : > { %v1636_v12 = vsub.f32 %v1627_v54, %v1635_v11  ;;  %v2312_v11 = vld [vmem:[%s3086_s13] ss:$0 sm:$0xff] }
 0x8ac   : > { %v1637_v13 = vmul.f32 1.442695, %v1636_v12 }
 0x8ad   : > { %v1755_v25 = vpop.permute.xlu1 %1754 }
 0x8ae   : > { %2603 = vpow2.f32 %v1637_v13  ;;  %v1760_v27 = vsel %vm1537_vm10, %v1755_v25, 0  ;;  %v2577_v25 = vld [vmem:[%s3089_s16 + $0x8] sm:$0xff]  }
 0x8b1   : > { %v1745_v14 = vpop.xlane.xlu0 %1744  ;;  %v1865_v30 = vpop.permute.xlu1 %1864 }
 0x8b2   : > { %v1746_v15 = vsub.f32 %v1737_v59, %v1745_v14  ;;  %v1870_v32 = vsel %vm1537_vm10, %v1865_v30, 0 }
 0x8b4   : > { %v1747_v16 = vmul.f32 1.442695, %v1746_v15 }
 0x8b6   : > { %2605 = vpow2.f32 %v1747_v16 }
 0x8b9   : > { %v1855_v17 = vpop.xlane.xlu0 %1854 }
 0x8ba   : > { %v1856_v18 = vsub.f32 %v1847_v0, %v1855_v17 }
 0x8bb   : > { %v2604_v19 = vpop.eup %2603 }
 0x8bc   : > { %v1857_v20 = vmul.f32 1.442695, %v1856_v18  ;;  %v1639_v22 = vsel %vm1519_vm11, %v2604_v19, 0.0  ;;  %v1643_v26 = vpack.c.bf16 %v2604_v19, %v2604_v19 }
 0x8bd   : > { %1640 = vadd.xlane.f32.xlu0 %v1639_v22  ;;  %v1645_v23 = vpop.permute.xlu0 %1644 }
 0x8be   : > { %2607 = vpow2.f32 %v1857_v20  ;;  %v1650_v24 = vsel %vm1537_vm10, %v1645_v23, 0 }
 0x8bf   : > { %2486 = vmatpush3.bf16.msra.mxu1 %v1650_v24 }
 0x8c0   : > { %2497 = vmatprep.subr.bf16.mxu1 %v2629_v1 }
 0x8c2   : > { %2488 = vmatmul.mubr.msk.bf16.vlgmr.msra.gmra.mxu1 %vm782_vm2, %v1643_v26  ;;  %v2579_v26 = vld [vmem:[%s3091_s18 + $0x18] sm:$0xff]  }
 0x8c3   : > { %v2606_v28 = vpop.eup %2605  ;;  %2498 = vmatpush3.bf16.msra.mxu1 %v1760_v27  ;;  %2499 = vmatprep.mubr.msk.bf16.mxu1 %vm2630_vm0, %v2629_v1  ;;  %v2580_v27 = vld [vmem:[%s3091_s18 + $0x10] sm:$0xff]  }
 0x8c4   : > { %v1749_v29 = vsel %vm1519_vm11, %v2606_v28, 0.0  ;;  %2509 = vmatprep.subr.bf16.mxu1 %v2629_v1  ;;  %v1753_v31 = vpack.c.bf16 %v2606_v28, %v2606_v28 }
 0x8c5   : > { %1750 = vadd.xlane.f32.xlu1 %v1749_v29 }
 0x8ca   : > { %2500 = vmatmul.mubr.msk.bf16.vlgmr.msra.gmra.mxu1 %vm782_vm2, %v1753_v31 }
 0x8cb   : > { %v2608_v33 = vpop.eup %2607  ;;  %2510 = vmatpush3.bf16.msra.mxu1 %v1870_v32  ;;  %2511 = vmatprep.mubr.msk.bf16.mxu1 %vm2630_vm0, %v2629_v1  ;;  %v2316_v32 = vld [vmem:[%s3087_s14] ss:$0 sm:$0xff] }
 0x8cc   : > { %v1859_v34 = vsel %vm1519_vm11, %v2608_v33, 0.0  ;;  %2523 = vmatprep.subr.bf16.mxu1 %v2629_v1  ;;  %v1863_v36 = vpack.c.bf16 %v2608_v33, %v2608_v33 }
 0x8cd   : > { %1860 = vadd.xlane.f32.xlu0 %v1859_v34  ;;  %v2317_v34 = vld [vmem:[%s3088_s15] ss:$0 sm:$0xff] }
 0x8d1   : > { %1527 = vadd.xlane.f32.xlu0 %v1526_v35 }
 0x8d2   : > { %2512 = vmatmul.mubr.msk.bf16.vlgmr.msra.gmra.mxu1 %vm782_vm2, %v1863_v36 }
 0x8d3   : > { %2527 = vmatprep.mubr.msk.bf16.mxu1 %vm2630_vm0, %v2629_v1  ;;  %2524 = vmatpush3.bf16.msra.mxu1 %v2577_v25 }
 0x8d4   : > { %2525 = vmatprep.subr.bf16.mxu1 %v2629_v1 }
 0x90b   : > { %v1575_v37 = vpop.f32.mrf.mxu1 }
 0x90d   : > { %v2477_v38 = vpop.f32.mrf.mxu1 }
 0x90e   : > { %v2581_v38 = vld [vmem:[%s3091_s18 + $0x8] sm:$0xff]  }
 0x90f   : > { %v1578_v39 = vpop.f32.mrf.mxu1 }
 0x910   : > { %v2582_v39 = vld [vmem:[%s3091_s18] sm:$0xff]  }
 0x911   : > { %v2478_v40 = vpop.f32.mrf.mxu1 }
 0x912   : > { %v2318_v40 = vld [vmem:[%s3090_s17] ss:$0 sm:$0xff] }
 0x946   : > { %v1641_v41 = vpop.xlane.xlu0 %1640 }
 0x947   : > { %2609 = vrcp.f32 %v1641_v41 }
 0x94e   : > { %v1751_v42 = vpop.xlane.xlu1 %1750 }
 0x94f   : > { %2611 = vrcp.f32 %v1751_v42 }
 0x954   : > { %v2610_v44 = vpop.eup %2609 }
 0x956   : > { %v1861_v45 = vpop.xlane.xlu0 %1860 }
 0x957   : > { %2613 = vrcp.f32 %v1861_v45 }
 0x95a   : > { %v1528_v0 = vpop.xlane.xlu0 %1527 }
 0x95b   : > { %2615 = vrcp.f32 %v1528_v0  ;;  %v2328_v0 = vld [vmem:[%s3093_s20] ss:$0 sm:$0xff] }
 0x95c   : > { %v2612_v52 = vpop.eup %2611 }
 0x964   : > { %v2614_v58 = vpop.eup %2613 }
 0x968   : > { %v2616_v2 = vpop.eup %2615 }
 0x969   : > { %v1581_v5 = vmul.f32 %v2616_v2, %v1575_v37 }
 0x982   : > { %v1686_v46 = vpop.f32.mrf.mxu1 }
 0x983   : > { %v1692_v47 = vmul.f32 %v2610_v44, %v1686_v46 }
 0x984   : > { %v2489_v48 = vpop.f32.mrf.mxu1 }
 0x985   : > { %1914 = vrot.lane.b32.xlu1 %v1692_v47, %s3123_s0  ;;  %s695_s0 = scalar_lea.vmem %s3095_s22, %s2781_s1 }
 0x986   : > { %v1689_v49 = vpop.f32.mrf.mxu1 }
 0x988   : > { %v2490_v51 = vpop.f32.mrf.mxu1 }
 0x98a   : > { %v1796_v53 = vpop.f32.mrf.mxu1 }
 0x98b   : > { %v1802_v54 = vmul.f32 %v2612_v52, %v1796_v53 }
 0x98c   : > { %v2501_v55 = vpop.f32.mrf.mxu1 }
 0x98d   : > { %1918 = vrot.lane.b32.xlu0 %v1802_v54, %s3124_s2 }
 0x98e   : > { %v1799_v56 = vpop.f32.mrf.mxu1 }
 0x990   : > { %v2502_v57 = vpop.f32.mrf.mxu1 }
 0x992   : > { %v1906_v59 = vpop.f32.mrf.mxu1 }
 0x993   : > { %v1912_v60 = vmul.f32 %v2614_v58, %v1906_v59 }
 0x994   : > { %v2513_v61 = vpop.f32.mrf.mxu1 }
 0x995   : > { %1922 = vrot.lane.b32.xlu1 %v1912_v60, %s3125_s29 }
 0x996   : > { %v1909_v62 = vpop.f32.mrf.mxu1 }
 0x998   : > { %v2514_v63 = vpop.f32.mrf.mxu1 }
 0x9f7   : > { %v1915_v4 = vpop.permute.xlu1 %1914 }
 0x9f8   : > { %v1925_v7 = vsel %vm782_vm2, %v1581_v5, %v1915_v4  ;;  %v2329_v4 = vld [vmem:[%s3094_s21] ss:$0 sm:$0xff] }
 0x9ff   : > { %v1919_v6 = vpop.permute.xlu0 %1918 }
 0xa00   : > { %v1926_v8 = vsel %vm1235_vm7, %v1925_v7, %v1919_v6 }
 0xa07   : > { %v1923_v3 = vpop.permute.xlu1 %1922 }
 0xa08   : > { %v1927_v9 = vsel %vm1237_vm8, %v1926_v8, %v1923_v3 }
 0xa09   : > { %v1928_v10 = vpack.c.bf16 %v1927_v9, %v1927_v9 }
 0xa0b   : > { %2520 = vmatmul.mubr.msk.bf16.vlgmr.msra.gmra.mxu0 %vm723_vm1, %v1928_v10 }
 0xa0c   : > { %2539 = vmatprep.mubr.msk.bf16.mxu0 %vm2630_vm0, %v2629_v1  ;;  %2532 = vmatpush3.bf16.msra.mxu0 %v2579_v26 }
 0xa0d   : > { %2533 = vmatprep.subr.bf16.mxu0 %v2629_v1 }
 0xa10   : > { %2534 = vmatpush3.bf16.msra.mxu0 %v2580_v27 }
 0xa11   : > { %2535 = vmatprep.subr.bf16.mxu0 %v2629_v1 }
 0xa14   : > { %2536 = vmatpush3.bf16.msra.mxu0 %v2581_v38 }
 0xa15   : > { %2537 = vmatprep.subr.bf16.mxu0 %v2629_v1  ;;  %v2322_v1 = vld [vmem:[%s3092_s19] ss:$0 sm:$0xff] }
 0xa18   : > { %2538 = vmatpush3.bf16.msra.mxu0 %v2582_v39 }
 0xacb   : > { %v1984_v12 = vpop.f32.mrf.mxu0 }
 0xacc   : > { %v1985_v13 = vadd.f32 %v2312_v11, %v1984_v12 }
 0xacd   : > { %v2521_v14 = vpop.f32.mrf.mxu0 }
 0xace   : > { %v1990_v15 = vadd.f32 %v1985_v13, %v2919_v21  ;;  %v2578_v21 = vld [vmem:[%s3089_s16] sm:$0xff]  }
 0xacf   : > { %v1987_v16 = vpop.f32.mrf.mxu0  ;;  %2526 = vmatpush3.bf16.msra.mxu1 %v2578_v21 }
 0xad0   : > { %v1993_v17 = vsel %vm1304_vm9, %v1990_v15, 0.0 }
 0xad1   : > { %1994 = vadd.xlane.f32.xlu1 %v1993_v17  ;;  %v2522_v18 = vpop.f32.mrf.mxu0 }
 0xb5a   : > { %v1995_v19 = vpop.xlane.xlu1 %1994 }
 0xb5b   : > { %v1996_v20 = vmul.f32 0.03125, %v1995_v19 }
 0xb5d   : > { %v1997_v22 = vsub.f32 %v1990_v15, %v1996_v20 }
 0xb5f   : > { %v1998_v23 = vmul.f32 %v1997_v22, %v1997_v22 }
 0xb61   : > { %v1999_v24 = vsel %vm1304_vm9, %v1998_v23, 0.0 }
 0xb62   : > { %2000 = vadd.xlane.f32.xlu0 %v1999_v24 }
 0xbeb   : > { %v2001_v28 = vpop.xlane.xlu0 %2000 }
 0xbec   : > { %v2002_v29 = vmul.f32 0.03125, %v2001_v28 }
 0xbee   : > { %v2003_v30 = vadd.f32 1e-05, %v2002_v29 }
 0xbf0   : > { %2617 = vrsqrt.f32 %v2003_v30 }
 0xbfd   : > { %v2618_v31 = vpop.eup %2617 }
 0xbfe   : > { %v2005_v33 = vmul.f32 %v2618_v31, %v1997_v22 }
 0xc00   : > { %v2012_v35 = vmul.f32 %v2316_v32, %v2005_v33 }
 0xc02   : > { %v2019_v36 = vadd.f32 %v2317_v34, %v2012_v35 }
 0xc04   : > { %v2024_v37 = vpack.c.bf16 %v2019_v36, %v2019_v36 }
 0xc06   : > { %2528 = vmatmul.mubr.msk.bf16.vlgmr.msra.gmra.mxu1 %vm723_vm1, %v2024_v37 }
 0xcc6   : > { %v2081_v41 = vpop.f32.mrf.mxu1 }
 0xcc7   : > { %v2082_v42 = vadd.f32 %v2318_v40, %v2081_v41 }
 0xcc8   : > { %v2529_v43 = vpop.f32.mrf.mxu1 }
 0xcc9   : > { %v2087_v44 = vmax.f32 %v2082_v42, 0.0 }
 0xcca   : > { %v2084_v45 = vpop.f32.mrf.mxu1 }
 0xccb   : > { %v2096_v46 = vpack.c.bf16 %v2087_v44, %v2087_v44 }
 0xccc   : > { %v2530_v47 = vpop.f32.mrf.mxu1 }
 0xccd   : > { %2540 = vmatmul.mubr.msk.bf16.vlgmr.msra.gmra.mxu0 %vm2128_vm12, %v2096_v46 }
 0xd8d   : > { %v2166_v48 = vpop.f32.mrf.mxu0 }
 0xd8e   : > { %v2167_v49 = vadd.f32 %v2322_v1, %v2166_v48 }
 0xd8f   : > { %v2541_v50 = vpop.f32.mrf.mxu0 }
 0xd90   : > { %v2172_v51 = vadd.f32 %v2167_v49, %v2019_v36 }
 0xd91   : > { %v2169_v52 = vpop.f32.mrf.mxu0 }
 0xd92   : > { %v2175_v53 = vsel %vm1304_vm9, %v2172_v51, 0.0 }
 0xd93   : > { %2176 = vadd.xlane.f32.xlu0 %v2175_v53  ;;  %v2542_v54 = vpop.f32.mrf.mxu0 }
 0xe1c   : > { %v2177_v55 = vpop.xlane.xlu0 %2176 }
 0xe1d   : > { %v2178_v56 = vmul.f32 0.03125, %v2177_v55 }
 0xe1f   : > { %v2179_v57 = vsub.f32 %v2172_v51, %v2178_v56 }
 0xe21   : > { %v2180_v58 = vmul.f32 %v2179_v57, %v2179_v57 }
 0xe23   : > { %v2181_v59 = vsel %vm1304_vm9, %v2180_v58, 0.0 }
 0xe24   : > { %2182 = vadd.xlane.f32.xlu1 %v2181_v59 }
 0xead   : > { %v2183_v60 = vpop.xlane.xlu1 %2182 }
 0xeae   : > { %v2184_v61 = vmul.f32 0.03125, %v2183_v60 }
 0xeb0   : > { %v2185_v62 = vadd.f32 1e-05, %v2184_v61 }
 0xeb2   : > { %2619 = vrsqrt.f32 %v2185_v62 }
 0xebf   : > { %v2620_v63 = vpop.eup %2619 }
 0xec0   : > { %v2187_v2 = vmul.f32 %v2620_v63, %v2179_v57 }
 0xec2   : > { %v2194_v5 = vmul.f32 %v2328_v0, %v2187_v2 }
 0xec4   : > { %v2201_v6 = vadd.f32 %v2329_v4, %v2194_v5 }
 0xec6   : > { %v2202_v7 = vpack.c.bf16 %v2201_v6, %v2201_v6 }
 0xec8   : > { %2204 = vst.msk [vmem:[%s695_s0] sm:$0x7] %vm2203_vm13, %v2202_v7 }
 0xec9 PF: > { %s32_s3 = sadd.s32 1, %s2627_s3  }
 0xeca   : > { %p29_p4 = scmp.ge.s32.totalorder %s32_s3, 4  }
 0xecc   :  { %31 = sbr.rel (!%p29_p4) target bundleno = 8 (0x8), region = 141 }

</bundles_post_ra>
